<compile_context>
chip_gen: v7x
topology: tpu7x:2x2x1
jax: 0.10.0
libtpu: 0.0.40
codegen_flags: <defaults>
</compile_context>

<pallas_src>
import jax
import jax.numpy as jnp
from jax import lax
from jax.experimental import pallas as pl
from jax.experimental.pallas import tpu as pltpu


def _lstmn_featurizer_kernel(
    x_ref,                                   # (S, 2E) [embeds | embeds_reversed]
    wxs, bs, whs, wah, wax, waht, vbc,       # lane-merged fwd+bwd LSTMN weights
    attn_w, query, w1t_f, w1t_b, b1, w2t, b2,  # doc attention + MLP head
    out_ref,                                 # (1, out_size)
    hc_mem,                                  # (S, 4H) [h_f|h_b|c_f|c_b], processing order
    k_mem,                                   # (S, 2A) cached h@wah key tape
    hb_out,                                  # (S, H) backward hidden, original order
    xg_all,                                  # (S, 8H) precomputed x-gates (gate-major)
    xa_all,                                  # (S, 2A) precomputed x-attn
):
    S = x_ref.shape[0]
    H = hb_out.shape[1]
    H2 = 2 * H
    f32 = jnp.float32

    idx = lax.broadcasted_iota(jnp.int32, (S, 1), 0)

    # Zero-init only the tapes that are read before being fully written.
    # NOTE: the idx < t mask is the source of truth for causality; zero tapes
    # only define the t == 0 / not-yet-written rows.
    hc_mem[...] = jnp.zeros_like(hc_mem)
    k_mem[...] = jnp.zeros_like(k_mem)

    # Hoist x-dependent matmuls out of the recurrence; both directions at once.
    x_all = x_ref[...]
    xg_all[...] = jnp.dot(x_all, wxs[...], preferred_element_type=f32) + bs[...]
    xa_all[...] = jnp.dot(x_all, wax[...], preferred_element_type=f32)

    # Loop-invariant weight reads.
    whs_v, wah_v, waht_v, vbc_v = whs[...], wah[...], waht[...], vbc[...]

    def step(t, htilde_prev):
        tt = S - 1 - t

        # Intra-attention over previously processed steps (both directions
        # lane-merged); key tape cached incrementally in k_mem.
        key = jnp.tanh(k_mem[...] + xa_all[pl.ds(t, 1), :]
                       + jnp.dot(htilde_prev, waht_v, preferred_element_type=f32))
        # One MXU push gives per-direction scores already broadcast to the
        # [h_f|h_b|c_f|c_b] lane pattern of hc_mem.
        sc = jnp.dot(key, vbc_v, preferred_element_type=f32)            # (S, 4H)
        valid = idx < t
        sc = jnp.where(valid, sc, -1e30)
        smax = jnp.max(sc, axis=0, keepdims=True)
        p = jnp.exp(sc - smax) * valid.astype(f32)                      # zeros at t == 0
        denom = jnp.maximum(jnp.sum(p, axis=0, keepdims=True), 1e-30)
        hc_tilde = jnp.sum(p * hc_mem[...], axis=0, keepdims=True) / denom  # (1, 4H)
        htilde = hc_tilde[:, 0:H2]                                      # [htilde_f|htilde_b]
        ctilde = hc_tilde[:, H2:2 * H2]                                 # [ctilde_f|ctilde_b]

        # Fused gate matmul for both directions: (1, 2H) @ (2H, 8H) -> (1, 256),
        # gate-major layout [i_fb | f_fb | o_fb | g_fb].
        g_all = xg_all[pl.ds(t, 1), :] + jnp.dot(
            htilde, whs_v, preferred_element_type=f32)
        sig_all = jax.nn.sigmoid(g_all)                                 # whole-vreg nonlinearity
        tnh_all = jnp.tanh(g_all)
        i_g = sig_all[:, 0:H2]
        f_g = sig_all[:, H2:2 * H2]
        o_g = sig_all[:, 2 * H2:3 * H2]
        c_hat = tnh_all[:, 3 * H2:4 * H2]
        c_t = f_g * ctilde + i_g * c_hat                                # (1, 2H)
        h_t = o_g * jnp.tanh(c_t)                                       # (1, 2H)

        # 3 row stores per step (was 7).
        hc_mem[pl.ds(t, 1), :] = jnp.concatenate([h_t, c_t], axis=1)    # processing order
        k_mem[pl.ds(t, 1), :] = jnp.dot(h_t, wah_v, preferred_element_type=f32)
        hb_out[pl.ds(tt, 1), :] = h_t[:, H:H2]                          # original order
        return htilde

    unroll = True if S <= 16 else 4
    lax.fori_loop(0, S, step, jnp.zeros((1, H2), f32), unroll=unroll)

    hf = hc_mem[...][:, 0:H]                                            # (S, H) original order
    hb = hb_out[...]                                                    # (S, H) original order

    # Document-level attention pooling (work on the two H-wide halves):
    #   attn = softmax((query @ attn_w) @ embed^T), ctxt = sum(attn^T * embed, 0)
    q_full = jnp.dot(query[...], attn_w[...], preferred_element_type=f32)  # (1, 2H)
    qf = q_full[:, 0:H]
    qb = q_full[:, H:2 * H]
    sc = (jnp.sum(hf * qf, axis=1, keepdims=True)
          + jnp.sum(hb * qb, axis=1, keepdims=True))                    # (S, 1)
    sc = sc - jnp.max(sc, axis=0, keepdims=True)
    e = jnp.exp(sc)
    a = e / jnp.sum(e, axis=0, keepdims=True)                           # (S, 1)
    ctxt_f = jnp.sum(a * hf, axis=0, keepdims=True)                     # (1, H)
    ctxt_b = jnp.sum(a * hb, axis=0, keepdims=True)                     # (1, H)

    h1 = jnp.maximum(
        jnp.dot(ctxt_f, w1t_f[...], preferred_element_type=f32)
        + jnp.dot(ctxt_b, w1t_b[...], preferred_element_type=f32)
        + b1[...], 0.0)
    out = jax.nn.sigmoid(
        jnp.dot(h1, w2t[...], preferred_element_type=f32) + b2[...])
    out_ref[...] = out.astype(out_ref.dtype)


def init_params(key, num_embeddings, embedding_dim, hidden_dim, out_size):
    E, H = embedding_dim, hidden_dim
    A = hidden_dim  # LSTMN intra-attention width
    keys = iter(jax.random.split(key, 40))

    def n(shape, scale=0.1):
        return (scale * jax.random.normal(next(keys), shape)).astype(jnp.float32)

    params = dict(
        embedding=n((num_embeddings, E), 1.0),
        query_vector=n((1, 64), 1.0),            # torch.randn(1, 64)
        attn_w=n((64, 2 * H), 1.0),              # torch.randn(64, 2*hidden)
        w1=n((32, 2 * H)), b1=n((32,)),          # nn.Linear(2H, 32)
        w2=n((out_size, 32)), b2=n((out_size,)),  # nn.Linear(32, out_size)
    )
    for d in ("f", "b"):
        params[f"wx_{d}"] = n((4, E, H))         # gate order: i, f, o, g
        params[f"wh_{d}"] = n((4, H, H))
        params[f"b_{d}"] = n((4, 1, H))
        params[f"wah_{d}"] = n((H, A))
        params[f"wax_{d}"] = n((E, A))
        params[f"waht_{d}"] = n((H, A))
        params[f"v_{d}"] = n((A, 1))
    return params


def _blockdiag(a, b):
    za = jnp.zeros((a.shape[0], b.shape[1]), a.dtype)
    zb = jnp.zeros((b.shape[0], a.shape[1]), b.dtype)
    return jnp.concatenate(
        [jnp.concatenate([a, za], axis=1), jnp.concatenate([zb, b], axis=1)], axis=0)


def _vmem_limit_bytes(S, E, H, A):
    # (8, 128)-padded f32 footprint of the big VMEM residents + headroom,
    # capped below the physical VMEM of the generation we are running on.
    def padded(r, c):
        return ((r + 7) // 8) * 8 * ((c + 127) // 128) * 128 * 4

    est = (padded(S, 2 * E)          # x_merged input
           + padded(S, 8 * H)        # x-gate tape
           + padded(S, 4 * H)        # hc tape
           + 2 * padded(S, 2 * A)    # key tape + x-attn tape
           + padded(S, H)            # backward hidden (original order)
           + 3 * padded(S, 4 * H)    # per-step (S, 4H) temporaries headroom
           + (4 << 20))              # weights + misc
    try:
        cap = int(getattr(pltpu.get_tpu_info(), "vmem_capacity_bytes", 64 << 20))
    except Exception:  # pragma: no cover - defensive, keep the kernel runnable
        cap = 64 << 20
    cap = max(cap - (8 << 20), 16 << 20)   # leave headroom below physical VMEM
    return int(min(max(est, 16 << 20), cap))


@jax.jit
def lstmn_document_featurizer(documents, params):
    # Embedding lookup (gather) is glue, done in plain JAX.
    embeds = params["embedding"][documents]              # (S, E) float32
    S, E = embeds.shape
    H, A = params["wah_f"].shape
    out_size = params["w2"].shape[0]

    # Backward chain consumes the reversed sequence -> both directions index
    # their x-tapes at the same processing-order row t inside the kernel.
    x_merged = jnp.concatenate([embeds, embeds[::-1]], axis=1)   # (S, 2E)

    # Gate-major, direction-block-diagonal stacked weights.
    wxs = jnp.concatenate([_blockdiag(params["wx_f"][g], params["wx_b"][g])
                           for g in range(4)], axis=1)           # (2E, 8H)
    whs = jnp.concatenate([_blockdiag(params["wh_f"][g], params["wh_b"][g])
                           for g in range(4)], axis=1)           # (2H, 8H)
    bs = jnp.concatenate(
        [jnp.concatenate([params["b_f"][g], params["b_b"][g]], axis=1)
         for g in range(4)], axis=1)                             # (1, 8H)
    wah = _blockdiag(params["wah_f"], params["wah_b"])           # (2H, 2A)
    waht = _blockdiag(params["waht_f"], params["waht_b"])        # (2H, 2A)
    wax = _blockdiag(params["wax_f"], params["wax_b"])           # (2E, 2A)

    # (2A, 4H) score matrix: one matmul both reduces key*v per direction and
    # broadcasts the scores to the [h_f|h_b|c_f|c_b] lane layout of hc_mem.
    vf = jnp.tile(params["v_f"], (1, H))                         # (A, H)
    vb = jnp.tile(params["v_b"], (1, H))
    zv = jnp.zeros((A, H), jnp.float32)
    vbc = jnp.concatenate([
        jnp.concatenate([vf, zv, vf, zv], axis=1),
        jnp.concatenate([zv, vb, zv, vb], axis=1)], axis=0)      # (2A, 4H)

    w1t = params["w1"].T                                         # (2H, 32)
    w1t_f, w1t_b = w1t[:H], w1t[H:]
    b1 = params["b1"].reshape(1, -1)                             # (1, 32)
    w2t = params["w2"].T                                         # (32, out_size)
    b2 = params["b2"].reshape(1, -1)                             # (1, out_size)

    args = (x_merged, wxs, bs, whs, wah, wax, waht, vbc,
            params["attn_w"], params["query_vector"],
            w1t_f, w1t_b, b1, w2t, b2)

    vmem_spec = pl.BlockSpec(memory_space=pltpu.MemorySpace.VMEM)
    out = pl.pallas_call(
        _lstmn_featurizer_kernel,
        out_shape=jax.ShapeDtypeStruct((1, out_size), jnp.float32),
        in_specs=[vmem_spec] * len(args),
        out_specs=vmem_spec,
        scratch_shapes=(
            pltpu.VMEM((S, 4 * H), jnp.float32),   # hc tape [h_f|h_b|c_f|c_b]
            pltpu.VMEM((S, 2 * A), jnp.float32),   # cached key tape
            pltpu.VMEM((S, H), jnp.float32),       # backward hidden, original order
            pltpu.VMEM((S, 8 * H), jnp.float32),   # x-gate tape
            pltpu.VMEM((S, 2 * A), jnp.float32),   # x-attn tape
        ),
        compiler_params=pltpu.CompilerParams(
            vmem_limit_bytes=_vmem_limit_bytes(S, E, H, A)),
    )(*args)
    return out[0]                                  # (out_size,) like torch


if __name__ == "__main__":
    num_embeddings, embedding_dim, hidden_dim, out_size = 50, 16, 32, 4
    seq_len = 8

    key = jax.random.PRNGKey(0)
    pkey, dkey = jax.random.split(key)
    params = init_params(pkey, num_embeddings, embedding_dim, hidden_dim, out_size)
    documents = jax.random.randint(dkey, (seq_len,), 0, num_embeddings,
                                   dtype=jnp.int32)

    result = lstmn_document_featurizer(documents, params)
    result = jax.block_until_ready(result)
    assert result.shape == (out_size,)
    assert bool(jnp.all(jnp.isfinite(result)))
    print("KERNEL_OK")
</pallas_src>

<mosaic_0001>
module attributes {stable_mosaic.version = 11 : i64} {
  func.func @_lstmn_featurizer_kernel(%arg0: memref<8x32xf32, #tpu.memory_space<vmem>>, %arg1: memref<32x256xf32, #tpu.memory_space<vmem>>, %arg2: memref<1x256xf32, #tpu.memory_space<vmem>>, %arg3: memref<64x256xf32, #tpu.memory_space<vmem>>, %arg4: memref<64x64xf32, #tpu.memory_space<vmem>>, %arg5: memref<32x64xf32, #tpu.memory_space<vmem>>, %arg6: memref<64x64xf32, #tpu.memory_space<vmem>>, %arg7: memref<64x128xf32, #tpu.memory_space<vmem>>, %arg8: memref<64x64xf32, #tpu.memory_space<vmem>>, %arg9: memref<1x64xf32, #tpu.memory_space<vmem>>, %arg10: memref<32x32xf32, #tpu.memory_space<vmem>>, %arg11: memref<32x32xf32, #tpu.memory_space<vmem>>, %arg12: memref<1x32xf32, #tpu.memory_space<vmem>>, %arg13: memref<32x4xf32, #tpu.memory_space<vmem>>, %arg14: memref<1x4xf32, #tpu.memory_space<vmem>>, %arg15: memref<1x4xf32, #tpu.memory_space<vmem>>, %arg16: memref<8x128xf32, #tpu.memory_space<vmem>>, %arg17: memref<8x64xf32, #tpu.memory_space<vmem>>, %arg18: memref<8x32xf32, #tpu.memory_space<vmem>>, %arg19: memref<8x256xf32, #tpu.memory_space<vmem>>, %arg20: memref<8x64xf32, #tpu.memory_space<vmem>>) attributes {dimension_semantics = [], scalar_prefetch = 0 : i64, scratch_operands = 5 : i64, tpu.core_type = #tpu.core_type<tc>} {
    %0 = tpu.iota {dimensions = array<i32: 0>} : vector<8x1xi32>
    %cst = arith.constant 0.000000e+00 : f32
    %1 = vector.broadcast %cst : f32 to vector<8x128xf32>
    %c0 = arith.constant 0 : index
    %c0_0 = arith.constant 0 : index
    %2 = vector.load %arg16[%c0, %c0_0] : memref<8x128xf32, #tpu.memory_space<vmem>>, vector<8x128xf32>
    tpu.vector_store %arg16[%c0, %c0_0], %1 {strides = array<i32>} : memref<8x128xf32, #tpu.memory_space<vmem>>, vector<8x128xf32>,
    %cst_1 = arith.constant 0.000000e+00 : f32
    %3 = vector.broadcast %cst_1 : f32 to vector<8x64xf32>
    %c0_2 = arith.constant 0 : index
    %c0_3 = arith.constant 0 : index
    %4 = vector.load %arg17[%c0_2, %c0_3] : memref<8x64xf32, #tpu.memory_space<vmem>>, vector<8x64xf32>
    tpu.vector_store %arg17[%c0_2, %c0_3], %3 {strides = array<i32>} : memref<8x64xf32, #tpu.memory_space<vmem>>, vector<8x64xf32>,
    %c0_4 = arith.constant 0 : index
    %c0_5 = arith.constant 0 : index
    %5 = vector.load %arg0[%c0_4, %c0_5] : memref<8x32xf32, #tpu.memory_space<vmem>>, vector<8x32xf32>
    %c0_6 = arith.constant 0 : index
    %c0_7 = arith.constant 0 : index
    %6 = vector.load %arg1[%c0_6, %c0_7] : memref<32x256xf32, #tpu.memory_space<vmem>>, vector<32x256xf32>
    %cst_8 = arith.constant dense<0.000000e+00> : vector<8x256xf32>
    %7 = tpu.matmul %5, %6, %cst_8 {dimension_numbers = #tpu.dot_dimension_numbers<[1], [0], [0], [1], [0, 0, 1, 1], [], []>} : vector<8x32xf32>, vector<32x256xf32>, vector<8x256xf32> -> vector<8x256xf32>
    %c0_9 = arith.constant 0 : index
    %c0_10 = arith.constant 0 : index
    %8 = vector.load %arg2[%c0_9, %c0_10] : memref<1x256xf32, #tpu.memory_space<vmem>>, vector<1x256xf32>
    %9 = vector.broadcast %8 : vector<1x256xf32> to vector<8x256xf32>
    %10 = arith.addf %7, %9 : vector<8x256xf32>
    %c0_11 = arith.constant 0 : index
    %c0_12 = arith.constant 0 : index
    %11 = vector.load %arg19[%c0_11, %c0_12] : memref<8x256xf32, #tpu.memory_space<vmem>>, vector<8x256xf32>
    tpu.vector_store %arg19[%c0_11, %c0_12], %10 {strides = array<i32>} : memref<8x256xf32, #tpu.memory_space<vmem>>, vector<8x256xf32>,
    %c0_13 = arith.constant 0 : index
    %c0_14 = arith.constant 0 : index
    %12 = vector.load %arg5[%c0_13, %c0_14] : memref<32x64xf32, #tpu.memory_space<vmem>>, vector<32x64xf32>
    %cst_15 = arith.constant dense<0.000000e+00> : vector<8x64xf32>
    %13 = tpu.matmul %5, %12, %cst_15 {dimension_numbers = #tpu.dot_dimension_numbers<[1], [0], [0], [1], [0, 0, 1, 1], [], []>} : vector<8x32xf32>, vector<32x64xf32>, vector<8x64xf32> -> vector<8x64xf32>
    %c0_16 = arith.constant 0 : index
    %c0_17 = arith.constant 0 : index
    %14 = vector.load %arg20[%c0_16, %c0_17] : memref<8x64xf32, #tpu.memory_space<vmem>>, vector<8x64xf32>
    tpu.vector_store %arg20[%c0_16, %c0_17], %13 {strides = array<i32>} : memref<8x64xf32, #tpu.memory_space<vmem>>, vector<8x64xf32>,
    %c0_18 = arith.constant 0 : index
    %c0_19 = arith.constant 0 : index
    %15 = vector.load %arg3[%c0_18, %c0_19] : memref<64x256xf32, #tpu.memory_space<vmem>>, vector<64x256xf32>
    %c0_20 = arith.constant 0 : index
    %c0_21 = arith.constant 0 : index
    %16 = vector.load %arg4[%c0_20, %c0_21] : memref<64x64xf32, #tpu.memory_space<vmem>>, vector<64x64xf32>
    %c0_22 = arith.constant 0 : index
    %c0_23 = arith.constant 0 : index
    %17 = vector.load %arg6[%c0_22, %c0_23] : memref<64x64xf32, #tpu.memory_space<vmem>>, vector<64x64xf32>
    %c0_24 = arith.constant 0 : index
    %c0_25 = arith.constant 0 : index
    %18 = vector.load %arg7[%c0_24, %c0_25] : memref<64x128xf32, #tpu.memory_space<vmem>>, vector<64x128xf32>
    %cst_26 = arith.constant 0.000000e+00 : f32
    %19 = vector.broadcast %cst_26 : f32 to vector<1x64xf32>
    %c0_i32 = arith.constant 0 : i32
    %c7_i32 = arith.constant 7 : i32
    %20 = arith.subi %c7_i32, %c0_i32 : i32
    %c0_27 = arith.constant 0 : index
    %c0_28 = arith.constant 0 : index
    %21 = vector.load %arg17[%c0_27, %c0_28] : memref<8x64xf32, #tpu.memory_space<vmem>>, vector<8x64xf32>
    %22 = arith.index_cast %c0_i32 : i32 to index
    %c0_29 = arith.constant 0 : index
    %23 = vector.load %arg20[%22, %c0_29] : memref<8x64xf32, #tpu.memory_space<vmem>>, vector<1x64xf32>
    %24 = vector.broadcast %23 : vector<1x64xf32> to vector<8x64xf32>
    %25 = arith.addf %21, %24 : vector<8x64xf32>
    %cst_30 = arith.constant dense<0.000000e+00> : vector<1x64xf32>
    %26 = tpu.matmul %19, %17, %cst_30 {dimension_numbers = #tpu.dot_dimension_numbers<[1], [0], [0], [1], [0, 0, 1, 1], [], []>} : vector<1x64xf32>, vector<64x64xf32>, vector<1x64xf32> -> vector<1x64xf32>
    %27 = vector.broadcast %26 : vector<1x64xf32> to vector<8x64xf32>
    %28 = arith.addf %25, %27 : vector<8x64xf32>
    %29 = math.tanh %28 : vector<8x64xf32>
    %cst_31 = arith.constant dense<0.000000e+00> : vector<8x128xf32>
    %30 = tpu.matmul %29, %18, %cst_31 {dimension_numbers = #tpu.dot_dimension_numbers<[1], [0], [0], [1], [0, 0, 1, 1], [], []>} : vector<8x64xf32>, vector<64x128xf32>, vector<8x128xf32> -> vector<8x128xf32>
    %31 = vector.broadcast %c0_i32 : i32 to vector<8x1xi32>
    %32 = arith.cmpi slt, %0, %31 : vector<8x1xi32>
    %cst_32 = arith.constant -1.000000e+30 : f32
    %33 = vector.shape_cast %32 : vector<8x1xi1> to vector<8x1xi1>
    %34 = vector.broadcast %33 : vector<8x1xi1> to vector<8x128xi1>
    %35 = vector.broadcast %cst_32 : f32 to vector<8x128xf32>
    %36 = arith.select %34, %30, %35 : vector<8x128xi1>, vector<8x128xf32>
    %cst_33 = arith.constant dense<0xFF800000> : vector<128xf32>
    %37 = vector.multi_reduction <maximumf>, %36, %cst_33 [0] : vector<8x128xf32> to vector<128xf32>
    %38 = vector.shape_cast %37 : vector<128xf32> to vector<1x128xf32>
    %39 = vector.broadcast %38 : vector<1x128xf32> to vector<8x128xf32>
    %40 = arith.subf %36, %39 : vector<8x128xf32>
    %41 = math.exp %40 : vector<8x128xf32>
    %42 = arith.extui %32 : vector<8x1xi1> to vector<8x1xi32>
    %43 = arith.sitofp %42 : vector<8x1xi32> to vector<8x1xf32>
    %44 = vector.broadcast %43 : vector<8x1xf32> to vector<8x128xf32>
    %45 = arith.mulf %41, %44 : vector<8x128xf32>
    %cst_34 = arith.constant dense<0.000000e+00> : vector<128xf32>
    %46 = vector.multi_reduction <add>, %45, %cst_34 [0] : vector<8x128xf32> to vector<128xf32>
    %47 = vector.shape_cast %46 : vector<128xf32> to vector<1x128xf32>
    %cst_35 = arith.constant 1.000000e-30 : f32
    %48 = vector.broadcast %cst_35 : f32 to vector<1x128xf32>
    %49 = arith.maximumf %47, %48 : vector<1x128xf32>
    %c0_36 = arith.constant 0 : index
    %c0_37 = arith.constant 0 : index
    %50 = vector.load %arg16[%c0_36, %c0_37] : memref<8x128xf32, #tpu.memory_space<vmem>>, vector<8x128xf32>
    %51 = arith.mulf %45, %50 : vector<8x128xf32>
    %cst_38 = arith.constant dense<0.000000e+00> : vector<128xf32>
    %52 = vector.multi_reduction <add>, %51, %cst_38 [0] : vector<8x128xf32> to vector<128xf32>
    %53 = vector.shape_cast %52 : vector<128xf32> to vector<1x128xf32>
    %54 = arith.divf %53, %49 : vector<1x128xf32>
    %55 = vector.extract_strided_slice %54 {offsets = [0, 0], sizes = [1, 64], strides = [1, 1]} : vector<1x128xf32> to vector<1x64xf32>
    %56 = vector.extract_strided_slice %54 {offsets = [0, 64], sizes = [1, 64], strides = [1, 1]} : vector<1x128xf32> to vector<1x64xf32>
    %57 = arith.index_cast %c0_i32 : i32 to index
    %c0_39 = arith.constant 0 : index
    %58 = vector.load %arg19[%57, %c0_39] : memref<8x256xf32, #tpu.memory_space<vmem>>, vector<1x256xf32>
    %cst_40 = arith.constant dense<0.000000e+00> : vector<1x256xf32>
    %59 = tpu.matmul %55, %15, %cst_40 {dimension_numbers = #tpu.dot_dimension_numbers<[1], [0], [0], [1], [0, 0, 1, 1], [], []>} : vector<1x64xf32>, vector<64x256xf32>, vector<1x256xf32> -> vector<1x256xf32>
    %60 = arith.addf %58, %59 : vector<1x256xf32>
    %61 = arith.negf %60 : vector<1x256xf32>
    %62 = math.exp %61 : vector<1x256xf32>
    %cst_41 = arith.constant 1.000000e+00 : f32
    %63 = vector.broadcast %cst_41 : f32 to vector<1x256xf32>
    %64 = arith.addf %63, %62 : vector<1x256xf32>
    %65 = arith.divf %63, %64 : vector<1x256xf32>
    %66 = math.tanh %60 : vector<1x256xf32>
    %67 = vector.extract_strided_slice %65 {offsets = [0, 0], sizes = [1, 64], strides = [1, 1]} : vector<1x256xf32> to vector<1x64xf32>
    %68 = vector.extract_strided_slice %65 {offsets = [0, 64], sizes = [1, 64], strides = [1, 1]} : vector<1x256xf32> to vector<1x64xf32>
    %69 = vector.extract_strided_slice %65 {offsets = [0, 128], sizes = [1, 64], strides = [1, 1]} : vector<1x256xf32> to vector<1x64xf32>
    %70 = vector.extract_strided_slice %66 {offsets = [0, 192], sizes = [1, 64], strides = [1, 1]} : vector<1x256xf32> to vector<1x64xf32>
    %71 = arith.mulf %68, %56 : vector<1x64xf32>
    %72 = arith.mulf %67, %70 : vector<1x64xf32>
    %73 = arith.addf %71, %72 : vector<1x64xf32>
    %74 = math.tanh %73 : vector<1x64xf32>
    %75 = arith.mulf %69, %74 : vector<1x64xf32>
    %76 = tpu.concatenate %75, %73 in 1 : vector<1x64xf32>, vector<1x64xf32> -> vector<1x128xf32>
    %77 = arith.index_cast %c0_i32 : i32 to index
    %c0_42 = arith.constant 0 : index
    %78 = vector.load %arg16[%77, %c0_42] : memref<8x128xf32, #tpu.memory_space<vmem>>, vector<1x128xf32>
    tpu.vector_store %arg16[%77, %c0_42], %76 {strides = array<i32>} : memref<8x128xf32, #tpu.memory_space<vmem>>, vector<1x128xf32>,
    %cst_43 = arith.constant dense<0.000000e+00> : vector<1x64xf32>
    %79 = tpu.matmul %75, %16, %cst_43 {dimension_numbers = #tpu.dot_dimension_numbers<[1], [0], [0], [1], [0, 0, 1, 1], [], []>} : vector<1x64xf32>, vector<64x64xf32>, vector<1x64xf32> -> vector<1x64xf32>
    %80 = arith.index_cast %c0_i32 : i32 to index
    %c0_44 = arith.constant 0 : index
    %81 = vector.load %arg17[%80, %c0_44] : memref<8x64xf32, #tpu.memory_space<vmem>>, vector<1x64xf32>
    tpu.vector_store %arg17[%80, %c0_44], %79 {strides = array<i32>} : memref<8x64xf32, #tpu.memory_space<vmem>>, vector<1x64xf32>,
    %82 = vector.extract_strided_slice %75 {offsets = [0, 32], sizes = [1, 32], strides = [1, 1]} : vector<1x64xf32> to vector<1x32xf32>
    %83 = arith.index_cast %20 : i32 to index
    %c0_45 = arith.constant 0 : index
    %84 = vector.load %arg18[%83, %c0_45] : memref<8x32xf32, #tpu.memory_space<vmem>>, vector<1x32xf32>
    tpu.vector_store %arg18[%83, %c0_45], %82 {strides = array<i32>} : memref<8x32xf32, #tpu.memory_space<vmem>>, vector<1x32xf32>,
    %c1_i32 = arith.constant 1 : i32
    %c7_i32_46 = arith.constant 7 : i32
    %85 = arith.subi %c7_i32_46, %c1_i32 : i32
    %c0_47 = arith.constant 0 : index
    %c0_48 = arith.constant 0 : index
    %86 = vector.load %arg17[%c0_47, %c0_48] : memref<8x64xf32, #tpu.memory_space<vmem>>, vector<8x64xf32>
    %87 = arith.index_cast %c1_i32 : i32 to index
    %c0_49 = arith.constant 0 : index
    %88 = vector.load %arg20[%87, %c0_49] : memref<8x64xf32, #tpu.memory_space<vmem>>, vector<1x64xf32>
    %89 = vector.broadcast %88 : vector<1x64xf32> to vector<8x64xf32>
    %90 = arith.addf %86, %89 : vector<8x64xf32>
    %cst_50 = arith.constant dense<0.000000e+00> : vector<1x64xf32>
    %91 = tpu.matmul %55, %17, %cst_50 {dimension_numbers = #tpu.dot_dimension_numbers<[1], [0], [0], [1], [0, 0, 1, 1], [], []>} : vector<1x64xf32>, vector<64x64xf32>, vector<1x64xf32> -> vector<1x64xf32>
    %92 = vector.broadcast %91 : vector<1x64xf32> to vector<8x64xf32>
    %93 = arith.addf %90, %92 : vector<8x64xf32>
    %94 = math.tanh %93 : vector<8x64xf32>
    %cst_51 = arith.constant dense<0.000000e+00> : vector<8x128xf32>
    %95 = tpu.matmul %94, %18, %cst_51 {dimension_numbers = #tpu.dot_dimension_numbers<[1], [0], [0], [1], [0, 0, 1, 1], [], []>} : vector<8x64xf32>, vector<64x128xf32>, vector<8x128xf32> -> vector<8x128xf32>
    %96 = vector.broadcast %c1_i32 : i32 to vector<8x1xi32>
    %97 = arith.cmpi slt, %0, %96 : vector<8x1xi32>
    %cst_52 = arith.constant -1.000000e+30 : f32
    %98 = vector.shape_cast %97 : vector<8x1xi1> to vector<8x1xi1>
    %99 = vector.broadcast %98 : vector<8x1xi1> to vector<8x128xi1>
    %100 = vector.broadcast %cst_52 : f32 to vector<8x128xf32>
    %101 = arith.select %99, %95, %100 : vector<8x128xi1>, vector<8x128xf32>
    %cst_53 = arith.constant dense<0xFF800000> : vector<128xf32>
    %102 = vector.multi_reduction <maximumf>, %101, %cst_53 [0] : vector<8x128xf32> to vector<128xf32>
    %103 = vector.shape_cast %102 : vector<128xf32> to vector<1x128xf32>
    %104 = vector.broadcast %103 : vector<1x128xf32> to vector<8x128xf32>
    %105 = arith.subf %101, %104 : vector<8x128xf32>
    %106 = math.exp %105 : vector<8x128xf32>
    %107 = arith.extui %97 : vector<8x1xi1> to vector<8x1xi32>
    %108 = arith.sitofp %107 : vector<8x1xi32> to vector<8x1xf32>
    %109 = vector.broadcast %108 : vector<8x1xf32> to vector<8x128xf32>
    %110 = arith.mulf %106, %109 : vector<8x128xf32>
    %cst_54 = arith.constant dense<0.000000e+00> : vector<128xf32>
    %111 = vector.multi_reduction <add>, %110, %cst_54 [0] : vector<8x128xf32> to vector<128xf32>
    %112 = vector.shape_cast %111 : vector<128xf32> to vector<1x128xf32>
    %cst_55 = arith.constant 1.000000e-30 : f32
    %113 = vector.broadcast %cst_55 : f32 to vector<1x128xf32>
    %114 = arith.maximumf %112, %113 : vector<1x128xf32>
    %c0_56 = arith.constant 0 : index
    %c0_57 = arith.constant 0 : index
    %115 = vector.load %arg16[%c0_56, %c0_57] : memref<8x128xf32, #tpu.memory_space<vmem>>, vector<8x128xf32>
    %116 = arith.mulf %110, %115 : vector<8x128xf32>
    %cst_58 = arith.constant dense<0.000000e+00> : vector<128xf32>
    %117 = vector.multi_reduction <add>, %116, %cst_58 [0] : vector<8x128xf32> to vector<128xf32>
    %118 = vector.shape_cast %117 : vector<128xf32> to vector<1x128xf32>
    %119 = arith.divf %118, %114 : vector<1x128xf32>
    %120 = vector.extract_strided_slice %119 {offsets = [0, 0], sizes = [1, 64], strides = [1, 1]} : vector<1x128xf32> to vector<1x64xf32>
    %121 = vector.extract_strided_slice %119 {offsets = [0, 64], sizes = [1, 64], strides = [1, 1]} : vector<1x128xf32> to vector<1x64xf32>
    %122 = arith.index_cast %c1_i32 : i32 to index
    %c0_59 = arith.constant 0 : index
    %123 = vector.load %arg19[%122, %c0_59] : memref<8x256xf32, #tpu.memory_space<vmem>>, vector<1x256xf32>
    %cst_60 = arith.constant dense<0.000000e+00> : vector<1x256xf32>
    %124 = tpu.matmul %120, %15, %cst_60 {dimension_numbers = #tpu.dot_dimension_numbers<[1], [0], [0], [1], [0, 0, 1, 1], [], []>} : vector<1x64xf32>, vector<64x256xf32>, vector<1x256xf32> -> vector<1x256xf32>
    %125 = arith.addf %123, %124 : vector<1x256xf32>
    %126 = arith.negf %125 : vector<1x256xf32>
    %127 = math.exp %126 : vector<1x256xf32>
    %cst_61 = arith.constant 1.000000e+00 : f32
    %128 = vector.broadcast %cst_61 : f32 to vector<1x256xf32>
    %129 = arith.addf %128, %127 : vector<1x256xf32>
    %130 = arith.divf %128, %129 : vector<1x256xf32>
    %131 = math.tanh %125 : vector<1x256xf32>
    %132 = vector.extract_strided_slice %130 {offsets = [0, 0], sizes = [1, 64], strides = [1, 1]} : vector<1x256xf32> to vector<1x64xf32>
    %133 = vector.extract_strided_slice %130 {offsets = [0, 64], sizes = [1, 64], strides = [1, 1]} : vector<1x256xf32> to vector<1x64xf32>
    %134 = vector.extract_strided_slice %130 {offsets = [0, 128], sizes = [1, 64], strides = [1, 1]} : vector<1x256xf32> to vector<1x64xf32>
    %135 = vector.extract_strided_slice %131 {offsets = [0, 192], sizes = [1, 64], strides = [1, 1]} : vector<1x256xf32> to vector<1x64xf32>
    %136 = arith.mulf %133, %121 : vector<1x64xf32>
    %137 = arith.mulf %132, %135 : vector<1x64xf32>
    %138 = arith.addf %136, %137 : vector<1x64xf32>
    %139 = math.tanh %138 : vector<1x64xf32>
    %140 = arith.mulf %134, %139 : vector<1x64xf32>
    %141 = tpu.concatenate %140, %138 in 1 : vector<1x64xf32>, vector<1x64xf32> -> vector<1x128xf32>
    %142 = arith.index_cast %c1_i32 : i32 to index
    %c0_62 = arith.constant 0 : index
    %143 = vector.load %arg16[%142, %c0_62] : memref<8x128xf32, #tpu.memory_space<vmem>>, vector<1x128xf32>
    tpu.vector_store %arg16[%142, %c0_62], %141 {strides = array<i32>} : memref<8x128xf32, #tpu.memory_space<vmem>>, vector<1x128xf32>,
    %cst_63 = arith.constant dense<0.000000e+00> : vector<1x64xf32>
    %144 = tpu.matmul %140, %16, %cst_63 {dimension_numbers = #tpu.dot_dimension_numbers<[1], [0], [0], [1], [0, 0, 1, 1], [], []>} : vector<1x64xf32>, vector<64x64xf32>, vector<1x64xf32> -> vector<1x64xf32>
    %145 = arith.index_cast %c1_i32 : i32 to index
    %c0_64 = arith.constant 0 : index
    %146 = vector.load %arg17[%145, %c0_64] : memref<8x64xf32, #tpu.memory_space<vmem>>, vector<1x64xf32>
    tpu.vector_store %arg17[%145, %c0_64], %144 {strides = array<i32>} : memref<8x64xf32, #tpu.memory_space<vmem>>, vector<1x64xf32>,
    %147 = vector.extract_strided_slice %140 {offsets = [0, 32], sizes = [1, 32], strides = [1, 1]} : vector<1x64xf32> to vector<1x32xf32>
    %148 = arith.index_cast %85 : i32 to index
    %c0_65 = arith.constant 0 : index
    %149 = vector.load %arg18[%148, %c0_65] : memref<8x32xf32, #tpu.memory_space<vmem>>, vector<1x32xf32>
    tpu.vector_store %arg18[%148, %c0_65], %147 {strides = array<i32>} : memref<8x32xf32, #tpu.memory_space<vmem>>, vector<1x32xf32>,
    %c2_i32 = arith.constant 2 : i32
    %c7_i32_66 = arith.constant 7 : i32
    %150 = arith.subi %c7_i32_66, %c2_i32 : i32
    %c0_67 = arith.constant 0 : index
    %c0_68 = arith.constant 0 : index
    %151 = vector.load %arg17[%c0_67, %c0_68] : memref<8x64xf32, #tpu.memory_space<vmem>>, vector<8x64xf32>
    %152 = arith.index_cast %c2_i32 : i32 to index
    %c0_69 = arith.constant 0 : index
    %153 = vector.load %arg20[%152, %c0_69] : memref<8x64xf32, #tpu.memory_space<vmem>>, vector<1x64xf32>
    %154 = vector.broadcast %153 : vector<1x64xf32> to vector<8x64xf32>
    %155 = arith.addf %151, %154 : vector<8x64xf32>
    %cst_70 = arith.constant dense<0.000000e+00> : vector<1x64xf32>
    %156 = tpu.matmul %120, %17, %cst_70 {dimension_numbers = #tpu.dot_dimension_numbers<[1], [0], [0], [1], [0, 0, 1, 1], [], []>} : vector<1x64xf32>, vector<64x64xf32>, vector<1x64xf32> -> vector<1x64xf32>
    %157 = vector.broadcast %156 : vector<1x64xf32> to vector<8x64xf32>
    %158 = arith.addf %155, %157 : vector<8x64xf32>
    %159 = math.tanh %158 : vector<8x64xf32>
    %cst_71 = arith.constant dense<0.000000e+00> : vector<8x128xf32>
    %160 = tpu.matmul %159, %18, %cst_71 {dimension_numbers = #tpu.dot_dimension_numbers<[1], [0], [0], [1], [0, 0, 1, 1], [], []>} : vector<8x64xf32>, vector<64x128xf32>, vector<8x128xf32> -> vector<8x128xf32>
    %161 = vector.broadcast %c2_i32 : i32 to vector<8x1xi32>
    %162 = arith.cmpi slt, %0, %161 : vector<8x1xi32>
    %cst_72 = arith.constant -1.000000e+30 : f32
    %163 = vector.shape_cast %162 : vector<8x1xi1> to vector<8x1xi1>
    %164 = vector.broadcast %163 : vector<8x1xi1> to vector<8x128xi1>
    %165 = vector.broadcast %cst_72 : f32 to vector<8x128xf32>
    %166 = arith.select %164, %160, %165 : vector<8x128xi1>, vector<8x128xf32>
    %cst_73 = arith.constant dense<0xFF800000> : vector<128xf32>
    %167 = vector.multi_reduction <maximumf>, %166, %cst_73 [0] : vector<8x128xf32> to vector<128xf32>
    %168 = vector.shape_cast %167 : vector<128xf32> to vector<1x128xf32>
    %169 = vector.broadcast %168 : vector<1x128xf32> to vector<8x128xf32>
    %170 = arith.subf %166, %169 : vector<8x128xf32>
    %171 = math.exp %170 : vector<8x128xf32>
    %172 = arith.extui %162 : vector<8x1xi1> to vector<8x1xi32>
    %173 = arith.sitofp %172 : vector<8x1xi32> to vector<8x1xf32>
    %174 = vector.broadcast %173 : vector<8x1xf32> to vector<8x128xf32>
    %175 = arith.mulf %171, %174 : vector<8x128xf32>
    %cst_74 = arith.constant dense<0.000000e+00> : vector<128xf32>
    %176 = vector.multi_reduction <add>, %175, %cst_74 [0] : vector<8x128xf32> to vector<128xf32>
    %177 = vector.shape_cast %176 : vector<128xf32> to vector<1x128xf32>
    %cst_75 = arith.constant 1.000000e-30 : f32
    %178 = vector.broadcast %cst_75 : f32 to vector<1x128xf32>
    %179 = arith.maximumf %177, %178 : vector<1x128xf32>
    %c0_76 = arith.constant 0 : index
    %c0_77 = arith.constant 0 : index
    %180 = vector.load %arg16[%c0_76, %c0_77] : memref<8x128xf32, #tpu.memory_space<vmem>>, vector<8x128xf32>
    %181 = arith.mulf %175, %180 : vector<8x128xf32>
    %cst_78 = arith.constant dense<0.000000e+00> : vector<128xf32>
    %182 = vector.multi_reduction <add>, %181, %cst_78 [0] : vector<8x128xf32> to vector<128xf32>
    %183 = vector.shape_cast %182 : vector<128xf32> to vector<1x128xf32>
    %184 = arith.divf %183, %179 : vector<1x128xf32>
    %185 = vector.extract_strided_slice %184 {offsets = [0, 0], sizes = [1, 64], strides = [1, 1]} : vector<1x128xf32> to vector<1x64xf32>
    %186 = vector.extract_strided_slice %184 {offsets = [0, 64], sizes = [1, 64], strides = [1, 1]} : vector<1x128xf32> to vector<1x64xf32>
    %187 = arith.index_cast %c2_i32 : i32 to index
    %c0_79 = arith.constant 0 : index
    %188 = vector.load %arg19[%187, %c0_79] : memref<8x256xf32, #tpu.memory_space<vmem>>, vector<1x256xf32>
    %cst_80 = arith.constant dense<0.000000e+00> : vector<1x256xf32>
    %189 = tpu.matmul %185, %15, %cst_80 {dimension_numbers = #tpu.dot_dimension_numbers<[1], [0], [0], [1], [0, 0, 1, 1], [], []>} : vector<1x64xf32>, vector<64x256xf32>, vector<1x256xf32> -> vector<1x256xf32>
    %190 = arith.addf %188, %189 : vector<1x256xf32>
    %191 = arith.negf %190 : vector<1x256xf32>
    %192 = math.exp %191 : vector<1x256xf32>
    %cst_81 = arith.constant 1.000000e+00 : f32
    %193 = vector.broadcast %cst_81 : f32 to vector<1x256xf32>
    %194 = arith.addf %193, %192 : vector<1x256xf32>
    %195 = arith.divf %193, %194 : vector<1x256xf32>
    %196 = math.tanh %190 : vector<1x256xf32>
    %197 = vector.extract_strided_slice %195 {offsets = [0, 0], sizes = [1, 64], strides = [1, 1]} : vector<1x256xf32> to vector<1x64xf32>
    %198 = vector.extract_strided_slice %195 {offsets = [0, 64], sizes = [1, 64], strides = [1, 1]} : vector<1x256xf32> to vector<1x64xf32>
    %199 = vector.extract_strided_slice %195 {offsets = [0, 128], sizes = [1, 64], strides = [1, 1]} : vector<1x256xf32> to vector<1x64xf32>
    %200 = vector.extract_strided_slice %196 {offsets = [0, 192], sizes = [1, 64], strides = [1, 1]} : vector<1x256xf32> to vector<1x64xf32>
    %201 = arith.mulf %198, %186 : vector<1x64xf32>
    %202 = arith.mulf %197, %200 : vector<1x64xf32>
    %203 = arith.addf %201, %202 : vector<1x64xf32>
    %204 = math.tanh %203 : vector<1x64xf32>
    %205 = arith.mulf %199, %204 : vector<1x64xf32>
    %206 = tpu.concatenate %205, %203 in 1 : vector<1x64xf32>, vector<1x64xf32> -> vector<1x128xf32>
    %207 = arith.index_cast %c2_i32 : i32 to index
    %c0_82 = arith.constant 0 : index
    %208 = vector.load %arg16[%207, %c0_82] : memref<8x128xf32, #tpu.memory_space<vmem>>, vector<1x128xf32>
    tpu.vector_store %arg16[%207, %c0_82], %206 {strides = array<i32>} : memref<8x128xf32, #tpu.memory_space<vmem>>, vector<1x128xf32>,
    %cst_83 = arith.constant dense<0.000000e+00> : vector<1x64xf32>
    %209 = tpu.matmul %205, %16, %cst_83 {dimension_numbers = #tpu.dot_dimension_numbers<[1], [0], [0], [1], [0, 0, 1, 1], [], []>} : vector<1x64xf32>, vector<64x64xf32>, vector<1x64xf32> -> vector<1x64xf32>
    %210 = arith.index_cast %c2_i32 : i32 to index
    %c0_84 = arith.constant 0 : index
    %211 = vector.load %arg17[%210, %c0_84] : memref<8x64xf32, #tpu.memory_space<vmem>>, vector<1x64xf32>
    tpu.vector_store %arg17[%210, %c0_84], %209 {strides = array<i32>} : memref<8x64xf32, #tpu.memory_space<vmem>>, vector<1x64xf32>,
    %212 = vector.extract_strided_slice %205 {offsets = [0, 32], sizes = [1, 32], strides = [1, 1]} : vector<1x64xf32> to vector<1x32xf32>
    %213 = arith.index_cast %150 : i32 to index
    %c0_85 = arith.constant 0 : index
    %214 = vector.load %arg18[%213, %c0_85] : memref<8x32xf32, #tpu.memory_space<vmem>>, vector<1x32xf32>
    tpu.vector_store %arg18[%213, %c0_85], %212 {strides = array<i32>} : memref<8x32xf32, #tpu.memory_space<vmem>>, vector<1x32xf32>,
    %c3_i32 = arith.constant 3 : i32
    %c7_i32_86 = arith.constant 7 : i32
    %215 = arith.subi %c7_i32_86, %c3_i32 : i32
    %c0_87 = arith.constant 0 : index
    %c0_88 = arith.constant 0 : index
    %216 = vector.load %arg17[%c0_87, %c0_88] : memref<8x64xf32, #tpu.memory_space<vmem>>, vector<8x64xf32>
    %217 = arith.index_cast %c3_i32 : i32 to index
    %c0_89 = arith.constant 0 : index
    %218 = vector.load %arg20[%217, %c0_89] : memref<8x64xf32, #tpu.memory_space<vmem>>, vector<1x64xf32>
    %219 = vector.broadcast %218 : vector<1x64xf32> to vector<8x64xf32>
    %220 = arith.addf %216, %219 : vector<8x64xf32>
    %cst_90 = arith.constant dense<0.000000e+00> : vector<1x64xf32>
    %221 = tpu.matmul %185, %17, %cst_90 {dimension_numbers = #tpu.dot_dimension_numbers<[1], [0], [0], [1], [0, 0, 1, 1], [], []>} : vector<1x64xf32>, vector<64x64xf32>, vector<1x64xf32> -> vector<1x64xf32>
    %222 = vector.broadcast %221 : vector<1x64xf32> to vector<8x64xf32>
    %223 = arith.addf %220, %222 : vector<8x64xf32>
    %224 = math.tanh %223 : vector<8x64xf32>
    %cst_91 = arith.constant dense<0.000000e+00> : vector<8x128xf32>
    %225 = tpu.matmul %224, %18, %cst_91 {dimension_numbers = #tpu.dot_dimension_numbers<[1], [0], [0], [1], [0, 0, 1, 1], [], []>} : vector<8x64xf32>, vector<64x128xf32>, vector<8x128xf32> -> vector<8x128xf32>
    %226 = vector.broadcast %c3_i32 : i32 to vector<8x1xi32>
    %227 = arith.cmpi slt, %0, %226 : vector<8x1xi32>
    %cst_92 = arith.constant -1.000000e+30 : f32
    %228 = vector.shape_cast %227 : vector<8x1xi1> to vector<8x1xi1>
    %229 = vector.broadcast %228 : vector<8x1xi1> to vector<8x128xi1>
    %230 = vector.broadcast %cst_92 : f32 to vector<8x128xf32>
    %231 = arith.select %229, %225, %230 : vector<8x128xi1>, vector<8x128xf32>
    %cst_93 = arith.constant dense<0xFF800000> : vector<128xf32>
    %232 = vector.multi_reduction <maximumf>, %231, %cst_93 [0] : vector<8x128xf32> to vector<128xf32>
    %233 = vector.shape_cast %232 : vector<128xf32> to vector<1x128xf32>
    %234 = vector.broadcast %233 : vector<1x128xf32> to vector<8x128xf32>
    %235 = arith.subf %231, %234 : vector<8x128xf32>
    %236 = math.exp %235 : vector<8x128xf32>
    %237 = arith.extui %227 : vector<8x1xi1> to vector<8x1xi32>
    %238 = arith.sitofp %237 : vector<8x1xi32> to vector<8x1xf32>
    %239 = vector.broadcast %238 : vector<8x1xf32> to vector<8x128xf32>
    %240 = arith.mulf %236, %239 : vector<8x128xf32>
    %cst_94 = arith.constant dense<0.000000e+00> : vector<128xf32>
    %241 = vector.multi_reduction <add>, %240, %cst_94 [0] : vector<8x128xf32> to vector<128xf32>
    %242 = vector.shape_cast %241 : vector<128xf32> to vector<1x128xf32>
    %cst_95 = arith.constant 1.000000e-30 : f32
    %243 = vector.broadcast %cst_95 : f32 to vector<1x128xf32>
    %244 = arith.maximumf %242, %243 : vector<1x128xf32>
    %c0_96 = arith.constant 0 : index
    %c0_97 = arith.constant 0 : index
    %245 = vector.load %arg16[%c0_96, %c0_97] : memref<8x128xf32, #tpu.memory_space<vmem>>, vector<8x128xf32>
    %246 = arith.mulf %240, %245 : vector<8x128xf32>
    %cst_98 = arith.constant dense<0.000000e+00> : vector<128xf32>
    %247 = vector.multi_reduction <add>, %246, %cst_98 [0] : vector<8x128xf32> to vector<128xf32>
    %248 = vector.shape_cast %247 : vector<128xf32> to vector<1x128xf32>
    %249 = arith.divf %248, %244 : vector<1x128xf32>
    %250 = vector.extract_strided_slice %249 {offsets = [0, 0], sizes = [1, 64], strides = [1, 1]} : vector<1x128xf32> to vector<1x64xf32>
    %251 = vector.extract_strided_slice %249 {offsets = [0, 64], sizes = [1, 64], strides = [1, 1]} : vector<1x128xf32> to vector<1x64xf32>
    %252 = arith.index_cast %c3_i32 : i32 to index
    %c0_99 = arith.constant 0 : index
    %253 = vector.load %arg19[%252, %c0_99] : memref<8x256xf32, #tpu.memory_space<vmem>>, vector<1x256xf32>
    %cst_100 = arith.constant dense<0.000000e+00> : vector<1x256xf32>
    %254 = tpu.matmul %250, %15, %cst_100 {dimension_numbers = #tpu.dot_dimension_numbers<[1], [0], [0], [1], [0, 0, 1, 1], [], []>} : vector<1x64xf32>, vector<64x256xf32>, vector<1x256xf32> -> vector<1x256xf32>
    %255 = arith.addf %253, %254 : vector<1x256xf32>
    %256 = arith.negf %255 : vector<1x256xf32>
    %257 = math.exp %256 : vector<1x256xf32>
    %cst_101 = arith.constant 1.000000e+00 : f32
    %258 = vector.broadcast %cst_101 : f32 to vector<1x256xf32>
    %259 = arith.addf %258, %257 : vector<1x256xf32>
    %260 = arith.divf %258, %259 : vector<1x256xf32>
    %261 = math.tanh %255 : vector<1x256xf32>
    %262 = vector.extract_strided_slice %260 {offsets = [0, 0], sizes = [1, 64], strides = [1, 1]} : vector<1x256xf32> to vector<1x64xf32>
    %263 = vector.extract_strided_slice %260 {offsets = [0, 64], sizes = [1, 64], strides = [1, 1]} : vector<1x256xf32> to vector<1x64xf32>
    %264 = vector.extract_strided_slice %260 {offsets = [0, 128], sizes = [1, 64], strides = [1, 1]} : vector<1x256xf32> to vector<1x64xf32>
    %265 = vector.extract_strided_slice %261 {offsets = [0, 192], sizes = [1, 64], strides = [1, 1]} : vector<1x256xf32> to vector<1x64xf32>
    %266 = arith.mulf %263, %251 : vector<1x64xf32>
    %267 = arith.mulf %262, %265 : vector<1x64xf32>
    %268 = arith.addf %266, %267 : vector<1x64xf32>
    %269 = math.tanh %268 : vector<1x64xf32>
    %270 = arith.mulf %264, %269 : vector<1x64xf32>
    %271 = tpu.concatenate %270, %268 in 1 : vector<1x64xf32>, vector<1x64xf32> -> vector<1x128xf32>
    %272 = arith.index_cast %c3_i32 : i32 to index
    %c0_102 = arith.constant 0 : index
    %273 = vector.load %arg16[%272, %c0_102] : memref<8x128xf32, #tpu.memory_space<vmem>>, vector<1x128xf32>
    tpu.vector_store %arg16[%272, %c0_102], %271 {strides = array<i32>} : memref<8x128xf32, #tpu.memory_space<vmem>>, vector<1x128xf32>,
    %cst_103 = arith.constant dense<0.000000e+00> : vector<1x64xf32>
    %274 = tpu.matmul %270, %16, %cst_103 {dimension_numbers = #tpu.dot_dimension_numbers<[1], [0], [0], [1], [0, 0, 1, 1], [], []>} : vector<1x64xf32>, vector<64x64xf32>, vector<1x64xf32> -> vector<1x64xf32>
    %275 = arith.index_cast %c3_i32 : i32 to index
    %c0_104 = arith.constant 0 : index
    %276 = vector.load %arg17[%275, %c0_104] : memref<8x64xf32, #tpu.memory_space<vmem>>, vector<1x64xf32>
    tpu.vector_store %arg17[%275, %c0_104], %274 {strides = array<i32>} : memref<8x64xf32, #tpu.memory_space<vmem>>, vector<1x64xf32>,
    %277 = vector.extract_strided_slice %270 {offsets = [0, 32], sizes = [1, 32], strides = [1, 1]} : vector<1x64xf32> to vector<1x32xf32>
    %278 = arith.index_cast %215 : i32 to index
    %c0_105 = arith.constant 0 : index
    %279 = vector.load %arg18[%278, %c0_105] : memref<8x32xf32, #tpu.memory_space<vmem>>, vector<1x32xf32>
    tpu.vector_store %arg18[%278, %c0_105], %277 {strides = array<i32>} : memref<8x32xf32, #tpu.memory_space<vmem>>, vector<1x32xf32>,
    %c4_i32 = arith.constant 4 : i32
    %c7_i32_106 = arith.constant 7 : i32
    %280 = arith.subi %c7_i32_106, %c4_i32 : i32
    %c0_107 = arith.constant 0 : index
    %c0_108 = arith.constant 0 : index
    %281 = vector.load %arg17[%c0_107, %c0_108] : memref<8x64xf32, #tpu.memory_space<vmem>>, vector<8x64xf32>
    %282 = arith.index_cast %c4_i32 : i32 to index
    %c0_109 = arith.constant 0 : index
    %283 = vector.load %arg20[%282, %c0_109] : memref<8x64xf32, #tpu.memory_space<vmem>>, vector<1x64xf32>
    %284 = vector.broadcast %283 : vector<1x64xf32> to vector<8x64xf32>
    %285 = arith.addf %281, %284 : vector<8x64xf32>
    %cst_110 = arith.constant dense<0.000000e+00> : vector<1x64xf32>
    %286 = tpu.matmul %250, %17, %cst_110 {dimension_numbers = #tpu.dot_dimension_numbers<[1], [0], [0], [1], [0, 0, 1, 1], [], []>} : vector<1x64xf32>, vector<64x64xf32>, vector<1x64xf32> -> vector<1x64xf32>
    %287 = vector.broadcast %286 : vector<1x64xf32> to vector<8x64xf32>
    %288 = arith.addf %285, %287 : vector<8x64xf32>
    %289 = math.tanh %288 : vector<8x64xf32>
    %cst_111 = arith.constant dense<0.000000e+00> : vector<8x128xf32>
    %290 = tpu.matmul %289, %18, %cst_111 {dimension_numbers = #tpu.dot_dimension_numbers<[1], [0], [0], [1], [0, 0, 1, 1], [], []>} : vector<8x64xf32>, vector<64x128xf32>, vector<8x128xf32> -> vector<8x128xf32>
    %291 = vector.broadcast %c4_i32 : i32 to vector<8x1xi32>
    %292 = arith.cmpi slt, %0, %291 : vector<8x1xi32>
    %cst_112 = arith.constant -1.000000e+30 : f32
    %293 = vector.shape_cast %292 : vector<8x1xi1> to vector<8x1xi1>
    %294 = vector.broadcast %293 : vector<8x1xi1> to vector<8x128xi1>
    %295 = vector.broadcast %cst_112 : f32 to vector<8x128xf32>
    %296 = arith.select %294, %290, %295 : vector<8x128xi1>, vector<8x128xf32>
    %cst_113 = arith.constant dense<0xFF800000> : vector<128xf32>
    %297 = vector.multi_reduction <maximumf>, %296, %cst_113 [0] : vector<8x128xf32> to vector<128xf32>
    %298 = vector.shape_cast %297 : vector<128xf32> to vector<1x128xf32>
    %299 = vector.broadcast %298 : vector<1x128xf32> to vector<8x128xf32>
    %300 = arith.subf %296, %299 : vector<8x128xf32>
    %301 = math.exp %300 : vector<8x128xf32>
    %302 = arith.extui %292 : vector<8x1xi1> to vector<8x1xi32>
    %303 = arith.sitofp %302 : vector<8x1xi32> to vector<8x1xf32>
    %304 = vector.broadcast %303 : vector<8x1xf32> to vector<8x128xf32>
    %305 = arith.mulf %301, %304 : vector<8x128xf32>
    %cst_114 = arith.constant dense<0.000000e+00> : vector<128xf32>
    %306 = vector.multi_reduction <add>, %305, %cst_114 [0] : vector<8x128xf32> to vector<128xf32>
    %307 = vector.shape_cast %306 : vector<128xf32> to vector<1x128xf32>
    %cst_115 = arith.constant 1.000000e-30 : f32
    %308 = vector.broadcast %cst_115 : f32 to vector<1x128xf32>
    %309 = arith.maximumf %307, %308 : vector<1x128xf32>
    %c0_116 = arith.constant 0 : index
    %c0_117 = arith.constant 0 : index
    %310 = vector.load %arg16[%c0_116, %c0_117] : memref<8x128xf32, #tpu.memory_space<vmem>>, vector<8x128xf32>
    %311 = arith.mulf %305, %310 : vector<8x128xf32>
    %cst_118 = arith.constant dense<0.000000e+00> : vector<128xf32>
    %312 = vector.multi_reduction <add>, %311, %cst_118 [0] : vector<8x128xf32> to vector<128xf32>
    %313 = vector.shape_cast %312 : vector<128xf32> to vector<1x128xf32>
    %314 = arith.divf %313, %309 : vector<1x128xf32>
    %315 = vector.extract_strided_slice %314 {offsets = [0, 0], sizes = [1, 64], strides = [1, 1]} : vector<1x128xf32> to vector<1x64xf32>
    %316 = vector.extract_strided_slice %314 {offsets = [0, 64], sizes = [1, 64], strides = [1, 1]} : vector<1x128xf32> to vector<1x64xf32>
    %317 = arith.index_cast %c4_i32 : i32 to index
    %c0_119 = arith.constant 0 : index
    %318 = vector.load %arg19[%317, %c0_119] : memref<8x256xf32, #tpu.memory_space<vmem>>, vector<1x256xf32>
    %cst_120 = arith.constant dense<0.000000e+00> : vector<1x256xf32>
    %319 = tpu.matmul %315, %15, %cst_120 {dimension_numbers = #tpu.dot_dimension_numbers<[1], [0], [0], [1], [0, 0, 1, 1], [], []>} : vector<1x64xf32>, vector<64x256xf32>, vector<1x256xf32> -> vector<1x256xf32>
    %320 = arith.addf %318, %319 : vector<1x256xf32>
    %321 = arith.negf %320 : vector<1x256xf32>
    %322 = math.exp %321 : vector<1x256xf32>
    %cst_121 = arith.constant 1.000000e+00 : f32
    %323 = vector.broadcast %cst_121 : f32 to vector<1x256xf32>
    %324 = arith.addf %323, %322 : vector<1x256xf32>
    %325 = arith.divf %323, %324 : vector<1x256xf32>
    %326 = math.tanh %320 : vector<1x256xf32>
    %327 = vector.extract_strided_slice %325 {offsets = [0, 0], sizes = [1, 64], strides = [1, 1]} : vector<1x256xf32> to vector<1x64xf32>
    %328 = vector.extract_strided_slice %325 {offsets = [0, 64], sizes = [1, 64], strides = [1, 1]} : vector<1x256xf32> to vector<1x64xf32>
    %329 = vector.extract_strided_slice %325 {offsets = [0, 128], sizes = [1, 64], strides = [1, 1]} : vector<1x256xf32> to vector<1x64xf32>
    %330 = vector.extract_strided_slice %326 {offsets = [0, 192], sizes = [1, 64], strides = [1, 1]} : vector<1x256xf32> to vector<1x64xf32>
    %331 = arith.mulf %328, %316 : vector<1x64xf32>
    %332 = arith.mulf %327, %330 : vector<1x64xf32>
    %333 = arith.addf %331, %332 : vector<1x64xf32>
    %334 = math.tanh %333 : vector<1x64xf32>
    %335 = arith.mulf %329, %334 : vector<1x64xf32>
    %336 = tpu.concatenate %335, %333 in 1 : vector<1x64xf32>, vector<1x64xf32> -> vector<1x128xf32>
    %337 = arith.index_cast %c4_i32 : i32 to index
    %c0_122 = arith.constant 0 : index
    %338 = vector.load %arg16[%337, %c0_122] : memref<8x128xf32, #tpu.memory_space<vmem>>, vector<1x128xf32>
    tpu.vector_store %arg16[%337, %c0_122], %336 {strides = array<i32>} : memref<8x128xf32, #tpu.memory_space<vmem>>, vector<1x128xf32>,
    %cst_123 = arith.constant dense<0.000000e+00> : vector<1x64xf32>
    %339 = tpu.matmul %335, %16, %cst_123 {dimension_numbers = #tpu.dot_dimension_numbers<[1], [0], [0], [1], [0, 0, 1, 1], [], []>} : vector<1x64xf32>, vector<64x64xf32>, vector<1x64xf32> -> vector<1x64xf32>
    %340 = arith.index_cast %c4_i32 : i32 to index
    %c0_124 = arith.constant 0 : index
    %341 = vector.load %arg17[%340, %c0_124] : memref<8x64xf32, #tpu.memory_space<vmem>>, vector<1x64xf32>
    tpu.vector_store %arg17[%340, %c0_124], %339 {strides = array<i32>} : memref<8x64xf32, #tpu.memory_space<vmem>>, vector<1x64xf32>,
    %342 = vector.extract_strided_slice %335 {offsets = [0, 32], sizes = [1, 32], strides = [1, 1]} : vector<1x64xf32> to vector<1x32xf32>
    %343 = arith.index_cast %280 : i32 to index
    %c0_125 = arith.constant 0 : index
    %344 = vector.load %arg18[%343, %c0_125] : memref<8x32xf32, #tpu.memory_space<vmem>>, vector<1x32xf32>
    tpu.vector_store %arg18[%343, %c0_125], %342 {strides = array<i32>} : memref<8x32xf32, #tpu.memory_space<vmem>>, vector<1x32xf32>,
    %c5_i32 = arith.constant 5 : i32
    %c7_i32_126 = arith.constant 7 : i32
    %345 = arith.subi %c7_i32_126, %c5_i32 : i32
    %c0_127 = arith.constant 0 : index
    %c0_128 = arith.constant 0 : index
    %346 = vector.load %arg17[%c0_127, %c0_128] : memref<8x64xf32, #tpu.memory_space<vmem>>, vector<8x64xf32>
    %347 = arith.index_cast %c5_i32 : i32 to index
    %c0_129 = arith.constant 0 : index
    %348 = vector.load %arg20[%347, %c0_129] : memref<8x64xf32, #tpu.memory_space<vmem>>, vector<1x64xf32>
    %349 = vector.broadcast %348 : vector<1x64xf32> to vector<8x64xf32>
    %350 = arith.addf %346, %349 : vector<8x64xf32>
    %cst_130 = arith.constant dense<0.000000e+00> : vector<1x64xf32>
    %351 = tpu.matmul %315, %17, %cst_130 {dimension_numbers = #tpu.dot_dimension_numbers<[1], [0], [0], [1], [0, 0, 1, 1], [], []>} : vector<1x64xf32>, vector<64x64xf32>, vector<1x64xf32> -> vector<1x64xf32>
    %352 = vector.broadcast %351 : vector<1x64xf32> to vector<8x64xf32>
    %353 = arith.addf %350, %352 : vector<8x64xf32>
    %354 = math.tanh %353 : vector<8x64xf32>
    %cst_131 = arith.constant dense<0.000000e+00> : vector<8x128xf32>
    %355 = tpu.matmul %354, %18, %cst_131 {dimension_numbers = #tpu.dot_dimension_numbers<[1], [0], [0], [1], [0, 0, 1, 1], [], []>} : vector<8x64xf32>, vector<64x128xf32>, vector<8x128xf32> -> vector<8x128xf32>
    %356 = vector.broadcast %c5_i32 : i32 to vector<8x1xi32>
    %357 = arith.cmpi slt, %0, %356 : vector<8x1xi32>
    %cst_132 = arith.constant -1.000000e+30 : f32
    %358 = vector.shape_cast %357 : vector<8x1xi1> to vector<8x1xi1>
    %359 = vector.broadcast %358 : vector<8x1xi1> to vector<8x128xi1>
    %360 = vector.broadcast %cst_132 : f32 to vector<8x128xf32>
    %361 = arith.select %359, %355, %360 : vector<8x128xi1>, vector<8x128xf32>
    %cst_133 = arith.constant dense<0xFF800000> : vector<128xf32>
    %362 = vector.multi_reduction <maximumf>, %361, %cst_133 [0] : vector<8x128xf32> to vector<128xf32>
    %363 = vector.shape_cast %362 : vector<128xf32> to vector<1x128xf32>
    %364 = vector.broadcast %363 : vector<1x128xf32> to vector<8x128xf32>
    %365 = arith.subf %361, %364 : vector<8x128xf32>
    %366 = math.exp %365 : vector<8x128xf32>
    %367 = arith.extui %357 : vector<8x1xi1> to vector<8x1xi32>
    %368 = arith.sitofp %367 : vector<8x1xi32> to vector<8x1xf32>
    %369 = vector.broadcast %368 : vector<8x1xf32> to vector<8x128xf32>
    %370 = arith.mulf %366, %369 : vector<8x128xf32>
    %cst_134 = arith.constant dense<0.000000e+00> : vector<128xf32>
    %371 = vector.multi_reduction <add>, %370, %cst_134 [0] : vector<8x128xf32> to vector<128xf32>
    %372 = vector.shape_cast %371 : vector<128xf32> to vector<1x128xf32>
    %cst_135 = arith.constant 1.000000e-30 : f32
    %373 = vector.broadcast %cst_135 : f32 to vector<1x128xf32>
    %374 = arith.maximumf %372, %373 : vector<1x128xf32>
    %c0_136 = arith.constant 0 : index
    %c0_137 = arith.constant 0 : index
    %375 = vector.load %arg16[%c0_136, %c0_137] : memref<8x128xf32, #tpu.memory_space<vmem>>, vector<8x128xf32>
    %376 = arith.mulf %370, %375 : vector<8x128xf32>
    %cst_138 = arith.constant dense<0.000000e+00> : vector<128xf32>
    %377 = vector.multi_reduction <add>, %376, %cst_138 [0] : vector<8x128xf32> to vector<128xf32>
    %378 = vector.shape_cast %377 : vector<128xf32> to vector<1x128xf32>
    %379 = arith.divf %378, %374 : vector<1x128xf32>
    %380 = vector.extract_strided_slice %379 {offsets = [0, 0], sizes = [1, 64], strides = [1, 1]} : vector<1x128xf32> to vector<1x64xf32>
    %381 = vector.extract_strided_slice %379 {offsets = [0, 64], sizes = [1, 64], strides = [1, 1]} : vector<1x128xf32> to vector<1x64xf32>
    %382 = arith.index_cast %c5_i32 : i32 to index
    %c0_139 = arith.constant 0 : index
    %383 = vector.load %arg19[%382, %c0_139] : memref<8x256xf32, #tpu.memory_space<vmem>>, vector<1x256xf32>
    %cst_140 = arith.constant dense<0.000000e+00> : vector<1x256xf32>
    %384 = tpu.matmul %380, %15, %cst_140 {dimension_numbers = #tpu.dot_dimension_numbers<[1], [0], [0], [1], [0, 0, 1, 1], [], []>} : vector<1x64xf32>, vector<64x256xf32>, vector<1x256xf32> -> vector<1x256xf32>
    %385 = arith.addf %383, %384 : vector<1x256xf32>
    %386 = arith.negf %385 : vector<1x256xf32>
    %387 = math.exp %386 : vector<1x256xf32>
    %cst_141 = arith.constant 1.000000e+00 : f32
    %388 = vector.broadcast %cst_141 : f32 to vector<1x256xf32>
    %389 = arith.addf %388, %387 : vector<1x256xf32>
    %390 = arith.divf %388, %389 : vector<1x256xf32>
    %391 = math.tanh %385 : vector<1x256xf32>
    %392 = vector.extract_strided_slice %390 {offsets = [0, 0], sizes = [1, 64], strides = [1, 1]} : vector<1x256xf32> to vector<1x64xf32>
    %393 = vector.extract_strided_slice %390 {offsets = [0, 64], sizes = [1, 64], strides = [1, 1]} : vector<1x256xf32> to vector<1x64xf32>
    %394 = vector.extract_strided_slice %390 {offsets = [0, 128], sizes = [1, 64], strides = [1, 1]} : vector<1x256xf32> to vector<1x64xf32>
    %395 = vector.extract_strided_slice %391 {offsets = [0, 192], sizes = [1, 64], strides = [1, 1]} : vector<1x256xf32> to vector<1x64xf32>
    %396 = arith.mulf %393, %381 : vector<1x64xf32>
    %397 = arith.mulf %392, %395 : vector<1x64xf32>
    %398 = arith.addf %396, %397 : vector<1x64xf32>
    %399 = math.tanh %398 : vector<1x64xf32>
    %400 = arith.mulf %394, %399 : vector<1x64xf32>
    %401 = tpu.concatenate %400, %398 in 1 : vector<1x64xf32>, vector<1x64xf32> -> vector<1x128xf32>
    %402 = arith.index_cast %c5_i32 : i32 to index
    %c0_142 = arith.constant 0 : index
    %403 = vector.load %arg16[%402, %c0_142] : memref<8x128xf32, #tpu.memory_space<vmem>>, vector<1x128xf32>
    tpu.vector_store %arg16[%402, %c0_142], %401 {strides = array<i32>} : memref<8x128xf32, #tpu.memory_space<vmem>>, vector<1x128xf32>,
    %cst_143 = arith.constant dense<0.000000e+00> : vector<1x64xf32>
    %404 = tpu.matmul %400, %16, %cst_143 {dimension_numbers = #tpu.dot_dimension_numbers<[1], [0], [0], [1], [0, 0, 1, 1], [], []>} : vector<1x64xf32>, vector<64x64xf32>, vector<1x64xf32> -> vector<1x64xf32>
    %405 = arith.index_cast %c5_i32 : i32 to index
    %c0_144 = arith.constant 0 : index
    %406 = vector.load %arg17[%405, %c0_144] : memref<8x64xf32, #tpu.memory_space<vmem>>, vector<1x64xf32>
    tpu.vector_store %arg17[%405, %c0_144], %404 {strides = array<i32>} : memref<8x64xf32, #tpu.memory_space<vmem>>, vector<1x64xf32>,
    %407 = vector.extract_strided_slice %400 {offsets = [0, 32], sizes = [1, 32], strides = [1, 1]} : vector<1x64xf32> to vector<1x32xf32>
    %408 = arith.index_cast %345 : i32 to index
    %c0_145 = arith.constant 0 : index
    %409 = vector.load %arg18[%408, %c0_145] : memref<8x32xf32, #tpu.memory_space<vmem>>, vector<1x32xf32>
    tpu.vector_store %arg18[%408, %c0_145], %407 {strides = array<i32>} : memref<8x32xf32, #tpu.memory_space<vmem>>, vector<1x32xf32>,
    %c6_i32 = arith.constant 6 : i32
    %c7_i32_146 = arith.constant 7 : i32
    %410 = arith.subi %c7_i32_146, %c6_i32 : i32
    %c0_147 = arith.constant 0 : index
    %c0_148 = arith.constant 0 : index
    %411 = vector.load %arg17[%c0_147, %c0_148] : memref<8x64xf32, #tpu.memory_space<vmem>>, vector<8x64xf32>
    %412 = arith.index_cast %c6_i32 : i32 to index
    %c0_149 = arith.constant 0 : index
    %413 = vector.load %arg20[%412, %c0_149] : memref<8x64xf32, #tpu.memory_space<vmem>>, vector<1x64xf32>
    %414 = vector.broadcast %413 : vector<1x64xf32> to vector<8x64xf32>
    %415 = arith.addf %411, %414 : vector<8x64xf32>
    %cst_150 = arith.constant dense<0.000000e+00> : vector<1x64xf32>
    %416 = tpu.matmul %380, %17, %cst_150 {dimension_numbers = #tpu.dot_dimension_numbers<[1], [0], [0], [1], [0, 0, 1, 1], [], []>} : vector<1x64xf32>, vector<64x64xf32>, vector<1x64xf32> -> vector<1x64xf32>
    %417 = vector.broadcast %416 : vector<1x64xf32> to vector<8x64xf32>
    %418 = arith.addf %415, %417 : vector<8x64xf32>
    %419 = math.tanh %418 : vector<8x64xf32>
    %cst_151 = arith.constant dense<0.000000e+00> : vector<8x128xf32>
    %420 = tpu.matmul %419, %18, %cst_151 {dimension_numbers = #tpu.dot_dimension_numbers<[1], [0], [0], [1], [0, 0, 1, 1], [], []>} : vector<8x64xf32>, vector<64x128xf32>, vector<8x128xf32> -> vector<8x128xf32>
    %421 = vector.broadcast %c6_i32 : i32 to vector<8x1xi32>
    %422 = arith.cmpi slt, %0, %421 : vector<8x1xi32>
    %cst_152 = arith.constant -1.000000e+30 : f32
    %423 = vector.shape_cast %422 : vector<8x1xi1> to vector<8x1xi1>
    %424 = vector.broadcast %423 : vector<8x1xi1> to vector<8x128xi1>
    %425 = vector.broadcast %cst_152 : f32 to vector<8x128xf32>
    %426 = arith.select %424, %420, %425 : vector<8x128xi1>, vector<8x128xf32>
    %cst_153 = arith.constant dense<0xFF800000> : vector<128xf32>
    %427 = vector.multi_reduction <maximumf>, %426, %cst_153 [0] : vector<8x128xf32> to vector<128xf32>
    %428 = vector.shape_cast %427 : vector<128xf32> to vector<1x128xf32>
    %429 = vector.broadcast %428 : vector<1x128xf32> to vector<8x128xf32>
    %430 = arith.subf %426, %429 : vector<8x128xf32>
    %431 = math.exp %430 : vector<8x128xf32>
    %432 = arith.extui %422 : vector<8x1xi1> to vector<8x1xi32>
    %433 = arith.sitofp %432 : vector<8x1xi32> to vector<8x1xf32>
    %434 = vector.broadcast %433 : vector<8x1xf32> to vector<8x128xf32>
    %435 = arith.mulf %431, %434 : vector<8x128xf32>
    %cst_154 = arith.constant dense<0.000000e+00> : vector<128xf32>
    %436 = vector.multi_reduction <add>, %435, %cst_154 [0] : vector<8x128xf32> to vector<128xf32>
    %437 = vector.shape_cast %436 : vector<128xf32> to vector<1x128xf32>
    %cst_155 = arith.constant 1.000000e-30 : f32
    %438 = vector.broadcast %cst_155 : f32 to vector<1x128xf32>
    %439 = arith.maximumf %437, %438 : vector<1x128xf32>
    %c0_156 = arith.constant 0 : index
    %c0_157 = arith.constant 0 : index
    %440 = vector.load %arg16[%c0_156, %c0_157] : memref<8x128xf32, #tpu.memory_space<vmem>>, vector<8x128xf32>
    %441 = arith.mulf %435, %440 : vector<8x128xf32>
    %cst_158 = arith.constant dense<0.000000e+00> : vector<128xf32>
    %442 = vector.multi_reduction <add>, %441, %cst_158 [0] : vector<8x128xf32> to vector<128xf32>
    %443 = vector.shape_cast %442 : vector<128xf32> to vector<1x128xf32>
    %444 = arith.divf %443, %439 : vector<1x128xf32>
    %445 = vector.extract_strided_slice %444 {offsets = [0, 0], sizes = [1, 64], strides = [1, 1]} : vector<1x128xf32> to vector<1x64xf32>
    %446 = vector.extract_strided_slice %444 {offsets = [0, 64], sizes = [1, 64], strides = [1, 1]} : vector<1x128xf32> to vector<1x64xf32>
    %447 = arith.index_cast %c6_i32 : i32 to index
    %c0_159 = arith.constant 0 : index
    %448 = vector.load %arg19[%447, %c0_159] : memref<8x256xf32, #tpu.memory_space<vmem>>, vector<1x256xf32>
    %cst_160 = arith.constant dense<0.000000e+00> : vector<1x256xf32>
    %449 = tpu.matmul %445, %15, %cst_160 {dimension_numbers = #tpu.dot_dimension_numbers<[1], [0], [0], [1], [0, 0, 1, 1], [], []>} : vector<1x64xf32>, vector<64x256xf32>, vector<1x256xf32> -> vector<1x256xf32>
    %450 = arith.addf %448, %449 : vector<1x256xf32>
    %451 = arith.negf %450 : vector<1x256xf32>
    %452 = math.exp %451 : vector<1x256xf32>
    %cst_161 = arith.constant 1.000000e+00 : f32
    %453 = vector.broadcast %cst_161 : f32 to vector<1x256xf32>
    %454 = arith.addf %453, %452 : vector<1x256xf32>
    %455 = arith.divf %453, %454 : vector<1x256xf32>
    %456 = math.tanh %450 : vector<1x256xf32>
    %457 = vector.extract_strided_slice %455 {offsets = [0, 0], sizes = [1, 64], strides = [1, 1]} : vector<1x256xf32> to vector<1x64xf32>
    %458 = vector.extract_strided_slice %455 {offsets = [0, 64], sizes = [1, 64], strides = [1, 1]} : vector<1x256xf32> to vector<1x64xf32>
    %459 = vector.extract_strided_slice %455 {offsets = [0, 128], sizes = [1, 64], strides = [1, 1]} : vector<1x256xf32> to vector<1x64xf32>
    %460 = vector.extract_strided_slice %456 {offsets = [0, 192], sizes = [1, 64], strides = [1, 1]} : vector<1x256xf32> to vector<1x64xf32>
    %461 = arith.mulf %458, %446 : vector<1x64xf32>
    %462 = arith.mulf %457, %460 : vector<1x64xf32>
    %463 = arith.addf %461, %462 : vector<1x64xf32>
    %464 = math.tanh %463 : vector<1x64xf32>
    %465 = arith.mulf %459, %464 : vector<1x64xf32>
    %466 = tpu.concatenate %465, %463 in 1 : vector<1x64xf32>, vector<1x64xf32> -> vector<1x128xf32>
    %467 = arith.index_cast %c6_i32 : i32 to index
    %c0_162 = arith.constant 0 : index
    %468 = vector.load %arg16[%467, %c0_162] : memref<8x128xf32, #tpu.memory_space<vmem>>, vector<1x128xf32>
    tpu.vector_store %arg16[%467, %c0_162], %466 {strides = array<i32>} : memref<8x128xf32, #tpu.memory_space<vmem>>, vector<1x128xf32>,
    %cst_163 = arith.constant dense<0.000000e+00> : vector<1x64xf32>
    %469 = tpu.matmul %465, %16, %cst_163 {dimension_numbers = #tpu.dot_dimension_numbers<[1], [0], [0], [1], [0, 0, 1, 1], [], []>} : vector<1x64xf32>, vector<64x64xf32>, vector<1x64xf32> -> vector<1x64xf32>
    %470 = arith.index_cast %c6_i32 : i32 to index
    %c0_164 = arith.constant 0 : index
    %471 = vector.load %arg17[%470, %c0_164] : memref<8x64xf32, #tpu.memory_space<vmem>>, vector<1x64xf32>
    tpu.vector_store %arg17[%470, %c0_164], %469 {strides = array<i32>} : memref<8x64xf32, #tpu.memory_space<vmem>>, vector<1x64xf32>,
    %472 = vector.extract_strided_slice %465 {offsets = [0, 32], sizes = [1, 32], strides = [1, 1]} : vector<1x64xf32> to vector<1x32xf32>
    %473 = arith.index_cast %410 : i32 to index
    %c0_165 = arith.constant 0 : index
    %474 = vector.load %arg18[%473, %c0_165] : memref<8x32xf32, #tpu.memory_space<vmem>>, vector<1x32xf32>
    tpu.vector_store %arg18[%473, %c0_165], %472 {strides = array<i32>} : memref<8x32xf32, #tpu.memory_space<vmem>>, vector<1x32xf32>,
    %c7_i32_166 = arith.constant 7 : i32
    %c7_i32_167 = arith.constant 7 : i32
    %475 = arith.subi %c7_i32_167, %c7_i32_166 : i32
    %c0_168 = arith.constant 0 : index
    %c0_169 = arith.constant 0 : index
    %476 = vector.load %arg17[%c0_168, %c0_169] : memref<8x64xf32, #tpu.memory_space<vmem>>, vector<8x64xf32>
    %477 = arith.index_cast %c7_i32_166 : i32 to index
    %c0_170 = arith.constant 0 : index
    %478 = vector.load %arg20[%477, %c0_170] : memref<8x64xf32, #tpu.memory_space<vmem>>, vector<1x64xf32>
    %479 = vector.broadcast %478 : vector<1x64xf32> to vector<8x64xf32>
    %480 = arith.addf %476, %479 : vector<8x64xf32>
    %cst_171 = arith.constant dense<0.000000e+00> : vector<1x64xf32>
    %481 = tpu.matmul %445, %17, %cst_171 {dimension_numbers = #tpu.dot_dimension_numbers<[1], [0], [0], [1], [0, 0, 1, 1], [], []>} : vector<1x64xf32>, vector<64x64xf32>, vector<1x64xf32> -> vector<1x64xf32>
    %482 = vector.broadcast %481 : vector<1x64xf32> to vector<8x64xf32>
    %483 = arith.addf %480, %482 : vector<8x64xf32>
    %484 = math.tanh %483 : vector<8x64xf32>
    %cst_172 = arith.constant dense<0.000000e+00> : vector<8x128xf32>
    %485 = tpu.matmul %484, %18, %cst_172 {dimension_numbers = #tpu.dot_dimension_numbers<[1], [0], [0], [1], [0, 0, 1, 1], [], []>} : vector<8x64xf32>, vector<64x128xf32>, vector<8x128xf32> -> vector<8x128xf32>
    %486 = vector.broadcast %c7_i32_166 : i32 to vector<8x1xi32>
    %487 = arith.cmpi slt, %0, %486 : vector<8x1xi32>
    %cst_173 = arith.constant -1.000000e+30 : f32
    %488 = vector.shape_cast %487 : vector<8x1xi1> to vector<8x1xi1>
    %489 = vector.broadcast %488 : vector<8x1xi1> to vector<8x128xi1>
    %490 = vector.broadcast %cst_173 : f32 to vector<8x128xf32>
    %491 = arith.select %489, %485, %490 : vector<8x128xi1>, vector<8x128xf32>
    %cst_174 = arith.constant dense<0xFF800000> : vector<128xf32>
    %492 = vector.multi_reduction <maximumf>, %491, %cst_174 [0] : vector<8x128xf32> to vector<128xf32>
    %493 = vector.shape_cast %492 : vector<128xf32> to vector<1x128xf32>
    %494 = vector.broadcast %493 : vector<1x128xf32> to vector<8x128xf32>
    %495 = arith.subf %491, %494 : vector<8x128xf32>
    %496 = math.exp %495 : vector<8x128xf32>
    %497 = arith.extui %487 : vector<8x1xi1> to vector<8x1xi32>
    %498 = arith.sitofp %497 : vector<8x1xi32> to vector<8x1xf32>
    %499 = vector.broadcast %498 : vector<8x1xf32> to vector<8x128xf32>
    %500 = arith.mulf %496, %499 : vector<8x128xf32>
    %cst_175 = arith.constant dense<0.000000e+00> : vector<128xf32>
    %501 = vector.multi_reduction <add>, %500, %cst_175 [0] : vector<8x128xf32> to vector<128xf32>
    %502 = vector.shape_cast %501 : vector<128xf32> to vector<1x128xf32>
    %cst_176 = arith.constant 1.000000e-30 : f32
    %503 = vector.broadcast %cst_176 : f32 to vector<1x128xf32>
    %504 = arith.maximumf %502, %503 : vector<1x128xf32>
    %c0_177 = arith.constant 0 : index
    %c0_178 = arith.constant 0 : index
    %505 = vector.load %arg16[%c0_177, %c0_178] : memref<8x128xf32, #tpu.memory_space<vmem>>, vector<8x128xf32>
    %506 = arith.mulf %500, %505 : vector<8x128xf32>
    %cst_179 = arith.constant dense<0.000000e+00> : vector<128xf32>
    %507 = vector.multi_reduction <add>, %506, %cst_179 [0] : vector<8x128xf32> to vector<128xf32>
    %508 = vector.shape_cast %507 : vector<128xf32> to vector<1x128xf32>
    %509 = arith.divf %508, %504 : vector<1x128xf32>
    %510 = vector.extract_strided_slice %509 {offsets = [0, 0], sizes = [1, 64], strides = [1, 1]} : vector<1x128xf32> to vector<1x64xf32>
    %511 = vector.extract_strided_slice %509 {offsets = [0, 64], sizes = [1, 64], strides = [1, 1]} : vector<1x128xf32> to vector<1x64xf32>
    %512 = arith.index_cast %c7_i32_166 : i32 to index
    %c0_180 = arith.constant 0 : index
    %513 = vector.load %arg19[%512, %c0_180] : memref<8x256xf32, #tpu.memory_space<vmem>>, vector<1x256xf32>
    %cst_181 = arith.constant dense<0.000000e+00> : vector<1x256xf32>
    %514 = tpu.matmul %510, %15, %cst_181 {dimension_numbers = #tpu.dot_dimension_numbers<[1], [0], [0], [1], [0, 0, 1, 1], [], []>} : vector<1x64xf32>, vector<64x256xf32>, vector<1x256xf32> -> vector<1x256xf32>
    %515 = arith.addf %513, %514 : vector<1x256xf32>
    %516 = arith.negf %515 : vector<1x256xf32>
    %517 = math.exp %516 : vector<1x256xf32>
    %cst_182 = arith.constant 1.000000e+00 : f32
    %518 = vector.broadcast %cst_182 : f32 to vector<1x256xf32>
    %519 = arith.addf %518, %517 : vector<1x256xf32>
    %520 = arith.divf %518, %519 : vector<1x256xf32>
    %521 = math.tanh %515 : vector<1x256xf32>
    %522 = vector.extract_strided_slice %520 {offsets = [0, 0], sizes = [1, 64], strides = [1, 1]} : vector<1x256xf32> to vector<1x64xf32>
    %523 = vector.extract_strided_slice %520 {offsets = [0, 64], sizes = [1, 64], strides = [1, 1]} : vector<1x256xf32> to vector<1x64xf32>
    %524 = vector.extract_strided_slice %520 {offsets = [0, 128], sizes = [1, 64], strides = [1, 1]} : vector<1x256xf32> to vector<1x64xf32>
    %525 = vector.extract_strided_slice %521 {offsets = [0, 192], sizes = [1, 64], strides = [1, 1]} : vector<1x256xf32> to vector<1x64xf32>
    %526 = arith.mulf %523, %511 : vector<1x64xf32>
    %527 = arith.mulf %522, %525 : vector<1x64xf32>
    %528 = arith.addf %526, %527 : vector<1x64xf32>
    %529 = math.tanh %528 : vector<1x64xf32>
    %530 = arith.mulf %524, %529 : vector<1x64xf32>
    %531 = tpu.concatenate %530, %528 in 1 : vector<1x64xf32>, vector<1x64xf32> -> vector<1x128xf32>
    %532 = arith.index_cast %c7_i32_166 : i32 to index
    %c0_183 = arith.constant 0 : index
    %533 = vector.load %arg16[%532, %c0_183] : memref<8x128xf32, #tpu.memory_space<vmem>>, vector<1x128xf32>
    tpu.vector_store %arg16[%532, %c0_183], %531 {strides = array<i32>} : memref<8x128xf32, #tpu.memory_space<vmem>>, vector<1x128xf32>,
    %cst_184 = arith.constant dense<0.000000e+00> : vector<1x64xf32>
    %534 = tpu.matmul %530, %16, %cst_184 {dimension_numbers = #tpu.dot_dimension_numbers<[1], [0], [0], [1], [0, 0, 1, 1], [], []>} : vector<1x64xf32>, vector<64x64xf32>, vector<1x64xf32> -> vector<1x64xf32>
    %535 = arith.index_cast %c7_i32_166 : i32 to index
    %c0_185 = arith.constant 0 : index
    %536 = vector.load %arg17[%535, %c0_185] : memref<8x64xf32, #tpu.memory_space<vmem>>, vector<1x64xf32>
    tpu.vector_store %arg17[%535, %c0_185], %534 {strides = array<i32>} : memref<8x64xf32, #tpu.memory_space<vmem>>, vector<1x64xf32>,
    %537 = vector.extract_strided_slice %530 {offsets = [0, 32], sizes = [1, 32], strides = [1, 1]} : vector<1x64xf32> to vector<1x32xf32>
    %538 = arith.index_cast %475 : i32 to index
    %c0_186 = arith.constant 0 : index
    %539 = vector.load %arg18[%538, %c0_186] : memref<8x32xf32, #tpu.memory_space<vmem>>, vector<1x32xf32>
    tpu.vector_store %arg18[%538, %c0_186], %537 {strides = array<i32>} : memref<8x32xf32, #tpu.memory_space<vmem>>, vector<1x32xf32>,
    %c8_i32 = arith.constant 8 : i32
    %c0_187 = arith.constant 0 : index
    %c0_188 = arith.constant 0 : index
    %540 = vector.load %arg16[%c0_187, %c0_188] : memref<8x128xf32, #tpu.memory_space<vmem>>, vector<8x128xf32>
    %541 = vector.extract_strided_slice %540 {offsets = [0, 0], sizes = [8, 32], strides = [1, 1]} : vector<8x128xf32> to vector<8x32xf32>
    %c0_189 = arith.constant 0 : index
    %c0_190 = arith.constant 0 : index
    %542 = vector.load %arg18[%c0_189, %c0_190] : memref<8x32xf32, #tpu.memory_space<vmem>>, vector<8x32xf32>
    %c0_191 = arith.constant 0 : index
    %c0_192 = arith.constant 0 : index
    %543 = vector.load %arg9[%c0_191, %c0_192] : memref<1x64xf32, #tpu.memory_space<vmem>>, vector<1x64xf32>
    %c0_193 = arith.constant 0 : index
    %c0_194 = arith.constant 0 : index
    %544 = vector.load %arg8[%c0_193, %c0_194] : memref<64x64xf32, #tpu.memory_space<vmem>>, vector<64x64xf32>
    %cst_195 = arith.constant dense<0.000000e+00> : vector<1x64xf32>
    %545 = tpu.matmul %543, %544, %cst_195 {dimension_numbers = #tpu.dot_dimension_numbers<[1], [0], [0], [1], [0, 0, 1, 1], [], []>} : vector<1x64xf32>, vector<64x64xf32>, vector<1x64xf32> -> vector<1x64xf32>
    %546 = vector.extract_strided_slice %545 {offsets = [0, 0], sizes = [1, 32], strides = [1, 1]} : vector<1x64xf32> to vector<1x32xf32>
    %547 = vector.extract_strided_slice %545 {offsets = [0, 32], sizes = [1, 32], strides = [1, 1]} : vector<1x64xf32> to vector<1x32xf32>
    %548 = vector.broadcast %546 : vector<1x32xf32> to vector<8x32xf32>
    %549 = arith.mulf %541, %548 : vector<8x32xf32>
    %cst_196 = arith.constant dense<0.000000e+00> : vector<8xf32>
    %550 = vector.multi_reduction <add>, %549, %cst_196 [1] : vector<8x32xf32> to vector<8xf32>
    %551 = vector.shape_cast %550 : vector<8xf32> to vector<8x1xf32>
    %552 = vector.broadcast %547 : vector<1x32xf32> to vector<8x32xf32>
    %553 = arith.mulf %542, %552 : vector<8x32xf32>
    %cst_197 = arith.constant dense<0.000000e+00> : vector<8xf32>
    %554 = vector.multi_reduction <add>, %553, %cst_197 [1] : vector<8x32xf32> to vector<8xf32>
    %555 = vector.shape_cast %554 : vector<8xf32> to vector<8x1xf32>
    %556 = arith.addf %551, %555 : vector<8x1xf32>
    %cst_198 = arith.constant dense<0xFF800000> : vector<1xf32>
    %557 = vector.multi_reduction <maximumf>, %556, %cst_198 [0] : vector<8x1xf32> to vector<1xf32>
    %558 = vector.shape_cast %557 : vector<1xf32> to vector<1x1xf32>
    %559 = vector.broadcast %558 : vector<1x1xf32> to vector<8x1xf32>
    %560 = arith.subf %556, %559 : vector<8x1xf32>
    %561 = math.exp %560 : vector<8x1xf32>
    %cst_199 = arith.constant dense<0.000000e+00> : vector<1xf32>
    %562 = vector.multi_reduction <add>, %561, %cst_199 [0] : vector<8x1xf32> to vector<1xf32>
    %563 = vector.shape_cast %562 : vector<1xf32> to vector<1x1xf32>
    %564 = vector.broadcast %563 : vector<1x1xf32> to vector<8x1xf32>
    %565 = arith.divf %561, %564 : vector<8x1xf32>
    %566 = vector.broadcast %565 : vector<8x1xf32> to vector<8x32xf32>
    %567 = arith.mulf %566, %541 : vector<8x32xf32>
    %cst_200 = arith.constant dense<0.000000e+00> : vector<32xf32>
    %568 = vector.multi_reduction <add>, %567, %cst_200 [0] : vector<8x32xf32> to vector<32xf32>
    %569 = vector.shape_cast %568 : vector<32xf32> to vector<1x32xf32>
    %570 = vector.broadcast %565 : vector<8x1xf32> to vector<8x32xf32>
    %571 = arith.mulf %570, %542 : vector<8x32xf32>
    %cst_201 = arith.constant dense<0.000000e+00> : vector<32xf32>
    %572 = vector.multi_reduction <add>, %571, %cst_201 [0] : vector<8x32xf32> to vector<32xf32>
    %573 = vector.shape_cast %572 : vector<32xf32> to vector<1x32xf32>
    %c0_202 = arith.constant 0 : index
    %c0_203 = arith.constant 0 : index
    %574 = vector.load %arg10[%c0_202, %c0_203] : memref<32x32xf32, #tpu.memory_space<vmem>>, vector<32x32xf32>
    %cst_204 = arith.constant dense<0.000000e+00> : vector<1x32xf32>
    %575 = tpu.matmul %569, %574, %cst_204 {dimension_numbers = #tpu.dot_dimension_numbers<[1], [0], [0], [1], [0, 0, 1, 1], [], []>} : vector<1x32xf32>, vector<32x32xf32>, vector<1x32xf32> -> vector<1x32xf32>
    %c0_205 = arith.constant 0 : index
    %c0_206 = arith.constant 0 : index
    %576 = vector.load %arg11[%c0_205, %c0_206] : memref<32x32xf32, #tpu.memory_space<vmem>>, vector<32x32xf32>
    %cst_207 = arith.constant dense<0.000000e+00> : vector<1x32xf32>
    %577 = tpu.matmul %573, %576, %cst_207 {dimension_numbers = #tpu.dot_dimension_numbers<[1], [0], [0], [1], [0, 0, 1, 1], [], []>} : vector<1x32xf32>, vector<32x32xf32>, vector<1x32xf32> -> vector<1x32xf32>
    %578 = arith.addf %575, %577 : vector<1x32xf32>
    %c0_208 = arith.constant 0 : index
    %c0_209 = arith.constant 0 : index
    %579 = vector.load %arg12[%c0_208, %c0_209] : memref<1x32xf32, #tpu.memory_space<vmem>>, vector<1x32xf32>
    %580 = arith.addf %578, %579 : vector<1x32xf32>
    %cst_210 = arith.constant 0.000000e+00 : f32
    %581 = vector.broadcast %cst_210 : f32 to vector<1x32xf32>
    %582 = arith.maximumf %580, %581 : vector<1x32xf32>
    %c0_211 = arith.constant 0 : index
    %c0_212 = arith.constant 0 : index
    %583 = vector.load %arg13[%c0_211, %c0_212] : memref<32x4xf32, #tpu.memory_space<vmem>>, vector<32x4xf32>
    %cst_213 = arith.constant dense<0.000000e+00> : vector<1x4xf32>
    %584 = tpu.matmul %582, %583, %cst_213 {dimension_numbers = #tpu.dot_dimension_numbers<[1], [0], [0], [1], [0, 0, 1, 1], [], []>} : vector<1x32xf32>, vector<32x4xf32>, vector<1x4xf32> -> vector<1x4xf32>
    %c0_214 = arith.constant 0 : index
    %c0_215 = arith.constant 0 : index
    %585 = vector.load %arg14[%c0_214, %c0_215] : memref<1x4xf32, #tpu.memory_space<vmem>>, vector<1x4xf32>
    %586 = arith.addf %584, %585 : vector<1x4xf32>
    %587 = arith.negf %586 : vector<1x4xf32>
    %588 = math.exp %587 : vector<1x4xf32>
    %cst_216 = arith.constant 1.000000e+00 : f32
    %589 = vector.broadcast %cst_216 : f32 to vector<1x4xf32>
    %590 = arith.addf %589, %588 : vector<1x4xf32>
    %591 = arith.divf %589, %590 : vector<1x4xf32>
    %c0_217 = arith.constant 0 : index
    %c0_218 = arith.constant 0 : index
    %592 = vector.load %arg15[%c0_217, %c0_218] : memref<1x4xf32, #tpu.memory_space<vmem>>, vector<1x4xf32>
    tpu.vector_store %arg15[%c0_217, %c0_218], %591 {strides = array<i32>} : memref<1x4xf32, #tpu.memory_space<vmem>>, vector<1x4xf32>,
    return
  }
}

</mosaic_0001>

<bundles_post_ra>
// kernel: lstmn_document_featurizer.1
= control target key start
LH: loop header
LB: loop body
LE: loop exit
PB: predicated region body
PF: predicated region fallthrough
CT: control target
= control target key end

     0   :  { %v5261_v7 = vmov 0.0   ;;  %v5262_v8 = vmov 0.0|0.0   ;;  %vm54_vm0 = vcmask 523264   ;;  %vm5263_vm1 = vmmov 0   ;;  %s6167_s0 = inlined_call_operand.vmem [shape: f32[8,32], index: 0, kind: input, shape index: {}]   ;;  %s6168_s1 = inlined_call_operand.vmem [shape: f32[32,256], index: 1, kind: input, shape index: {}]   ;;  %s6169_s2 = inlined_call_operand.vmem [shape: f32[1,256], index: 2, kind: input, shape index: {}]   ;;  %s6170_s3 = inlined_call_operand.vmem [shape: f32[64,256], index: 3, kind: input, shape index: {}]   ;;  %s6171_s4 = inlined_call_operand.vmem [shape: f32[64,64], index: 4, kind: input, shape index: {}]   ;;  %s6172_s5 = inlined_call_operand.vmem [shape: f32[32,64], index: 5, kind: input, shape index: {}]   ;;  %s6173_s6 = inlined_call_operand.vmem [shape: f32[64,64], index: 6, kind: input, shape index: {}]   ;;  %s6174_s7 = inlined_call_operand.vmem [shape: f32[64,128], index: 7, kind: input, shape index: {}]   ;;  %s6175_s8 = inlined_call_operand.vmem [shape: f32[64,64], index: 8, kind: input, shape index: {}]   ;;  %s6176_s9 = inlined_call_operand.vmem [shape: f32[1,64], index: 9, kind: input, shape index: {}]   ;;  %s6177_s10 = inlined_call_operand.vmem [shape: f32[32,32], index: 10, kind: input, shape index: {}]   ;;  %s6178_s11 = inlined_call_operand.vmem [shape: f32[32,32], index: 11, kind: input, shape index: {}]   ;;  %s6179_s12 = inlined_call_operand.vmem [shape: f32[1,32], index: 12, kind: input, shape index: {}]   ;;  %s6180_s13 = inlined_call_operand.vmem [shape: f32[32,4], index: 13, kind: input, shape index: {}]   ;;  %s6181_s14 = inlined_call_operand.vmem [shape: f32[1,4], index: 14, kind: input, shape index: {}]   ;;  %s6182_s15 = inlined_call_operand.hbm [shape: f32[1,4], index: 15, kind: output, shape index: {}]  }
   0x1   :  { %v58_v0 = vld [vmem:[%s6168_s1 + $0x8] sm:$0xff]  ;;  %v60_v1 = vld [vmem:[%s6168_s1 + $0x18] sm:$0xff]  ;;  %v57_v2 = vld [vmem:[%s6168_s1] sm:$0xff]  ;;  %145 = vmatprep.mubr.f32.mxu0 %v5261_v7  ;;  %53 = vst [vmem:[#allocation2] sm:$0xff] %v5261_v7  ;;  %4657 = vmatprep.subr.bf16.mxu1 %v5262_v8  ;;  %v5264_v15 = vmov -1e+30  }
   0x2   :  { %v4649_v3 = vpack.c.bf16 %v60_v1, %v58_v0  ;;  %v59_v4 = vld [vmem:[%s6168_s1 + $0x10] sm:$0xff]  ;;  %v62_v5 = vld [vmem:[%s6168_s1 + $0x28] sm:$0xff]  ;;  %v64_v6 = vld [vmem:[%s6168_s1 + $0x38] sm:$0xff]  ;;  %4138 = vmatprep.mubr.msk.f32.mxu1 %vm5263_vm1, %v5261_v7  ;;  %55 = vst.msk [vmem:[#allocation3] sm:$0xff] %vm54_vm0, %v5261_v7  ;;  %v432_v16 = vrot.slane %v5264_v15, 4  ;;  %vm77_vm2 = vcmask 261120  }
   0x3   :  { %v4651_v9 = vpack.c.bf16 %v59_v4, %v57_v2  ;;  %v4653_v10 = vpack.c.bf16 %v64_v6, %v62_v5  ;;  %v61_v11 = vld [vmem:[%s6168_s1 + $0x20] sm:$0xff]  ;;  %v63_v12 = vld [vmem:[%s6168_s1 + $0x30] sm:$0xff]  ;;  %v155_v14 = vld [vmem:[%s6172_s5 + $0x8] sm:$0xff] }
   0x4   :  { %4650 = vmatprep.subr.bf16.mxu0 %v4649_v3  ;;  %v154_v13 = vld [vmem:[%s6172_s5] sm:$0xff]  ;;  %v4655_v17 = vpack.c.bf16 %v63_v12, %v61_v11  ;;  %v156_v19 = vld [vmem:[%s6172_s5 + $0x10] sm:$0xff]  ;;  %v157_v20 = vld [vmem:[%s6172_s5 + $0x18] sm:$0xff]  ;;  %v433_v23 = vmax.f32 %v432_v16, -1e+30 }
   0x5   :  { %4652 = vmatpush1.bf16.msra.mxu0 %v4651_v9  ;;  %v4658_v18 = vpack.c.bf16 %v155_v14, %v154_v13  ;;  %v253_v21 = vld [vmem:[%s6173_s6] sm:$0xff]  ;;  %v254_v22 = vld [vmem:[%s6173_s6 + $0x8] sm:$0xff]  ;;  %v4661_v24 = vpack.c.bf16 %v157_v20, %v156_v19  ;;  %v255_v28 = vld [vmem:[%s6173_s6 + $0x10] sm:$0xff] }
   0x6   :  { %4654 = vmatprep.subr.bf16.mxu0 %v4653_v10  ;;  %v434_v25 = vrot.slane %v433_v23, 2  ;;  %v56_v26 = vld [vmem:[%s6167_s0] sm:$0xff]  ;;  %v5402_v27 = vpack.c.bf16 %v254_v22, %v253_v21  ;;  %v256_v29 = vld [vmem:[%s6173_s6 + $0x18] sm:$0xff] }
   0x7   :  { %4659 = vmatpush3.bf16.msra.mxu1 %v4658_v18  ;;  %v5414_v32 = vpack.c.bf16 %v256_v29, %v255_v28 }
   0x8   :  { %4660 = vmatprep.subr.bf16.mxu1 %v5262_v8  ;;  %v435_v30 = vmax.f32 %v433_v23, %v434_v25 }
   0x9   :  { %4656 = vmatpush1.bf16.msra.mxu0 %v4655_v17 }
   0xa   :  { %4663 = vmatprep.subr.bf16.mxu0 %v5262_v8  ;;  %v436_v31 = vrot.slane %v435_v30, 1 }
   0xb   :  { %4662 = vmatpush3.bf16.msra.mxu1 %v4661_v24 }
   0xc   :  { %3824 = vmatmul.mubr.msk.f32.vlgmr.msra.gmra.mrb[0].mxu0 %vm77_vm2, %v56_v26  ;;  %4675 = vmatprep.subr.bf16.mxu1 %v5262_v8 }
   0xd   :  { %4665 = vmatpush3.bf16.msra.mxu0 %v5402_v27  ;;  %4157 = vmatprep.mubr.msk.f32.mxu0 %vm5263_vm1, %v5261_v7 }
   0xe   :  { %20 = vsyncpa [#allocation8], 0  ;;  %4666 = vmatprep.subr.bf16.mxu0 %v5262_v8  ;;  %4139 = vmatmul.mubr.msk.f32.vlgmr.msra.gmra.mrb[0].mxu1 %vm77_vm2, %v56_v26  ;;  %v257_v33 = vld [vmem:[%s6173_s6 + $0x20] sm:$0xff]  ;;  %v258_v34 = vld [vmem:[%s6173_s6 + $0x28] sm:$0xff]  ;;  %v437_v35 = vmax.f32 %v435_v30, %v436_v31  ;;  %vm657_vm3 = vcmask 516096   ;;  %vm666_vm11 = vcmask 253952  }
   0xf   :  { %4176 = vmatprep.mubr.msk.f32.mxu1 %vm5263_vm1, %v5261_v7  ;;  %v5429_v37 = vpack.c.bf16 %v258_v34, %v257_v33  ;;  %v259_v38 = vld [vmem:[%s6173_s6 + $0x30] sm:$0xff]  ;;  %v260_v39 = vld [vmem:[%s6173_s6 + $0x38] sm:$0xff]  ;;  %v230_v41 = vld [vmem:[%s6170_s3 + $0x8] sm:$0xff]  ;;  %vm3808_vm12 = vcmask 24576  }
  0x10   :  { %v438_v36 = vsub.f32 -1e+30, %v437_v35  ;;  %v232_v42 = vld [vmem:[%s6170_s3 + $0x18] sm:$0xff]  ;;  %v5445_v43 = vpack.c.bf16 %v260_v39, %v259_v38  ;;  %v229_v45 = vld [vmem:[%s6170_s3] sm:$0xff]  ;;  %v231_v46 = vld [vmem:[%s6170_s3 + $0x10] sm:$0xff] }
  0x11   :  { %4668 = vmatpush3.bf16.msra.mxu0 %v5414_v32  ;;  %v5448_v44 = vpack.c.bf16 %v232_v42, %v230_v41  ;;  %v234_v47 = vld [vmem:[%s6170_s3 + $0x28] sm:$0xff]  ;;  %v236_v48 = vld [vmem:[%s6170_s3 + $0x38] sm:$0xff]  ;;  %v5463_v49 = vpack.c.bf16 %v231_v46, %v229_v45  ;;  %v233_v51 = vld [vmem:[%s6170_s3 + $0x20] sm:$0xff] }
  0x12   :  { %4669 = vmatprep.subr.bf16.mxu0 %v5262_v8  ;;  %v439_v40 = vmul.f32 1.442695, %v438_v36  ;;  %v5466_v50 = vpack.c.bf16 %v236_v48, %v234_v47  ;;  %v235_v52 = vld [vmem:[%s6170_s3 + $0x30] sm:$0xff]  ;;  %v238_v53 = vld [vmem:[%s6170_s3 + $0x48] sm:$0xff]  ;;  %v240_v54 = vld [vmem:[%s6170_s3 + $0x58] sm:$0xff]  ;;  %v51_v36 = vlaneseq }
  0x13   :  { %v5482_v55 = vpack.c.bf16 %v235_v52, %v233_v51  ;;  %v5486_v57 = vpack.c.bf16 %v240_v54, %v238_v53  ;;  %v237_v58 = vld [vmem:[%s6170_s3 + $0x40] sm:$0xff]  ;;  %v239_v59 = vld [vmem:[%s6170_s3 + $0x50] sm:$0xff]  ;;  %v242_v60 = vld [vmem:[%s6170_s3 + $0x68] sm:$0xff] }
  0x14   :  { %5117 = vpow2.f32 %v439_v40  ;;  %v244_v61 = vld [vmem:[%s6170_s3 + $0x78] sm:$0xff]  ;;  %v5501_v63 = vpack.c.bf16 %v239_v59, %v237_v58  ;;  %v241_v3 = vld [vmem:[%s6170_s3 + $0x60] sm:$0xff]  ;;  %v243_v4 = vld [vmem:[%s6170_s3 + $0x70] sm:$0xff]  ;;  %v5583_v38 = vshrl.u32 %v51_v36, 7 }
  0x15   :  { %4671 = vmatpush3.bf16.msra.mxu0 %v5429_v37  ;;  %v5504_v2 = vpack.c.bf16 %v244_v61, %v242_v60  ;;  %v5513_v9 = vpack.c.bf16 %v243_v4, %v241_v3  ;;  %v261_v22 = vld [vmem:[%s6174_s7] sm:$0xff]  ;;  %v262_v23 = vld [vmem:[%s6174_s7 + $0x8] sm:$0xff]  ;;  %v263_v24 = vld [vmem:[%s6174_s7 + $0x10] sm:$0xff] }
  0x16   :  { %4672 = vmatprep.subr.bf16.mxu0 %v5262_v8  ;;  %v5552_v25 = vpack.c.bf16 %v262_v23, %v261_v22  ;;  %v264_v26 = vld [vmem:[%s6174_s7 + $0x18] sm:$0xff]  ;;  %v265_v29 = vld [vmem:[%s6174_s7 + $0x20] sm:$0xff]  ;;  %v266_v30 = vld [vmem:[%s6174_s7 + $0x28] sm:$0xff]  ;;  %v5586_v39 = vsub.s32 0, %v5583_v38  ;;  %v73_v41 = vsub.s32 1, %v5583_v38  ;;  %vm824_vm4 = vcmp.lt.s32.totalorder %v5583_v38, 1 }
  0x17   :  { %v5558_v28 = vpack.c.bf16 %v264_v26, %v263_v24  ;;  %v5568_v31 = vpack.c.bf16 %v266_v30, %v265_v29  ;;  %v267_v33 = vld [vmem:[%s6174_s7 + $0x30] sm:$0xff]  ;;  %v268_v34 = vld [vmem:[%s6174_s7 + $0x38] sm:$0xff]  ;;  %v65_v40 = vld [vmem:[%s6169_s2] sm:$0x3]  ;;  %s5266_s2 = smov 64   ;;  %vm1219_vm5 = vcmp.lt.s32.totalorder %v5583_v38, 2 }
  0x18   :  { %4677 = vmatpush3.bf16.msra.mxu1 %v5552_v25  ;;  %v5578_v35 = vpack.c.bf16 %v268_v34, %v267_v33  ;;  %v70_v42 = vrot.slane %v65_v40, %v5586_v39  ;;  %v74_v45 = vrot.slane %v65_v40, %v73_v41  ;;  %v269_v54 = vld [vmem:[#allocation3] sm:$0xff]  ;;  %v245_v26 = vld [vmem:[%s6171_s4] sm:$0xff]  ;;  %v247_v30 = vld [vmem:[%s6171_s4 + $0x10] sm:$0xff]  ;;  %vm1614_vm6 = vcmp.lt.s32.totalorder %v5583_v38, 3 }
  0x19   :  { %4674 = vmatpush3.bf16.msra.mxu0 %v5445_v43  ;;  %4678 = vmatprep.subr.bf16.mxu1 %v5262_v8  ;;  %v246_v29 = vld [vmem:[%s6171_s4 + $0x8] sm:$0xff]  ;;  %v248_v34 = vld [vmem:[%s6171_s4 + $0x18] sm:$0xff]  ;;  %v249_v40 = vld [vmem:[%s6171_s4 + $0x20] sm:$0xff]  ;;  %vm2009_vm7 = vcmp.lt.s32.totalorder %v5583_v38, 4  ;;  %vm2404_vm8 = vcmp.lt.s32.totalorder %v5583_v38, 5  ;;  %vm2799_vm9 = vcmp.lt.s32.totalorder %v5583_v38, 6 }
  0x1a   :  { %4688 = vmatprep.subr.bf16.mxu0 %v5448_v44  ;;  %v5614_v33 = vpack.c.bf16 %v246_v29, %v245_v26  ;;  %v5620_v36 = vpack.c.bf16 %v248_v34, %v247_v30  ;;  %v250_v41 = vld [vmem:[%s6171_s4 + $0x28] sm:$0xff]  ;;  %v3834_v26 = vsel %vm824_vm4, 1.0, %v5261_v7  ;;  %vm3194_vm10 = vcmp.lt.s32.totalorder %v5583_v38, 7 }
  0x1c   :  { %4158 = vmatmul.mubr.f32.vlgmr.msra.gmra.mrb[2].mxu0 %v5261_v7  ;;  %4680 = vmatpush3.bf16.msra.mxu1 %v5558_v28 }
  0x1d   :  { %4690 = vmatpush1.bf16.msra.mxu0 %v5463_v49  ;;  %528 = vmatprep.mubr.f32.mxu0 %v5261_v7 }
  0x1e   :  { %v5118_v56 = vpop.eup %5117  ;;  %4692 = vmatprep.subr.bf16.mxu0 %v5466_v50  ;;  %4681 = vmatprep.subr.bf16.mxu1 %v5262_v8 }
  0x1f   :  { %v442_v62 = vmul.f32 0.0, %v5118_v56 }
  0x20   :  { %4683 = vmatpush3.bf16.msra.mxu1 %v5568_v31 }
  0x21   :  { %4694 = vmatpush1.bf16.msra.mxu0 %v5482_v55  ;;  %v443_v0 = vrot.slane %v442_v62, 4  ;;  %v451_v1 = vmul.f32 0.0, %v442_v62  ;;  %4684 = vmatprep.subr.bf16.mxu1 %v5262_v8 }
  0x22   :  { %4696 = vmatprep.subr.bf16.mxu0 %v5486_v57 }
  0x23   :  { %v444_v5 = vadd.f32 %v443_v0, %v442_v62  ;;  %v452_v6 = vrot.slane %v451_v1, 4 }
  0x24   :  { %4686 = vmatpush3.bf16.msra.mxu1 %v5578_v35 }
  0x25   :  { %4698 = vmatpush1.bf16.msra.mxu0 %v5501_v63  ;;  %v445_v10 = vrot.slane %v444_v5, 2  ;;  %v453_v11 = vadd.f32 %v452_v6, %v451_v1  ;;  %4703 = vmatprep.subr.bf16.mxu1 %v5262_v8  ;;  %v5265_v1 = vmov 1966171168  }
  0x26   :  { %4700 = vmatprep.subr.bf16.mxu0 %v5504_v2  ;;  %v539_v3 = vunpack.c.l.s4 %v5265_v1 }
  0x27   :  { %v446_v12 = vadd.f32 %v445_v10, %v444_v5  ;;  %v454_v14 = vrot.slane %v453_v11, 2 }
  0x28   :  { %v540_v4 = vunpack.c.0.s8 %v539_v3 }
  0x29   :  { %4702 = vmatpush1.bf16.msra.mxu0 %v5513_v9  ;;  %v447_v13 = vrot.slane %v446_v12, 1  ;;  %v455_v17 = vadd.f32 %v454_v14, %v453_v11 }
  0x2a   :  { %4715 = vmatprep.subr.bf16.mxu0 %v5262_v8  ;;  %v5599_v6 = vsub.s32 %v540_v4, %v5583_v38 }
  0x2b   :  { %v448_v15 = vadd.f32 %v447_v13, %v446_v12  ;;  %v456_v18 = vrot.slane %v455_v17, 1 }
  0x2d   :  { %v449_v16 = vmax.f32 %v448_v15, 1e-30  ;;  %v457_v19 = vadd.f32 %v456_v18, %v455_v17 }
  0x2f   :  { %5119 = vrcp.f32 %v449_v16 }
  0x39   :  { %v5120_v20 = vpop.eup %5119 }
  0x3a   :  { %v5518_v21 = vmul.f32 %v5120_v20, %v457_v19 }
  0x3c   :  { %3828 = vmatmul.mubr.msk.f32.vlgmr.msra.gmra.mrb[4].mxu0 %vm54_vm0, %v5518_v21 }
  0x3d   :  { %4717 = vmatpush3.bf16.msra.mxu0 %v5402_v27  ;;  %4214 = vmatprep.mubr.msk.f32.mxu0 %vm5263_vm1, %v5261_v7 }
  0x3e   :  { %4718 = vmatprep.subr.bf16.mxu0 %v5262_v8 }
  0x41   :  { %4720 = vmatpush3.bf16.msra.mxu0 %v5414_v32 }
  0x42   :  { %4721 = vmatprep.subr.bf16.mxu0 %v5262_v8 }
  0x45   :  { %4723 = vmatpush3.bf16.msra.mxu0 %v5429_v37 }
  0x46   :  { %4724 = vmatprep.subr.bf16.mxu0 %v5262_v8 }
  0x49   :  { %4726 = vmatpush3.bf16.msra.mxu0 %v5445_v43 }
  0x4a   :  { %4740 = vmatprep.subr.bf16.mxu0 %v5448_v44 }
  0x4c   :  { %4215 = vmatmul.mubr.msk.f32.vlgmr.msra.gmra.mrb[6].mxu0 %vm54_vm0, %v5518_v21 }
  0x4d   :  { %4742 = vmatpush1.bf16.msra.mxu0 %v5463_v49  ;;  %925 = vmatprep.mubr.f32.mxu0 %v5261_v7 }
  0x4e   :  { %4744 = vmatprep.subr.bf16.mxu0 %v5466_v50 }
  0x51   :  { %4746 = vmatpush1.bf16.msra.mxu0 %v5482_v55 }
  0x52   :  { %4748 = vmatprep.subr.bf16.mxu0 %v5486_v57 }
  0x55   :  { %4750 = vmatpush1.bf16.msra.mxu0 %v5501_v63 }
  0x56   :  { %4752 = vmatprep.subr.bf16.mxu0 %v5504_v2 }
  0x59   :  { %4754 = vmatpush1.bf16.msra.mxu0 %v5513_v9 }
  0x5a   :  { %4767 = vmatprep.subr.bf16.mxu0 %v5262_v8 }
  0xdf   :  { %v147_v46 = vpop.f32.mrb[0].mxu0 }
  0xe0   :  { %v148_v47 = vadd.f32 %v147_v46, %v70_v42  ;;  %v149_v48 = vpop.f32.mrb[1].mxu0  ;;  %v5630_v42 = vpack.c.bf16 %v250_v41, %v249_v40  ;;  %v252_v46 = vld [vmem:[%s6171_s4 + $0x38] sm:$0xff] }
  0xe1   :  { %v150_v51 = vadd.f32 %v149_v48, %v74_v45  ;;  %v224_v52 = vpop.f32.mrb[0].mxu1  ;;  %v251_v45 = vld [vmem:[%s6171_s4 + $0x30] sm:$0xff] }
  0xe2   :  { %152 = vst [vmem:[#allocation5] sm:$0xff] %v148_v47  ;;  %228 = vst.msk [vmem:[#allocation6] sm:$0xff] %vm54_vm0, %v224_v52  ;;  %v4140_v53 = vpop.f32.mrb[1].mxu1  ;;  %v5640_v47 = vpack.c.bf16 %v252_v46, %v251_v45 }
  0xe3   :  { %153 = vst [vmem:[#allocation5 + $0x8] sm:$0xff] %v150_v51 }
  0xe9   :  { %v3826_v56 = vld [vmem:[#allocation6] ss:$0 sm:$0xff] }
  0xea   :  { %v275_v58 = vadd.f32 %v3826_v56, %v269_v54  ;;  %v460_v14 = vld [vmem:[#allocation5] ss:$8 sm:$0x3] }
  0xef   :  { %v345_v59 = vpop.f32.mrb[2].mxu0 }
  0xf0   :  { %v352_v60 = vrot.slane %v345_v59, %v5586_v39  ;;  %v4159_v61 = vpop.f32.mrb[3].mxu0 }
  0xf2   :  { %v353_v62 = vadd.f32 %v352_v60, %v275_v58 }
  0xf4   :  { %5121 = vtanh.f32 %v353_v62 }
  0xfe   :  { %v5122_v0 = vpop.eup %5121 }
  0xff   :  { %4177 = vmatmul.mubr.msk.f32.vlgmr.msra.gmra.mrb[2].mxu1 %vm54_vm0, %v5122_v0 }
 0x100   :  { %4195 = vmatprep.mubr.msk.f32.mxu1 %vm5263_vm1, %v5261_v7  ;;  %4705 = vmatpush3.bf16.msra.mxu1 %v5614_v33 }
 0x101   :  { %4706 = vmatprep.subr.bf16.mxu1 %v5262_v8 }
 0x104   :  { %4708 = vmatpush3.bf16.msra.mxu1 %v5620_v36 }
 0x105   :  { %4709 = vmatprep.subr.bf16.mxu1 %v5262_v8 }
 0x108   :  { %4711 = vmatpush3.bf16.msra.mxu1 %v5630_v42 }
 0x109   :  { %4712 = vmatprep.subr.bf16.mxu1 %v5262_v8 }
 0x10c   :  { %4714 = vmatpush3.bf16.msra.mxu1 %v5640_v47 }
 0x10d   :  { %4727 = vmatprep.subr.bf16.mxu1 %v5262_v8 }
 0x10f   :  { %v530_v5 = vpop.f32.mrb[4].mxu0 }
 0x110   :  { %v532_v10 = vpop.f32.mrb[5].mxu0 }
 0x111   :  { %v537_v11 = vcombine.low %v530_v5, %v532_v10  ;;  %v3831_v5 = vld [vmem:[#allocation6 + $0x1] ss:$0 sm:$0xff] }
 0x113   :  { %v544_v12 = vrot.slane %v537_v11, %v5599_v6 }
 0x115   :  { %v551_v13 = vrot.slane %v544_v12, %v5599_v6 }
 0x117   :  { %v553_v15 = vadd.f32 %v551_v13, %v460_v14 }
 0x119   :  { %5123 = vtanh.f32 %v553_v15  ;;  %v3829_v17 = vmul.f32 -1.442695, %v553_v15 }
 0x11b   :  { %5125 = vpow2.f32 %v3829_v17 }
 0x123   :  { %v5124_v16 = vpop.eup %5123 }
 0x124   :  { %563 = vrot.lane.b32.xlu0 %v5124_v16, %s5266_s2 }
 0x125   :  { %v5126_v18 = vpop.eup %5125 }
 0x126   :  { %v557_v19 = vadd.f32 1.0, %v5126_v18 }
 0x128   :  { %5127 = vrcp.f32 %v557_v19 }
 0x132   :  { %v5128_v23 = vpop.eup %5127 }
 0x133   :  { %v561_v52 = vmul.f32 %v5128_v23, %v5518_v21  ;;  %v575_v58 = vrot.slane %v5128_v23, 1  ;;  %v741_v21 = vpop.f32.mrb[6].mxu0 }
 0x134   :  { %v4216_v62 = vpop.f32.mrb[7].mxu0  ;;  %v748_v3 = vrot.slane %v741_v21, %v5586_v39 }
 0x196   :  { %v564_v20 = vpop.permute.xlu0 %563 }
 0x197   :  { %v565_v22 = vrot.slane %v564_v20, 1 }
 0x199   :  { %v567_v24 = vmul.f32 %v5128_v23, %v565_v22 }
 0x19b   :  { %569 = vrot.lane.b32.xlu0 %v567_v24, %s5266_s2 }
 0x1d2   :  { %v424_v48 = vpop.f32.mrb[2].mxu1 }
 0x1d3   :  { %v4178_v51 = vpop.f32.mrb[3].mxu1 }
 0x20d   :  { %v570_v53 = vpop.permute.xlu0 %569 }
 0x20e   :  { %v572_v54 = vadd.f32 %v570_v53, %v561_v52 }
 0x210   :  { %5129 = vtanh.f32 %v572_v54 }
 0x21a   :  { %v5130_v56 = vpop.eup %5129 }
 0x21b   :  { %578 = vrot.lane.b32.xlu1 %v5130_v56, %s5266_s2 }
 0x28d   :  { %v579_v59 = vpop.permute.xlu1 %578 }
 0x28e   :  { %v5647_v60 = vmul.f32 %v579_v59, %v575_v58 }
 0x290   :  { %v582_v61 = vsel %vm54_vm0, %v5647_v60, %v572_v54  ;;  %4196 = vmatmul.mubr.msk.f32.vlgmr.msra.gmra.mrb[4].mxu1 %vm54_vm0, %v5647_v60 }
 0x291   :  { %583 = vst [vmem:[#allocation2] sm:$0x1] %v582_v61  ;;  %4729 = vmatpush3.bf16.msra.mxu1 %v5552_v25  ;;  %4233 = vmatprep.mubr.msk.f32.mxu1 %vm5263_vm1, %v5261_v7 }
 0x292   :  { %4730 = vmatprep.subr.bf16.mxu1 %v5262_v8 }
 0x295   :  { %4732 = vmatpush3.bf16.msra.mxu1 %v5558_v28 }
 0x296   :  { %4733 = vmatprep.subr.bf16.mxu1 %v5262_v8 }
 0x298   :  { %v846_v34 = vld [vmem:[#allocation2] sm:$0xff] }
 0x299   :  { %4735 = vmatpush3.bf16.msra.mxu1 %v5568_v31 }
 0x29a   :  { %4736 = vmatprep.subr.bf16.mxu1 %v5262_v8 }
 0x29d   :  { %4738 = vmatpush3.bf16.msra.mxu1 %v5578_v35 }
 0x29e   :  { %4755 = vmatprep.subr.bf16.mxu1 %v5262_v8 }
 0x363   :  { %v653_v0 = vpop.f32.mrb[4].mxu1 }
 0x364   :  { %658 = vst.msk [vmem:[#allocation3] sm:$0x1] %vm657_vm3, %v653_v0  ;;  %v4197_v1 = vpop.f32.mrb[5].mxu1 }
 0x36b   :  { %v668_v4 = vld [vmem:[#allocation3] sm:$0xff] }
 0x36c   :  { %v674_v10 = vadd.f32 %v3831_v5, %v668_v4 }
 0x36e   :  { %v749_v11 = vadd.f32 %v748_v3, %v674_v10 }
 0x370   :  { %5131 = vtanh.f32 %v749_v11  ;;  %v857_v11 = vld [vmem:[#allocation5 + $0x1] ss:$8 sm:$0x3] }
 0x37a   :  { %v5132_v12 = vpop.eup %5131 }
 0x37b   :  { %4234 = vmatmul.mubr.msk.f32.vlgmr.msra.gmra.mrb[6].mxu1 %vm54_vm0, %v5132_v12 }
 0x37c   :  { %4757 = vmatpush3.bf16.msra.mxu1 %v5614_v33  ;;  %4252 = vmatprep.mubr.msk.f32.mxu1 %vm5263_vm1, %v5261_v7 }
 0x37d   :  { %4758 = vmatprep.subr.bf16.mxu1 %v5262_v8 }
 0x380   :  { %4760 = vmatpush3.bf16.msra.mxu1 %v5620_v36 }
 0x381   :  { %4761 = vmatprep.subr.bf16.mxu1 %v5262_v8 }
 0x384   :  { %4763 = vmatpush3.bf16.msra.mxu1 %v5630_v42 }
 0x385   :  { %4764 = vmatprep.subr.bf16.mxu1 %v5262_v8 }
 0x388   :  { %4766 = vmatpush3.bf16.msra.mxu1 %v5640_v47 }
 0x389   :  { %4779 = vmatprep.subr.bf16.mxu1 %v5262_v8 }
 0x44e   :  { %v820_v13 = vpop.f32.mrb[6].mxu1 }
 0x44f   :  { %v827_v14 = vsel %vm824_vm4, %v820_v13, -1e+30  ;;  %v4235_v15 = vpop.f32.mrb[7].mxu1 }
 0x450   :  { %v828_v16 = vrot.slane %v827_v14, 4 }
 0x452   :  { %v829_v17 = vmax.f32 %v827_v14, %v828_v16 }
 0x454   :  { %v830_v18 = vrot.slane %v829_v17, 2 }
 0x456   :  { %v831_v19 = vmax.f32 %v829_v17, %v830_v18 }
 0x458   :  { %v832_v20 = vrot.slane %v831_v19, 1 }
 0x45a   :  { %v833_v22 = vmax.f32 %v831_v19, %v832_v20 }
 0x45c   :  { %v834_v23 = vsub.f32 %v827_v14, %v833_v22 }
 0x45e   :  { %v835_v24 = vmul.f32 1.442695, %v834_v23 }
 0x460   :  { %5133 = vpow2.f32 %v835_v24 }
 0x46a   :  { %v5134_v29 = vpop.eup %5133 }
 0x46b   :  { %v838_v30 = vmul.f32 %v5134_v29, %v3834_v26 }
 0x46d   :  { %v839_v40 = vrot.slane %v838_v30, 4  ;;  %v847_v41 = vmul.f32 %v846_v34, %v838_v30 }
 0x46f   :  { %v840_v45 = vadd.f32 %v839_v40, %v838_v30  ;;  %v848_v46 = vrot.slane %v847_v41, 4 }
 0x471   :  { %v841_v48 = vrot.slane %v840_v45, 2  ;;  %v849_v52 = vadd.f32 %v848_v46, %v847_v41 }
 0x473   :  { %v842_v51 = vadd.f32 %v841_v48, %v840_v45  ;;  %v850_v56 = vrot.slane %v849_v52, 2 }
 0x475   :  { %v843_v53 = vrot.slane %v842_v51, 1  ;;  %v851_v59 = vadd.f32 %v850_v56, %v849_v52 }
 0x477   :  { %v844_v54 = vadd.f32 %v843_v53, %v842_v51  ;;  %v852_v61 = vrot.slane %v851_v59, 1  ;;  %v3838_v51 = vld [vmem:[#allocation6 + $0x2] ss:$0 sm:$0xff] }
 0x479   :  { %v845_v58 = vmax.f32 %v844_v54, 1e-30  ;;  %v853_v21 = vadd.f32 %v852_v61, %v851_v59 }
 0x47b   :  { %5135 = vrcp.f32 %v845_v58 }
 0x485   :  { %v5136_v62 = vpop.eup %5135 }
 0x486   :  { %v855_v0 = vmul.f32 %v5136_v62, %v853_v21 }
 0x488   :  { %3835 = vmatmul.mubr.msk.f32.vlgmr.msra.gmra.mrb[8].mxu0 %vm54_vm0, %v855_v0 }
 0x489   :  { %4769 = vmatpush3.bf16.msra.mxu0 %v5402_v27  ;;  %4271 = vmatprep.mubr.msk.f32.mxu0 %vm5263_vm1, %v5261_v7 }
 0x48a   :  { %4770 = vmatprep.subr.bf16.mxu0 %v5262_v8 }
 0x48d   :  { %4772 = vmatpush3.bf16.msra.mxu0 %v5414_v32 }
 0x48e   :  { %4773 = vmatprep.subr.bf16.mxu0 %v5262_v8 }
 0x491   :  { %4775 = vmatpush3.bf16.msra.mxu0 %v5429_v37 }
 0x492   :  { %4776 = vmatprep.subr.bf16.mxu0 %v5262_v8 }
 0x495   :  { %4778 = vmatpush3.bf16.msra.mxu0 %v5445_v43 }
 0x496   :  { %4792 = vmatprep.subr.bf16.mxu0 %v5448_v44 }
 0x498   :  { %4272 = vmatmul.mubr.msk.f32.vlgmr.msra.gmra.mrb[10].mxu0 %vm54_vm0, %v855_v0 }
 0x499   :  { %4794 = vmatpush1.bf16.msra.mxu0 %v5463_v49  ;;  %1320 = vmatprep.mubr.f32.mxu0 %v5261_v7 }
 0x49a   :  { %4796 = vmatprep.subr.bf16.mxu0 %v5466_v50 }
 0x49d   :  { %4798 = vmatpush1.bf16.msra.mxu0 %v5482_v55 }
 0x49e   :  { %4800 = vmatprep.subr.bf16.mxu0 %v5486_v57 }
 0x4a1   :  { %4802 = vmatpush1.bf16.msra.mxu0 %v5501_v63 }
 0x4a2   :  { %4804 = vmatprep.subr.bf16.mxu0 %v5504_v2 }
 0x4a5   :  { %4806 = vmatpush1.bf16.msra.mxu0 %v5513_v9 }
 0x4a6   :  { %4819 = vmatprep.subr.bf16.mxu0 %v5262_v8 }
 0x55b   :  { %v927_v1 = vpop.f32.mrb[8].mxu0 }
 0x55c   :  { %v929_v3 = vpop.f32.mrb[9].mxu0 }
 0x55d   :  { %v934_v4 = vcombine.low %v927_v1, %v929_v3 }
 0x55f   :  { %v941_v5 = vrot.slane %v934_v4, %v5599_v6 }
 0x561   :  { %v948_v10 = vrot.slane %v941_v5, %v5599_v6 }
 0x563   :  { %v950_v12 = vadd.f32 %v948_v10, %v857_v11 }
 0x565   :  { %5137 = vtanh.f32 %v950_v12  ;;  %v3836_v16 = vmul.f32 -1.442695, %v950_v12  ;;  %v3841_v12 = vsel %vm1219_vm5, 1.0, %v5261_v7 }
 0x567   :  { %5139 = vpow2.f32 %v3836_v16 }
 0x56b   :  { %v1136_v13 = vpop.f32.mrb[10].mxu0 }
 0x56c   :  { %v4273_v14 = vpop.f32.mrb[11].mxu0  ;;  %v1143_v53 = vrot.slane %v1136_v13, %v5586_v39 }
 0x56f   :  { %v5138_v15 = vpop.eup %5137 }
 0x570   :  { %960 = vrot.lane.b32.xlu1 %v5138_v15, %s5266_s2 }
 0x571   :  { %v5140_v17 = vpop.eup %5139 }
 0x572   :  { %v954_v18 = vadd.f32 1.0, %v5140_v17 }
 0x574   :  { %5141 = vrcp.f32 %v954_v18 }
 0x57e   :  { %v5142_v22 = vpop.eup %5141 }
 0x57f   :  { %v958_v24 = vmul.f32 %v5142_v22, %v855_v0  ;;  %v972_v34 = vrot.slane %v5142_v22, 1 }
 0x5e2   :  { %v961_v19 = vpop.permute.xlu1 %960 }
 0x5e3   :  { %v962_v20 = vrot.slane %v961_v19, 1 }
 0x5e5   :  { %v964_v23 = vmul.f32 %v5142_v22, %v962_v20 }
 0x5e7   :  { %966 = vrot.lane.b32.xlu0 %v964_v23, %s5266_s2 }
 0x659   :  { %v967_v26 = vpop.permute.xlu0 %966 }
 0x65a   :  { %v969_v29 = vadd.f32 %v967_v26, %v958_v24 }
 0x65c   :  { %5143 = vtanh.f32 %v969_v29 }
 0x666   :  { %v5144_v30 = vpop.eup %5143 }
 0x667   :  { %975 = vrot.lane.b32.xlu1 %v5144_v30, %s5266_s2 }
 0x6d9   :  { %v976_v40 = vpop.permute.xlu1 %975 }
 0x6da   :  { %v5704_v41 = vmul.f32 %v976_v40, %v972_v34 }
 0x6dc   :  { %v979_v45 = vsel %vm54_vm0, %v5704_v41, %v969_v29  ;;  %4253 = vmatmul.mubr.msk.f32.vlgmr.msra.gmra.mrb[8].mxu1 %vm54_vm0, %v5704_v41 }
 0x6dd   :  { %980 = vst [vmem:[#allocation2 + $0x1] sm:$0x1] %v979_v45  ;;  %4781 = vmatpush3.bf16.msra.mxu1 %v5552_v25  ;;  %4290 = vmatprep.mubr.msk.f32.mxu1 %vm5263_vm1, %v5261_v7 }
 0x6de   :  { %4782 = vmatprep.subr.bf16.mxu1 %v5262_v8 }
 0x6e1   :  { %4784 = vmatpush3.bf16.msra.mxu1 %v5558_v28 }
 0x6e2   :  { %4785 = vmatprep.subr.bf16.mxu1 %v5262_v8 }
 0x6e4   :  { %v1241_v15 = vld [vmem:[#allocation2] sm:$0xff] }
 0x6e5   :  { %4787 = vmatpush3.bf16.msra.mxu1 %v5568_v31 }
 0x6e6   :  { %4788 = vmatprep.subr.bf16.mxu1 %v5262_v8 }
 0x6e9   :  { %4790 = vmatpush3.bf16.msra.mxu1 %v5578_v35 }
 0x6ea   :  { %4807 = vmatprep.subr.bf16.mxu1 %v5262_v8 }
 0x7af   :  { %v1050_v46 = vpop.f32.mrb[8].mxu1 }
 0x7b0   :  { %1054 = vst.msk [vmem:[#allocation3 + $0x1] sm:$0x1] %vm657_vm3, %v1050_v46  ;;  %v4254_v48 = vpop.f32.mrb[9].mxu1 }
 0x7b7   :  { %v1063_v52 = vld [vmem:[#allocation3] sm:$0xff] }
 0x7b8   :  { %v1069_v54 = vadd.f32 %v3838_v51, %v1063_v52 }
 0x7ba   :  { %v1144_v56 = vadd.f32 %v1143_v53, %v1069_v54 }
 0x7bc   :  { %5145 = vtanh.f32 %v1144_v56 }
 0x7c6   :  { %v5146_v58 = vpop.eup %5145 }
 0x7c7   :  { %4291 = vmatmul.mubr.msk.f32.vlgmr.msra.gmra.mrb[10].mxu1 %vm54_vm0, %v5146_v58  ;;  %v1252_v58 = vld [vmem:[#allocation5 + $0x2] ss:$8 sm:$0x3] }
 0x7c8   :  { %4809 = vmatpush3.bf16.msra.mxu1 %v5614_v33  ;;  %4309 = vmatprep.mubr.msk.f32.mxu1 %vm5263_vm1, %v5261_v7 }
 0x7c9   :  { %4810 = vmatprep.subr.bf16.mxu1 %v5262_v8 }
 0x7cc   :  { %4812 = vmatpush3.bf16.msra.mxu1 %v5620_v36 }
 0x7cd   :  { %4813 = vmatprep.subr.bf16.mxu1 %v5262_v8 }
 0x7d0   :  { %4815 = vmatpush3.bf16.msra.mxu1 %v5630_v42 }
 0x7d1   :  { %4816 = vmatprep.subr.bf16.mxu1 %v5262_v8 }
 0x7d4   :  { %4818 = vmatpush3.bf16.msra.mxu1 %v5640_v47 }
 0x7d5   :  { %4831 = vmatprep.subr.bf16.mxu1 %v5262_v8 }
 0x89a   :  { %v1215_v59 = vpop.f32.mrb[10].mxu1 }
 0x89b   :  { %v1222_v61 = vsel %vm1219_vm5, %v1215_v59, -1e+30  ;;  %v4292_v21 = vpop.f32.mrb[11].mxu1 }
 0x89c   :  { %v1223_v62 = vrot.slane %v1222_v61, 4 }
 0x89e   :  { %v1224_v0 = vmax.f32 %v1222_v61, %v1223_v62 }
 0x8a0   :  { %v1225_v1 = vrot.slane %v1224_v0, 2 }
 0x8a2   :  { %v1226_v3 = vmax.f32 %v1224_v0, %v1225_v1 }
 0x8a4   :  { %v1227_v4 = vrot.slane %v1226_v3, 1 }
 0x8a6   :  { %v1228_v5 = vmax.f32 %v1226_v3, %v1227_v4 }
 0x8a8   :  { %v1229_v10 = vsub.f32 %v1222_v61, %v1228_v5 }
 0x8aa   :  { %v1230_v11 = vmul.f32 1.442695, %v1229_v10 }
 0x8ac   :  { %5147 = vpow2.f32 %v1230_v11 }
 0x8b6   :  { %v5148_v13 = vpop.eup %5147 }
 0x8b7   :  { %v1233_v14 = vmul.f32 %v5148_v13, %v3841_v12 }
 0x8b9   :  { %v1234_v16 = vrot.slane %v1233_v14, 4  ;;  %v1242_v17 = vmul.f32 %v1241_v15, %v1233_v14 }
 0x8bb   :  { %v1235_v18 = vadd.f32 %v1234_v16, %v1233_v14  ;;  %v1243_v19 = vrot.slane %v1242_v17, 4 }
 0x8bd   :  { %v1236_v20 = vrot.slane %v1235_v18, 2  ;;  %v1244_v23 = vadd.f32 %v1243_v19, %v1242_v17 }
 0x8bf   :  { %v1237_v22 = vadd.f32 %v1236_v20, %v1235_v18  ;;  %v1245_v29 = vrot.slane %v1244_v23, 2 }
 0x8c1   :  { %v1238_v24 = vrot.slane %v1237_v22, 1  ;;  %v1246_v34 = vadd.f32 %v1245_v29, %v1244_v23  ;;  %v3845_v23 = vld [vmem:[#allocation6 + $0x3] ss:$0 sm:$0xff] }
 0x8c3   :  { %v1239_v26 = vadd.f32 %v1238_v24, %v1237_v22  ;;  %v1247_v40 = vrot.slane %v1246_v34, 1 }
 0x8c5   :  { %v1240_v30 = vmax.f32 %v1239_v26, 1e-30  ;;  %v1248_v45 = vadd.f32 %v1247_v40, %v1246_v34 }
 0x8c7   :  { %5149 = vrcp.f32 %v1240_v30 }
 0x8d1   :  { %v5150_v46 = vpop.eup %5149 }
 0x8d2   :  { %v1250_v48 = vmul.f32 %v5150_v46, %v1248_v45 }
 0x8d4   :  { %3842 = vmatmul.mubr.msk.f32.vlgmr.msra.gmra.mrb[12].mxu0 %vm54_vm0, %v1250_v48 }
 0x8d5   :  { %4821 = vmatpush3.bf16.msra.mxu0 %v5402_v27  ;;  %4328 = vmatprep.mubr.msk.f32.mxu0 %vm5263_vm1, %v5261_v7 }
 0x8d6   :  { %4822 = vmatprep.subr.bf16.mxu0 %v5262_v8 }
 0x8d9   :  { %4824 = vmatpush3.bf16.msra.mxu0 %v5414_v32 }
 0x8da   :  { %4825 = vmatprep.subr.bf16.mxu0 %v5262_v8 }
 0x8dd   :  { %4827 = vmatpush3.bf16.msra.mxu0 %v5429_v37 }
 0x8de   :  { %4828 = vmatprep.subr.bf16.mxu0 %v5262_v8 }
 0x8e1   :  { %4830 = vmatpush3.bf16.msra.mxu0 %v5445_v43 }
 0x8e2   :  { %4844 = vmatprep.subr.bf16.mxu0 %v5448_v44 }
 0x8e4   :  { %4329 = vmatmul.mubr.msk.f32.vlgmr.msra.gmra.mrb[14].mxu0 %vm54_vm0, %v1250_v48 }
 0x8e5   :  { %4846 = vmatpush1.bf16.msra.mxu0 %v5463_v49  ;;  %1715 = vmatprep.mubr.f32.mxu0 %v5261_v7 }
 0x8e6   :  { %4848 = vmatprep.subr.bf16.mxu0 %v5466_v50 }
 0x8e9   :  { %4850 = vmatpush1.bf16.msra.mxu0 %v5482_v55 }
 0x8ea   :  { %4852 = vmatprep.subr.bf16.mxu0 %v5486_v57 }
 0x8ed   :  { %4854 = vmatpush1.bf16.msra.mxu0 %v5501_v63 }
 0x8ee   :  { %4856 = vmatprep.subr.bf16.mxu0 %v5504_v2 }
 0x8f1   :  { %4858 = vmatpush1.bf16.msra.mxu0 %v5513_v9 }
 0x8f2   :  { %4871 = vmatprep.subr.bf16.mxu0 %v5262_v8 }
 0x9a7   :  { %v1322_v51 = vpop.f32.mrb[12].mxu0 }
 0x9a8   :  { %v1324_v52 = vpop.f32.mrb[13].mxu0 }
 0x9a9   :  { %v1329_v53 = vcombine.low %v1322_v51, %v1324_v52 }
 0x9ab   :  { %v1336_v54 = vrot.slane %v1329_v53, %v5599_v6 }
 0x9ad   :  { %v1343_v56 = vrot.slane %v1336_v54, %v5599_v6 }
 0x9af   :  { %v1345_v59 = vadd.f32 %v1343_v56, %v1252_v58 }
 0x9b1   :  { %5151 = vtanh.f32 %v1345_v59  ;;  %v3843_v0 = vmul.f32 -1.442695, %v1345_v59 }
 0x9b3   :  { %5153 = vpow2.f32 %v3843_v0 }
 0x9b7   :  { %v1531_v61 = vpop.f32.mrb[14].mxu0 }
 0x9b8   :  { %v4330_v21 = vpop.f32.mrb[15].mxu0  ;;  %v1538_v26 = vrot.slane %v1531_v61, %v5586_v39  ;;  %v3848_v61 = vsel %vm1614_vm6, 1.0, %v5261_v7 }
 0x9bb   :  { %v5152_v62 = vpop.eup %5151 }
 0x9bc   :  { %1355 = vrot.lane.b32.xlu0 %v5152_v62, %s5266_s2 }
 0x9bd   :  { %v5154_v1 = vpop.eup %5153 }
 0x9be   :  { %v1349_v3 = vadd.f32 1.0, %v5154_v1 }
 0x9c0   :  { %5155 = vrcp.f32 %v1349_v3 }
 0x9ca   :  { %v5156_v10 = vpop.eup %5155 }
 0x9cb   :  { %v1353_v12 = vmul.f32 %v5156_v10, %v1250_v48  ;;  %v1367_v16 = vrot.slane %v5156_v10, 1 }
 0xa2e   :  { %v1356_v4 = vpop.permute.xlu0 %1355 }
 0xa2f   :  { %v1357_v5 = vrot.slane %v1356_v4, 1 }
 0xa31   :  { %v1359_v11 = vmul.f32 %v5156_v10, %v1357_v5 }
 0xa33   :  { %1361 = vrot.lane.b32.xlu1 %v1359_v11, %s5266_s2 }
 0xaa5   :  { %v1362_v13 = vpop.permute.xlu1 %1361 }
 0xaa6   :  { %v1364_v14 = vadd.f32 %v1362_v13, %v1353_v12 }
 0xaa8   :  { %5157 = vtanh.f32 %v1364_v14 }
 0xab2   :  { %v5158_v15 = vpop.eup %5157 }
 0xab3   :  { %1370 = vrot.lane.b32.xlu0 %v5158_v15, %s5266_s2 }
 0xb25   :  { %v1371_v17 = vpop.permute.xlu0 %1370 }
 0xb26   :  { %v5761_v18 = vmul.f32 %v1371_v17, %v1367_v16 }
 0xb28   :  { %v1374_v19 = vsel %vm54_vm0, %v5761_v18, %v1364_v14  ;;  %4310 = vmatmul.mubr.msk.f32.vlgmr.msra.gmra.mrb[12].mxu1 %vm54_vm0, %v5761_v18 }
 0xb29   :  { %1375 = vst [vmem:[#allocation2 + $0x2] sm:$0x1] %v1374_v19  ;;  %4833 = vmatpush3.bf16.msra.mxu1 %v5552_v25  ;;  %4347 = vmatprep.mubr.msk.f32.mxu1 %vm5263_vm1, %v5261_v7 }
 0xb2a   :  { %4834 = vmatprep.subr.bf16.mxu1 %v5262_v8 }
 0xb2d   :  { %4836 = vmatpush3.bf16.msra.mxu1 %v5558_v28 }
 0xb2e   :  { %4837 = vmatprep.subr.bf16.mxu1 %v5262_v8 }
 0xb30   :  { %v1636_v0 = vld [vmem:[#allocation2] sm:$0xff] }
 0xb31   :  { %4839 = vmatpush3.bf16.msra.mxu1 %v5568_v31 }
 0xb32   :  { %4840 = vmatprep.subr.bf16.mxu1 %v5262_v8 }
 0xb35   :  { %4842 = vmatpush3.bf16.msra.mxu1 %v5578_v35 }
 0xb36   :  { %4859 = vmatprep.subr.bf16.mxu1 %v5262_v8 }
 0xbfb   :  { %v1445_v20 = vpop.f32.mrb[12].mxu1 }
 0xbfc   :  { %1449 = vst.msk [vmem:[#allocation3 + $0x2] sm:$0x1] %vm657_vm3, %v1445_v20  ;;  %v4311_v22 = vpop.f32.mrb[13].mxu1 }
 0xc03   :  { %v1458_v24 = vld [vmem:[#allocation3] sm:$0xff] }
 0xc04   :  { %v1464_v29 = vadd.f32 %v3845_v23, %v1458_v24 }
 0xc06   :  { %v1539_v30 = vadd.f32 %v1538_v26, %v1464_v29 }
 0xc08   :  { %5159 = vtanh.f32 %v1539_v30 }
 0xc12   :  { %v5160_v34 = vpop.eup %5159 }
 0xc13   :  { %4348 = vmatmul.mubr.msk.f32.vlgmr.msra.gmra.mrb[14].mxu1 %vm54_vm0, %v5160_v34 }
 0xc14   :  { %4861 = vmatpush3.bf16.msra.mxu1 %v5614_v33  ;;  %4366 = vmatprep.mubr.msk.f32.mxu1 %vm5263_vm1, %v5261_v7 }
 0xc15   :  { %4862 = vmatprep.subr.bf16.mxu1 %v5262_v8 }
 0xc18   :  { %4864 = vmatpush3.bf16.msra.mxu1 %v5620_v36 }
 0xc19   :  { %4865 = vmatprep.subr.bf16.mxu1 %v5262_v8 }
 0xc1c   :  { %4867 = vmatpush3.bf16.msra.mxu1 %v5630_v42 }
 0xc1d   :  { %4868 = vmatprep.subr.bf16.mxu1 %v5262_v8 }
 0xc20   :  { %4870 = vmatpush3.bf16.msra.mxu1 %v5640_v47 }
 0xc21   :  { %4883 = vmatprep.subr.bf16.mxu1 %v5262_v8 }
 0xce6   :  { %v1610_v40 = vpop.f32.mrb[14].mxu1 }
 0xce7   :  { %v1617_v45 = vsel %vm1614_vm6, %v1610_v40, -1e+30  ;;  %v4349_v46 = vpop.f32.mrb[15].mxu1  ;;  %v1647_v40 = vld [vmem:[#allocation5 + $0x3] ss:$8 sm:$0x3] }
 0xce8   :  { %v1618_v48 = vrot.slane %v1617_v45, 4 }
 0xcea   :  { %v1619_v51 = vmax.f32 %v1617_v45, %v1618_v48 }
 0xcec   :  { %v1620_v52 = vrot.slane %v1619_v51, 2 }
 0xcee   :  { %v1621_v53 = vmax.f32 %v1619_v51, %v1620_v52 }
 0xcf0   :  { %v1622_v54 = vrot.slane %v1621_v53, 1 }
 0xcf2   :  { %v1623_v56 = vmax.f32 %v1621_v53, %v1622_v54 }
 0xcf4   :  { %v1624_v58 = vsub.f32 %v1617_v45, %v1623_v56 }
 0xcf6   :  { %v1625_v59 = vmul.f32 1.442695, %v1624_v58 }
 0xcf8   :  { %5161 = vpow2.f32 %v1625_v59 }
 0xd02   :  { %v5162_v21 = vpop.eup %5161 }
 0xd03   :  { %v1628_v62 = vmul.f32 %v5162_v21, %v3848_v61 }
 0xd05   :  { %v1629_v1 = vrot.slane %v1628_v62, 4  ;;  %v1637_v3 = vmul.f32 %v1636_v0, %v1628_v62 }
 0xd07   :  { %v1630_v4 = vadd.f32 %v1629_v1, %v1628_v62  ;;  %v1638_v5 = vrot.slane %v1637_v3, 4 }
 0xd09   :  { %v1631_v10 = vrot.slane %v1630_v4, 2  ;;  %v1639_v12 = vadd.f32 %v1638_v5, %v1637_v3 }
 0xd0b   :  { %v1632_v11 = vadd.f32 %v1631_v10, %v1630_v4  ;;  %v1640_v15 = vrot.slane %v1639_v12, 2 }
 0xd0d   :  { %v1633_v13 = vrot.slane %v1632_v11, 1  ;;  %v1641_v17 = vadd.f32 %v1640_v15, %v1639_v12 }
 0xd0f   :  { %v1634_v14 = vadd.f32 %v1633_v13, %v1632_v11  ;;  %v1642_v19 = vrot.slane %v1641_v17, 1  ;;  %v3852_v13 = vld [vmem:[#allocation6 + $0x4] ss:$0 sm:$0xff] }
 0xd11   :  { %v1635_v16 = vmax.f32 %v1634_v14, 1e-30  ;;  %v1643_v20 = vadd.f32 %v1642_v19, %v1641_v17 }
 0xd13   :  { %5163 = vrcp.f32 %v1635_v16 }
 0xd1d   :  { %v5164_v22 = vpop.eup %5163 }
 0xd1e   :  { %v1645_v23 = vmul.f32 %v5164_v22, %v1643_v20 }
 0xd20   :  { %3849 = vmatmul.mubr.msk.f32.vlgmr.msra.gmra.mrb[16].mxu0 %vm54_vm0, %v1645_v23 }
 0xd21   :  { %4873 = vmatpush3.bf16.msra.mxu0 %v5402_v27  ;;  %4385 = vmatprep.mubr.msk.f32.mxu0 %vm5263_vm1, %v5261_v7 }
 0xd22   :  { %4874 = vmatprep.subr.bf16.mxu0 %v5262_v8 }
 0xd25   :  { %4876 = vmatpush3.bf16.msra.mxu0 %v5414_v32 }
 0xd26   :  { %4877 = vmatprep.subr.bf16.mxu0 %v5262_v8 }
 0xd29   :  { %4879 = vmatpush3.bf16.msra.mxu0 %v5429_v37 }
 0xd2a   :  { %4880 = vmatprep.subr.bf16.mxu0 %v5262_v8 }
 0xd2d   :  { %4882 = vmatpush3.bf16.msra.mxu0 %v5445_v43 }
 0xd2e   :  { %4896 = vmatprep.subr.bf16.mxu0 %v5448_v44 }
 0xd30   :  { %4386 = vmatmul.mubr.msk.f32.vlgmr.msra.gmra.mrb[18].mxu0 %vm54_vm0, %v1645_v23 }
 0xd31   :  { %4898 = vmatpush1.bf16.msra.mxu0 %v5463_v49  ;;  %2110 = vmatprep.mubr.f32.mxu0 %v5261_v7 }
 0xd32   :  { %4900 = vmatprep.subr.bf16.mxu0 %v5466_v50 }
 0xd35   :  { %4902 = vmatpush1.bf16.msra.mxu0 %v5482_v55 }
 0xd36   :  { %4904 = vmatprep.subr.bf16.mxu0 %v5486_v57 }
 0xd39   :  { %4906 = vmatpush1.bf16.msra.mxu0 %v5501_v63 }
 0xd3a   :  { %4908 = vmatprep.subr.bf16.mxu0 %v5504_v2 }
 0xd3d   :  { %4910 = vmatpush1.bf16.msra.mxu0 %v5513_v9 }
 0xd3e   :  { %4923 = vmatprep.subr.bf16.mxu0 %v5262_v8 }
 0xdf3   :  { %v1717_v24 = vpop.f32.mrb[16].mxu0 }
 0xdf4   :  { %v1719_v26 = vpop.f32.mrb[17].mxu0 }
 0xdf5   :  { %v1724_v29 = vcombine.low %v1717_v24, %v1719_v26 }
 0xdf7   :  { %v1731_v30 = vrot.slane %v1724_v29, %v5599_v6 }
 0xdf9   :  { %v1738_v34 = vrot.slane %v1731_v30, %v5599_v6 }
 0xdfb   :  { %v1740_v45 = vadd.f32 %v1738_v34, %v1647_v40 }
 0xdfd   :  { %5165 = vtanh.f32 %v1740_v45  ;;  %v3850_v52 = vmul.f32 -1.442695, %v1740_v45 }
 0xdff   :  { %5167 = vpow2.f32 %v3850_v52 }
 0xe03   :  { %v1926_v46 = vpop.f32.mrb[18].mxu0 }
 0xe04   :  { %v4387_v48 = vpop.f32.mrb[19].mxu0  ;;  %v1933_v15 = vrot.slane %v1926_v46, %v5586_v39 }
 0xe05   :  { %v3855_v48 = vsel %vm2009_vm7, 1.0, %v5261_v7 }
 0xe07   :  { %v5166_v51 = vpop.eup %5165 }
 0xe08   :  { %1750 = vrot.lane.b32.xlu1 %v5166_v51, %s5266_s2 }
 0xe09   :  { %v5168_v53 = vpop.eup %5167 }
 0xe0a   :  { %v1744_v54 = vadd.f32 1.0, %v5168_v53 }
 0xe0c   :  { %5169 = vrcp.f32 %v1744_v54 }
 0xe16   :  { %v5170_v59 = vpop.eup %5169 }
 0xe17   :  { %v1748_v21 = vmul.f32 %v5170_v59, %v1645_v23  ;;  %v1762_v3 = vrot.slane %v5170_v59, 1 }
 0xe7a   :  { %v1751_v56 = vpop.permute.xlu1 %1750 }
 0xe7b   :  { %v1752_v58 = vrot.slane %v1751_v56, 1 }
 0xe7d   :  { %v1754_v61 = vmul.f32 %v5170_v59, %v1752_v58 }
 0xe7f   :  { %1756 = vrot.lane.b32.xlu0 %v1754_v61, %s5266_s2 }
 0xef1   :  { %v1757_v62 = vpop.permute.xlu0 %1756 }
 0xef2   :  { %v1759_v0 = vadd.f32 %v1757_v62, %v1748_v21 }
 0xef4   :  { %5171 = vtanh.f32 %v1759_v0 }
 0xefe   :  { %v5172_v1 = vpop.eup %5171 }
 0xeff   :  { %1765 = vrot.lane.b32.xlu1 %v5172_v1, %s5266_s2 }
 0xf71   :  { %v1766_v4 = vpop.permute.xlu1 %1765 }
 0xf72   :  { %v5818_v5 = vmul.f32 %v1766_v4, %v1762_v3 }
 0xf74   :  { %v1769_v10 = vsel %vm54_vm0, %v5818_v5, %v1759_v0  ;;  %4367 = vmatmul.mubr.msk.f32.vlgmr.msra.gmra.mrb[16].mxu1 %vm54_vm0, %v5818_v5 }
 0xf75   :  { %1770 = vst [vmem:[#allocation2 + $0x3] sm:$0x1] %v1769_v10  ;;  %4885 = vmatpush3.bf16.msra.mxu1 %v5552_v25  ;;  %4404 = vmatprep.mubr.msk.f32.mxu1 %vm5263_vm1, %v5261_v7 }
 0xf76   :  { %4886 = vmatprep.subr.bf16.mxu1 %v5262_v8 }
 0xf79   :  { %4888 = vmatpush3.bf16.msra.mxu1 %v5558_v28 }
 0xf7a   :  { %4889 = vmatprep.subr.bf16.mxu1 %v5262_v8 }
 0xf7c   :  { %v2031_v53 = vld [vmem:[#allocation2] sm:$0xff] }
 0xf7d   :  { %4891 = vmatpush3.bf16.msra.mxu1 %v5568_v31 }
 0xf7e   :  { %4892 = vmatprep.subr.bf16.mxu1 %v5262_v8 }
 0xf81   :  { %4894 = vmatpush3.bf16.msra.mxu1 %v5578_v35 }
 0xf82   :  { %4911 = vmatprep.subr.bf16.mxu1 %v5262_v8 }
0x1047   :  { %v1840_v11 = vpop.f32.mrb[16].mxu1 }
0x1048   :  { %1844 = vst.msk [vmem:[#allocation3 + $0x3] sm:$0x1] %vm657_vm3, %v1840_v11  ;;  %v4368_v12 = vpop.f32.mrb[17].mxu1 }
0x104f   :  { %v1853_v14 = vld [vmem:[#allocation3] sm:$0xff] }
0x1050   :  { %v1859_v16 = vadd.f32 %v3852_v13, %v1853_v14 }
0x1052   :  { %v1934_v17 = vadd.f32 %v1933_v15, %v1859_v16 }
0x1054   :  { %5173 = vtanh.f32 %v1934_v17 }
0x105e   :  { %v5174_v19 = vpop.eup %5173 }
0x105f   :  { %4405 = vmatmul.mubr.msk.f32.vlgmr.msra.gmra.mrb[18].mxu1 %vm54_vm0, %v5174_v19 }
0x1060   :  { %4913 = vmatpush3.bf16.msra.mxu1 %v5614_v33  ;;  %4423 = vmatprep.mubr.msk.f32.mxu1 %vm5263_vm1, %v5261_v7 }
0x1061   :  { %4914 = vmatprep.subr.bf16.mxu1 %v5262_v8 }
0x1064   :  { %4916 = vmatpush3.bf16.msra.mxu1 %v5620_v36 }
0x1065   :  { %4917 = vmatprep.subr.bf16.mxu1 %v5262_v8 }
0x1068   :  { %4919 = vmatpush3.bf16.msra.mxu1 %v5630_v42 }
0x1069   :  { %4920 = vmatprep.subr.bf16.mxu1 %v5262_v8 }
0x106c   :  { %4922 = vmatpush3.bf16.msra.mxu1 %v5640_v47 }
0x106d   :  { %4935 = vmatprep.subr.bf16.mxu1 %v5262_v8 }
0x1132   :  { %v2005_v20 = vpop.f32.mrb[18].mxu1 }
0x1133   :  { %v2012_v22 = vsel %vm2009_vm7, %v2005_v20, -1e+30  ;;  %v4406_v23 = vpop.f32.mrb[19].mxu1 }
0x1134   :  { %v2013_v24 = vrot.slane %v2012_v22, 4 }
0x1136   :  { %v2014_v26 = vmax.f32 %v2012_v22, %v2013_v24 }
0x1138   :  { %v2015_v29 = vrot.slane %v2014_v26, 2 }
0x113a   :  { %v2016_v30 = vmax.f32 %v2014_v26, %v2015_v29 }
0x113c   :  { %v2017_v34 = vrot.slane %v2016_v30, 1 }
0x113e   :  { %v2018_v40 = vmax.f32 %v2016_v30, %v2017_v34 }
0x1140   :  { %v2019_v45 = vsub.f32 %v2012_v22, %v2018_v40  ;;  %v2042_v22 = vld [vmem:[#allocation5 + $0x4] ss:$8 sm:$0x3] }
0x1142   :  { %v2020_v46 = vmul.f32 1.442695, %v2019_v45 }
0x1144   :  { %5175 = vpow2.f32 %v2020_v46 }
0x114e   :  { %v5176_v51 = vpop.eup %5175 }
0x114f   :  { %v2023_v52 = vmul.f32 %v5176_v51, %v3855_v48 }
0x1151   :  { %v2024_v54 = vrot.slane %v2023_v52, 4  ;;  %v2032_v56 = vmul.f32 %v2031_v53, %v2023_v52 }
0x1153   :  { %v2025_v58 = vadd.f32 %v2024_v54, %v2023_v52  ;;  %v2033_v59 = vrot.slane %v2032_v56, 4 }
0x1155   :  { %v2026_v61 = vrot.slane %v2025_v58, 2  ;;  %v2034_v62 = vadd.f32 %v2033_v59, %v2032_v56 }
0x1157   :  { %v2027_v21 = vadd.f32 %v2026_v61, %v2025_v58  ;;  %v2035_v3 = vrot.slane %v2034_v62, 2 }
0x1159   :  { %v2028_v0 = vrot.slane %v2027_v21, 1  ;;  %v2036_v10 = vadd.f32 %v2035_v3, %v2034_v62 }
0x115b   :  { %v2029_v1 = vadd.f32 %v2028_v0, %v2027_v21  ;;  %v2037_v11 = vrot.slane %v2036_v10, 1 }
0x115d   :  { %v2030_v4 = vmax.f32 %v2029_v1, 1e-30  ;;  %v2038_v12 = vadd.f32 %v2037_v11, %v2036_v10  ;;  %v3859_v1 = vld [vmem:[#allocation6 + $0x5] ss:$0 sm:$0xff] }
0x115f   :  { %5177 = vrcp.f32 %v2030_v4 }
0x1169   :  { %v5178_v13 = vpop.eup %5177 }
0x116a   :  { %v2040_v14 = vmul.f32 %v5178_v13, %v2038_v12 }
0x116c   :  { %3856 = vmatmul.mubr.msk.f32.vlgmr.msra.gmra.mrb[20].mxu0 %vm54_vm0, %v2040_v14 }
0x116d   :  { %4925 = vmatpush3.bf16.msra.mxu0 %v5402_v27  ;;  %4442 = vmatprep.mubr.msk.f32.mxu0 %vm5263_vm1, %v5261_v7 }
0x116e   :  { %4926 = vmatprep.subr.bf16.mxu0 %v5262_v8 }
0x1171   :  { %4928 = vmatpush3.bf16.msra.mxu0 %v5414_v32 }
0x1172   :  { %4929 = vmatprep.subr.bf16.mxu0 %v5262_v8 }
0x1175   :  { %4931 = vmatpush3.bf16.msra.mxu0 %v5429_v37 }
0x1176   :  { %4932 = vmatprep.subr.bf16.mxu0 %v5262_v8 }
0x1179   :  { %4934 = vmatpush3.bf16.msra.mxu0 %v5445_v43 }
0x117a   :  { %4948 = vmatprep.subr.bf16.mxu0 %v5448_v44 }
0x117c   :  { %4443 = vmatmul.mubr.msk.f32.vlgmr.msra.gmra.mrb[22].mxu0 %vm54_vm0, %v2040_v14 }
0x117d   :  { %4950 = vmatpush1.bf16.msra.mxu0 %v5463_v49  ;;  %2505 = vmatprep.mubr.f32.mxu0 %v5261_v7 }
0x117e   :  { %4952 = vmatprep.subr.bf16.mxu0 %v5466_v50 }
0x1181   :  { %4954 = vmatpush1.bf16.msra.mxu0 %v5482_v55 }
0x1182   :  { %4956 = vmatprep.subr.bf16.mxu0 %v5486_v57 }
0x1185   :  { %4958 = vmatpush1.bf16.msra.mxu0 %v5501_v63 }
0x1186   :  { %4960 = vmatprep.subr.bf16.mxu0 %v5504_v2 }
0x1189   :  { %4962 = vmatpush1.bf16.msra.mxu0 %v5513_v9 }
0x118a   :  { %4975 = vmatprep.subr.bf16.mxu0 %v5262_v8 }
0x123f   :  { %v2112_v15 = vpop.f32.mrb[20].mxu0 }
0x1240   :  { %v2114_v16 = vpop.f32.mrb[21].mxu0 }
0x1241   :  { %v2119_v17 = vcombine.low %v2112_v15, %v2114_v16 }
0x1243   :  { %v2126_v19 = vrot.slane %v2119_v17, %v5599_v6 }
0x1245   :  { %v2133_v20 = vrot.slane %v2126_v19, %v5599_v6 }
0x1247   :  { %v2135_v23 = vadd.f32 %v2133_v20, %v2042_v22 }
0x1249   :  { %5179 = vtanh.f32 %v2135_v23  ;;  %v3857_v30 = vmul.f32 -1.442695, %v2135_v23 }
0x124b   :  { %5181 = vpow2.f32 %v3857_v30 }
0x124f   :  { %v2321_v24 = vpop.f32.mrb[22].mxu0 }
0x1250   :  { %v4444_v26 = vpop.f32.mrb[23].mxu0  ;;  %v2328_v4 = vrot.slane %v2321_v24, %v5586_v39 }
0x1253   :  { %v5180_v29 = vpop.eup %5179 }
0x1254   :  { %2145 = vrot.lane.b32.xlu0 %v5180_v29, %s5266_s2  ;;  %v3862_v29 = vsel %vm2404_vm8, 1.0, %v5261_v7 }
0x1255   :  { %v5182_v34 = vpop.eup %5181 }
0x1256   :  { %v2139_v40 = vadd.f32 1.0, %v5182_v34 }
0x1258   :  { %5183 = vrcp.f32 %v2139_v40 }
0x1262   :  { %v5184_v48 = vpop.eup %5183 }
0x1263   :  { %v2143_v52 = vmul.f32 %v5184_v48, %v2040_v14  ;;  %v2157_v58 = vrot.slane %v5184_v48, 1 }
0x12c6   :  { %v2146_v45 = vpop.permute.xlu0 %2145 }
0x12c7   :  { %v2147_v46 = vrot.slane %v2146_v45, 1 }
0x12c9   :  { %v2149_v51 = vmul.f32 %v5184_v48, %v2147_v46 }
0x12cb   :  { %2151 = vrot.lane.b32.xlu1 %v2149_v51, %s5266_s2 }
0x133d   :  { %v2152_v53 = vpop.permute.xlu1 %2151 }
0x133e   :  { %v2154_v54 = vadd.f32 %v2152_v53, %v2143_v52 }
0x1340   :  { %5185 = vtanh.f32 %v2154_v54 }
0x134a   :  { %v5186_v56 = vpop.eup %5185 }
0x134b   :  { %2160 = vrot.lane.b32.xlu0 %v5186_v56, %s5266_s2 }
0x13bd   :  { %v2161_v59 = vpop.permute.xlu0 %2160 }
0x13be   :  { %v5875_v61 = vmul.f32 %v2161_v59, %v2157_v58 }
0x13c0   :  { %v2164_v21 = vsel %vm54_vm0, %v5875_v61, %v2154_v54  ;;  %4424 = vmatmul.mubr.msk.f32.vlgmr.msra.gmra.mrb[20].mxu1 %vm54_vm0, %v5875_v61 }
0x13c1   :  { %2165 = vst [vmem:[#allocation2 + $0x4] sm:$0x1] %v2164_v21  ;;  %4937 = vmatpush3.bf16.msra.mxu1 %v5552_v25  ;;  %4461 = vmatprep.mubr.msk.f32.mxu1 %vm5263_vm1, %v5261_v7 }
0x13c2   :  { %4938 = vmatprep.subr.bf16.mxu1 %v5262_v8 }
0x13c5   :  { %4940 = vmatpush3.bf16.msra.mxu1 %v5558_v28 }
0x13c6   :  { %4941 = vmatprep.subr.bf16.mxu1 %v5262_v8 }
0x13c8   :  { %v2426_v40 = vld [vmem:[#allocation2] sm:$0xff] }
0x13c9   :  { %4943 = vmatpush3.bf16.msra.mxu1 %v5568_v31 }
0x13ca   :  { %4944 = vmatprep.subr.bf16.mxu1 %v5262_v8 }
0x13cd   :  { %4946 = vmatpush3.bf16.msra.mxu1 %v5578_v35 }
0x13ce   :  { %4963 = vmatprep.subr.bf16.mxu1 %v5262_v8 }
0x1493   :  { %v2235_v62 = vpop.f32.mrb[20].mxu1 }
0x1494   :  { %2239 = vst.msk [vmem:[#allocation3 + $0x4] sm:$0x1] %vm657_vm3, %v2235_v62  ;;  %v4425_v0 = vpop.f32.mrb[21].mxu1 }
0x149b   :  { %v2248_v3 = vld [vmem:[#allocation3] sm:$0xff] }
0x149c   :  { %v2254_v10 = vadd.f32 %v3859_v1, %v2248_v3 }
0x149e   :  { %v2329_v11 = vadd.f32 %v2328_v4, %v2254_v10 }
0x14a0   :  { %5187 = vtanh.f32 %v2329_v11 }
0x14aa   :  { %v5188_v12 = vpop.eup %5187 }
0x14ab   :  { %4462 = vmatmul.mubr.msk.f32.vlgmr.msra.gmra.mrb[22].mxu1 %vm54_vm0, %v5188_v12 }
0x14ac   :  { %4965 = vmatpush3.bf16.msra.mxu1 %v5614_v33  ;;  %4480 = vmatprep.mubr.msk.f32.mxu1 %vm5263_vm1, %v5261_v7 }
0x14ad   :  { %4966 = vmatprep.subr.bf16.mxu1 %v5262_v8 }
0x14b0   :  { %4968 = vmatpush3.bf16.msra.mxu1 %v5620_v36 }
0x14b1   :  { %4969 = vmatprep.subr.bf16.mxu1 %v5262_v8 }
0x14b4   :  { %4971 = vmatpush3.bf16.msra.mxu1 %v5630_v42 }
0x14b5   :  { %4972 = vmatprep.subr.bf16.mxu1 %v5262_v8 }
0x14b8   :  { %4974 = vmatpush3.bf16.msra.mxu1 %v5640_v47 }
0x14b9   :  { %4987 = vmatprep.subr.bf16.mxu1 %v5262_v8 }
0x157e   :  { %v2400_v13 = vpop.f32.mrb[22].mxu1 }
0x157f   :  { %v2407_v14 = vsel %vm2404_vm8, %v2400_v13, -1e+30  ;;  %v4463_v15 = vpop.f32.mrb[23].mxu1 }
0x1580   :  { %v2408_v16 = vrot.slane %v2407_v14, 4  ;;  %v2437_v15 = vld [vmem:[#allocation5 + $0x5] ss:$8 sm:$0x3] }
0x1582   :  { %v2409_v17 = vmax.f32 %v2407_v14, %v2408_v16 }
0x1584   :  { %v2410_v19 = vrot.slane %v2409_v17, 2 }
0x1586   :  { %v2411_v20 = vmax.f32 %v2409_v17, %v2410_v19 }
0x1588   :  { %v2412_v22 = vrot.slane %v2411_v20, 1 }
0x158a   :  { %v2413_v23 = vmax.f32 %v2411_v20, %v2412_v22 }
0x158c   :  { %v2414_v24 = vsub.f32 %v2407_v14, %v2413_v23 }
0x158e   :  { %v2415_v26 = vmul.f32 1.442695, %v2414_v24 }
0x1590   :  { %5189 = vpow2.f32 %v2415_v26 }
0x159a   :  { %v5190_v30 = vpop.eup %5189 }
0x159b   :  { %v2418_v34 = vmul.f32 %v5190_v30, %v3862_v29 }
0x159d   :  { %v2419_v45 = vrot.slane %v2418_v34, 4  ;;  %v2427_v46 = vmul.f32 %v2426_v40, %v2418_v34 }
0x159f   :  { %v2420_v48 = vadd.f32 %v2419_v45, %v2418_v34  ;;  %v2428_v51 = vrot.slane %v2427_v46, 4 }
0x15a1   :  { %v2421_v52 = vrot.slane %v2420_v48, 2  ;;  %v2429_v54 = vadd.f32 %v2428_v51, %v2427_v46 }
0x15a3   :  { %v2422_v53 = vadd.f32 %v2421_v52, %v2420_v48  ;;  %v2430_v59 = vrot.slane %v2429_v54, 2 }
0x15a5   :  { %v2423_v56 = vrot.slane %v2422_v53, 1  ;;  %v2431_v62 = vadd.f32 %v2430_v59, %v2429_v54  ;;  %v3866_v59 = vld [vmem:[#allocation6 + $0x6] ss:$0 sm:$0xff] }
0x15a7   :  { %v2424_v58 = vadd.f32 %v2423_v56, %v2422_v53  ;;  %v2432_v0 = vrot.slane %v2431_v62, 1 }
0x15a9   :  { %v2425_v21 = vmax.f32 %v2424_v58, 1e-30  ;;  %v2433_v1 = vadd.f32 %v2432_v0, %v2431_v62 }
0x15ab   :  { %5191 = vrcp.f32 %v2425_v21 }
0x15b5   :  { %v5192_v3 = vpop.eup %5191 }
0x15b6   :  { %v2435_v4 = vmul.f32 %v5192_v3, %v2433_v1 }
0x15b8   :  { %3863 = vmatmul.mubr.msk.f32.vlgmr.msra.gmra.mrb[24].mxu0 %vm54_vm0, %v2435_v4 }
0x15b9   :  { %4977 = vmatpush3.bf16.msra.mxu0 %v5402_v27  ;;  %4499 = vmatprep.mubr.msk.f32.mxu0 %vm5263_vm1, %v5261_v7 }
0x15ba   :  { %4978 = vmatprep.subr.bf16.mxu0 %v5262_v8 }
0x15bd   :  { %4980 = vmatpush3.bf16.msra.mxu0 %v5414_v32 }
0x15be   :  { %4981 = vmatprep.subr.bf16.mxu0 %v5262_v8 }
0x15c1   :  { %4983 = vmatpush3.bf16.msra.mxu0 %v5429_v37 }
0x15c2   :  { %4984 = vmatprep.subr.bf16.mxu0 %v5262_v8 }
0x15c5   :  { %4986 = vmatpush3.bf16.msra.mxu0 %v5445_v43 }
0x15c6   :  { %5000 = vmatprep.subr.bf16.mxu0 %v5448_v44 }
0x15c8   :  { %4500 = vmatmul.mubr.msk.f32.vlgmr.msra.gmra.mrb[26].mxu0 %vm54_vm0, %v2435_v4 }
0x15c9   :  { %5002 = vmatpush1.bf16.msra.mxu0 %v5463_v49  ;;  %2900 = vmatprep.mubr.f32.mxu0 %v5261_v7 }
0x15ca   :  { %5004 = vmatprep.subr.bf16.mxu0 %v5466_v50 }
0x15cd   :  { %5006 = vmatpush1.bf16.msra.mxu0 %v5482_v55 }
0x15ce   :  { %5008 = vmatprep.subr.bf16.mxu0 %v5486_v57 }
0x15d1   :  { %5010 = vmatpush1.bf16.msra.mxu0 %v5501_v63 }
0x15d2   :  { %5012 = vmatprep.subr.bf16.mxu0 %v5504_v2 }
0x15d5   :  { %5014 = vmatpush1.bf16.msra.mxu0 %v5513_v9 }
0x15d6   :  { %5027 = vmatprep.subr.bf16.mxu0 %v5262_v8 }
0x168b   :  { %v2507_v10 = vpop.f32.mrb[24].mxu0 }
0x168c   :  { %v2509_v11 = vpop.f32.mrb[25].mxu0 }
0x168d   :  { %v2514_v12 = vcombine.low %v2507_v10, %v2509_v11 }
0x168f   :  { %v2521_v13 = vrot.slane %v2514_v12, %v5599_v6 }
0x1691   :  { %v2528_v14 = vrot.slane %v2521_v13, %v5599_v6 }
0x1693   :  { %v2530_v16 = vadd.f32 %v2528_v14, %v2437_v15 }
0x1695   :  { %5193 = vtanh.f32 %v2530_v16  ;;  %v3864_v22 = vmul.f32 -1.442695, %v2530_v16 }
0x1697   :  { %5195 = vpow2.f32 %v3864_v22  ;;  %v3869_v22 = vsel %vm2799_vm9, 1.0, %v5261_v7 }
0x169b   :  { %v2716_v17 = vpop.f32.mrb[26].mxu0 }
0x169c   :  { %v4501_v19 = vpop.f32.mrb[27].mxu0  ;;  %v2723_v62 = vrot.slane %v2716_v17, %v5586_v39 }
0x169f   :  { %v5194_v20 = vpop.eup %5193 }
0x16a0   :  { %2540 = vrot.lane.b32.xlu1 %v5194_v20, %s5266_s2 }
0x16a1   :  { %v5196_v23 = vpop.eup %5195 }
0x16a2   :  { %v2534_v24 = vadd.f32 1.0, %v5196_v23 }
0x16a4   :  { %5197 = vrcp.f32 %v2534_v24 }
0x16ae   :  { %v5198_v30 = vpop.eup %5197 }
0x16af   :  { %v2538_v40 = vmul.f32 %v5198_v30, %v2435_v4  ;;  %v2552_v51 = vrot.slane %v5198_v30, 1 }
0x1712   :  { %v2541_v26 = vpop.permute.xlu1 %2540 }
0x1713   :  { %v2542_v29 = vrot.slane %v2541_v26, 1 }
0x1715   :  { %v2544_v34 = vmul.f32 %v5198_v30, %v2542_v29 }
0x1717   :  { %2546 = vrot.lane.b32.xlu0 %v2544_v34, %s5266_s2 }
0x1789   :  { %v2547_v45 = vpop.permute.xlu0 %2546 }
0x178a   :  { %v2549_v46 = vadd.f32 %v2547_v45, %v2538_v40 }
0x178c   :  { %5199 = vtanh.f32 %v2549_v46 }
0x1796   :  { %v5200_v48 = vpop.eup %5199 }
0x1797   :  { %2555 = vrot.lane.b32.xlu1 %v5200_v48, %s5266_s2 }
0x1809   :  { %v2556_v52 = vpop.permute.xlu1 %2555 }
0x180a   :  { %v5932_v53 = vmul.f32 %v2556_v52, %v2552_v51 }
0x180c   :  { %v2559_v54 = vsel %vm54_vm0, %v5932_v53, %v2549_v46  ;;  %4481 = vmatmul.mubr.msk.f32.vlgmr.msra.gmra.mrb[24].mxu1 %vm54_vm0, %v5932_v53 }
0x180d   :  { %2560 = vst [vmem:[#allocation2 + $0x5] sm:$0x1] %v2559_v54  ;;  %4989 = vmatpush3.bf16.msra.mxu1 %v5552_v25  ;;  %4518 = vmatprep.mubr.msk.f32.mxu1 %vm5263_vm1, %v5261_v7 }
0x180e   :  { %4990 = vmatprep.subr.bf16.mxu1 %v5262_v8 }
0x1811   :  { %4992 = vmatpush3.bf16.msra.mxu1 %v5558_v28 }
0x1812   :  { %4993 = vmatprep.subr.bf16.mxu1 %v5262_v8 }
0x1814   :  { %v2821_v26 = vld [vmem:[#allocation2] sm:$0xff] }
0x1815   :  { %4995 = vmatpush3.bf16.msra.mxu1 %v5568_v31 }
0x1816   :  { %4996 = vmatprep.subr.bf16.mxu1 %v5262_v8 }
0x1819   :  { %4998 = vmatpush3.bf16.msra.mxu1 %v5578_v35 }
0x181a   :  { %5015 = vmatprep.subr.bf16.mxu1 %v5262_v8 }
0x18df   :  { %v2630_v56 = vpop.f32.mrb[24].mxu1 }
0x18e0   :  { %2634 = vst.msk [vmem:[#allocation3 + $0x5] sm:$0x1] %vm657_vm3, %v2630_v56  ;;  %v4482_v58 = vpop.f32.mrb[25].mxu1 }
0x18e7   :  { %v2643_v21 = vld [vmem:[#allocation3] sm:$0xff] }
0x18e8   :  { %v2649_v0 = vadd.f32 %v3866_v59, %v2643_v21 }
0x18ea   :  { %v2724_v1 = vadd.f32 %v2723_v62, %v2649_v0 }
0x18ec   :  { %5201 = vtanh.f32 %v2724_v1 }
0x18f6   :  { %v5202_v3 = vpop.eup %5201 }
0x18f7   :  { %4519 = vmatmul.mubr.msk.f32.vlgmr.msra.gmra.mrb[26].mxu1 %vm54_vm0, %v5202_v3 }
0x18f8   :  { %5017 = vmatpush3.bf16.msra.mxu1 %v5614_v33  ;;  %4537 = vmatprep.mubr.msk.f32.mxu1 %vm5263_vm1, %v5261_v7 }
0x18f9   :  { %5018 = vmatprep.subr.bf16.mxu1 %v5262_v8 }
0x18fc   :  { %5020 = vmatpush3.bf16.msra.mxu1 %v5620_v36 }
0x18fd   :  { %5021 = vmatprep.subr.bf16.mxu1 %v5262_v8 }
0x1900   :  { %5023 = vmatpush3.bf16.msra.mxu1 %v5630_v42 }
0x1901   :  { %5024 = vmatprep.subr.bf16.mxu1 %v5262_v8 }
0x1904   :  { %5026 = vmatpush3.bf16.msra.mxu1 %v5640_v47 }
0x1905   :  { %5039 = vmatprep.subr.bf16.mxu1 %v5262_v8 }
0x19ca   :  { %v2795_v4 = vpop.f32.mrb[26].mxu1 }
0x19cb   :  { %v2802_v10 = vsel %vm2799_vm9, %v2795_v4, -1e+30  ;;  %v4520_v11 = vpop.f32.mrb[27].mxu1 }
0x19cc   :  { %v2803_v12 = vrot.slane %v2802_v10, 4 }
0x19ce   :  { %v2804_v13 = vmax.f32 %v2802_v10, %v2803_v12 }
0x19d0   :  { %v2805_v14 = vrot.slane %v2804_v13, 2 }
0x19d2   :  { %v2806_v15 = vmax.f32 %v2804_v13, %v2805_v14 }
0x19d4   :  { %v2807_v16 = vrot.slane %v2806_v15, 1 }
0x19d6   :  { %v2808_v17 = vmax.f32 %v2806_v15, %v2807_v16 }
0x19d8   :  { %v2809_v19 = vsub.f32 %v2802_v10, %v2808_v17 }
0x19da   :  { %v2810_v20 = vmul.f32 1.442695, %v2809_v19 }
0x19dc   :  { %5203 = vpow2.f32 %v2810_v20 }
0x19e6   :  { %v5204_v23 = vpop.eup %5203 }
0x19e7   :  { %v2813_v24 = vmul.f32 %v5204_v23, %v3869_v22  ;;  %v3873_v23 = vld [vmem:[#allocation6 + $0x7] ss:$0 sm:$0xff] }
0x19e9   :  { %v2814_v29 = vrot.slane %v2813_v24, 4  ;;  %v2822_v30 = vmul.f32 %v2821_v26, %v2813_v24 }
0x19eb   :  { %v2815_v34 = vadd.f32 %v2814_v29, %v2813_v24  ;;  %v2823_v40 = vrot.slane %v2822_v30, 4 }
0x19ed   :  { %v2816_v45 = vrot.slane %v2815_v34, 2  ;;  %v2824_v48 = vadd.f32 %v2823_v40, %v2822_v30 }
0x19ef   :  { %v2817_v46 = vadd.f32 %v2816_v45, %v2815_v34  ;;  %v2825_v54 = vrot.slane %v2824_v48, 2 }
0x19f1   :  { %v2818_v51 = vrot.slane %v2817_v46, 1  ;;  %v2826_v58 = vadd.f32 %v2825_v54, %v2824_v48 }
0x19f3   :  { %v2819_v52 = vadd.f32 %v2818_v51, %v2817_v46  ;;  %v2827_v59 = vrot.slane %v2826_v58, 1 }
0x19f5   :  { %v2820_v56 = vmax.f32 %v2819_v52, 1e-30  ;;  %v2828_v21 = vadd.f32 %v2827_v59, %v2826_v58 }
0x19f7   :  { %5205 = vrcp.f32 %v2820_v56 }
0x1a01   :  { %v5206_v62 = vpop.eup %5205 }
0x1a02   :  { %v2830_v0 = vmul.f32 %v5206_v62, %v2828_v21 }
0x1a04   :  { %3870 = vmatmul.mubr.msk.f32.vlgmr.msra.gmra.mrb[28].mxu0 %vm54_vm0, %v2830_v0 }
0x1a05   :  { %5029 = vmatpush3.bf16.msra.mxu0 %v5402_v27  ;;  %4556 = vmatprep.mubr.msk.f32.mxu0 %vm5263_vm1, %v5261_v7 }
0x1a06   :  { %5030 = vmatprep.subr.bf16.mxu0 %v5262_v8 }
0x1a09   :  { %5032 = vmatpush3.bf16.msra.mxu0 %v5414_v32 }
0x1a0a   :  { %5033 = vmatprep.subr.bf16.mxu0 %v5262_v8 }
0x1a0d   :  { %5035 = vmatpush3.bf16.msra.mxu0 %v5429_v37 }
0x1a0e   :  { %5036 = vmatprep.subr.bf16.mxu0 %v5262_v8 }
0x1a11   :  { %5038 = vmatpush3.bf16.msra.mxu0 %v5445_v43 }
0x1a12   :  { %5052 = vmatprep.subr.bf16.mxu0 %v5448_v44 }
0x1a14   :  { %4557 = vmatmul.mubr.msk.f32.vlgmr.msra.gmra.mrb[30].mxu0 %vm54_vm0, %v2830_v0 }
0x1a15   :  { %5054 = vmatpush1.bf16.msra.mxu0 %v5463_v49  ;;  %3295 = vmatprep.mubr.f32.mxu0 %v5261_v7  ;;  %v2832_v49 = vld [vmem:[#allocation5 + $0x6] ss:$8 sm:$0x3] }
0x1a16   :  { %5056 = vmatprep.subr.bf16.mxu0 %v5466_v50 }
0x1a19   :  { %5058 = vmatpush1.bf16.msra.mxu0 %v5482_v55 }
0x1a1a   :  { %5060 = vmatprep.subr.bf16.mxu0 %v5486_v57 }
0x1a1d   :  { %5062 = vmatpush1.bf16.msra.mxu0 %v5501_v63 }
0x1a1e   :  { %5064 = vmatprep.subr.bf16.mxu0 %v5504_v2 }
0x1a21   :  { %5066 = vmatpush1.bf16.msra.mxu0 %v5513_v9 }
0x1a22   :  { %5079 = vmatprep.subr.bf16.mxu0 %v5262_v8 }
0x1ad7   :  { %v2902_v27 = vpop.f32.mrb[28].mxu0 }
0x1ad8   :  { %v2904_v32 = vpop.f32.mrb[29].mxu0 }
0x1ad9   :  { %v2909_v37 = vcombine.low %v2902_v27, %v2904_v32 }
0x1adb   :  { %v2916_v43 = vrot.slane %v2909_v37, %v5599_v6 }
0x1add   :  { %v2923_v44 = vrot.slane %v2916_v43, %v5599_v6 }
0x1adf   :  { %v2925_v50 = vadd.f32 %v2923_v44, %v2832_v49 }
0x1ae1   :  { %5207 = vtanh.f32 %v2925_v50  ;;  %v3871_v63 = vmul.f32 -1.442695, %v2925_v50 }
0x1ae3   :  { %5209 = vpow2.f32 %v3871_v63 }
0x1ae7   :  { %v3111_v55 = vpop.f32.mrb[30].mxu0 }
0x1ae8   :  { %v4558_v57 = vpop.f32.mrb[31].mxu0  ;;  %v3118_v26 = vrot.slane %v3111_v55, %v5586_v39 }
0x1aeb   :  { %v5208_v1 = vpop.eup %5207 }
0x1aec   :  { %2935 = vrot.lane.b32.xlu0 %v5208_v1, %s5266_s2 }
0x1aed   :  { %v5210_v2 = vpop.eup %5209 }
0x1aee   :  { %v2929_v9 = vadd.f32 1.0, %v5210_v2 }
0x1af0   :  { %5211 = vrcp.f32 %v2929_v9 }
0x1afa   :  { %v5212_v10 = vpop.eup %5211 }
0x1afb   :  { %v2933_v12 = vmul.f32 %v5212_v10, %v2830_v0  ;;  %v2947_v16 = vrot.slane %v5212_v10, 1 }
0x1b5e   :  { %v2936_v3 = vpop.permute.xlu0 %2935 }
0x1b5f   :  { %v2937_v4 = vrot.slane %v2936_v3, 1 }
0x1b61   :  { %v2939_v11 = vmul.f32 %v5212_v10, %v2937_v4  ;;  %v3227_v10 = vld [vmem:[#allocation5 + $0x7] ss:$8 sm:$0x3] }
0x1b63   :  { %2941 = vrot.lane.b32.xlu1 %v2939_v11, %s5266_s2 }
0x1bd5   :  { %v2942_v13 = vpop.permute.xlu1 %2941 }
0x1bd6   :  { %v2944_v14 = vadd.f32 %v2942_v13, %v2933_v12  ;;  %v3436_v13 = vld [vmem:[%s6175_s8] sm:$0xff] }
0x1bd8   :  { %5213 = vtanh.f32 %v2944_v14 }
0x1be2   :  { %v5214_v15 = vpop.eup %5213 }
0x1be3   :  { %2950 = vrot.lane.b32.xlu0 %v5214_v15, %s5266_s2  ;;  %v3438_v15 = vld [vmem:[%s6175_s8 + $0x10] sm:$0xff] }
0x1c55   :  { %v2951_v17 = vpop.permute.xlu0 %2950 }
0x1c56   :  { %v5989_v19 = vmul.f32 %v2951_v17, %v2947_v16 }
0x1c58   :  { %v2954_v20 = vsel %vm54_vm0, %v5989_v19, %v2944_v14  ;;  %4538 = vmatmul.mubr.msk.f32.vlgmr.msra.gmra.mrb[28].mxu1 %vm54_vm0, %v5989_v19  ;;  %v3437_v14 = vld [vmem:[%s6175_s8 + $0x8] sm:$0xff] }
0x1c59   :  { %2955 = vst [vmem:[#allocation2 + $0x6] sm:$0x1] %v2954_v20  ;;  %5041 = vmatpush3.bf16.msra.mxu1 %v5552_v25  ;;  %4575 = vmatprep.mubr.msk.f32.mxu1 %vm5263_vm1, %v5261_v7  ;;  %v5080_v16 = vpack.c.bf16 %v3437_v14, %v3436_v13  ;;  %v3440_v20 = vld [vmem:[%s6175_s8 + $0x20] sm:$0xff] }
0x1c5a   :  { %5042 = vmatprep.subr.bf16.mxu1 %v5262_v8 }
0x1c5d   :  { %5044 = vmatpush3.bf16.msra.mxu1 %v5558_v28 }
0x1c5e   :  { %5045 = vmatprep.subr.bf16.mxu1 %v5262_v8 }
0x1c60   :  { %v3216_v56 = vld [vmem:[#allocation2] sm:$0xff] }
0x1c61   :  { %5047 = vmatpush3.bf16.msra.mxu1 %v5568_v31 }
0x1c62   :  { %5048 = vmatprep.subr.bf16.mxu1 %v5262_v8 }
0x1c65   :  { %5050 = vmatpush3.bf16.msra.mxu1 %v5578_v35 }
0x1c66   :  { %5067 = vmatprep.subr.bf16.mxu1 %v5262_v8 }
0x1d2b   :  { %v3025_v22 = vpop.f32.mrb[28].mxu1 }
0x1d2c   :  { %3029 = vst.msk [vmem:[#allocation3 + $0x6] sm:$0x1] %vm657_vm3, %v3025_v22  ;;  %v4539_v25 = vpop.f32.mrb[29].mxu1  ;;  %v3441_v22 = vld [vmem:[%s6175_s8 + $0x28] sm:$0xff] }
0x1d2d   :  { %v5086_v25 = vpack.c.bf16 %v3441_v22, %v3440_v20 }
0x1d33   :  { %v3038_v24 = vld [vmem:[#allocation3] sm:$0xff] }
0x1d34   :  { %v3044_v29 = vadd.f32 %v3873_v23, %v3038_v24  ;;  %v3442_v23 = vld [vmem:[%s6175_s8 + $0x30] sm:$0xff]  ;;  %v3443_v24 = vld [vmem:[%s6175_s8 + $0x38] sm:$0xff] }
0x1d36   :  { %v3119_v28 = vadd.f32 %v3118_v26, %v3044_v29  ;;  %v5089_v26 = vpack.c.bf16 %v3443_v24, %v3442_v23  ;;  %v3435_v29 = vld [vmem:[%s6176_s9] sm:$0x1] }
0x1d38   :  { %5215 = vtanh.f32 %v3119_v28 }
0x1d42   :  { %v5216_v30 = vpop.eup %5215 }
0x1d43   :  { %4576 = vmatmul.mubr.msk.f32.vlgmr.msra.gmra.mrb[30].mxu1 %vm54_vm0, %v5216_v30 }
0x1d44   :  { %5069 = vmatpush3.bf16.msra.mxu1 %v5614_v33  ;;  %4594 = vmatprep.mubr.msk.f32.mxu1 %vm5263_vm1, %v5261_v7 }
0x1d45   :  { %5070 = vmatprep.subr.bf16.mxu1 %v5262_v8 }
0x1d48   :  { %5072 = vmatpush3.bf16.msra.mxu1 %v5620_v36 }
0x1d49   :  { %5073 = vmatprep.subr.bf16.mxu1 %v5262_v8 }
0x1d4c   :  { %5075 = vmatpush3.bf16.msra.mxu1 %v5630_v42  ;;  %v3876_v42 = vsel %vm3194_vm10, 1.0, %v5261_v7 }
0x1d4d   :  { %5076 = vmatprep.subr.bf16.mxu1 %v5262_v8 }
0x1d50   :  { %5078 = vmatpush3.bf16.msra.mxu1 %v5640_v47 }
0x1d51   :  { %5091 = vmatprep.subr.bf16.mxu1 %v5262_v8 }
0x1e16   :  { %v3190_v31 = vpop.f32.mrb[30].mxu1 }
0x1e17   :  { %v3197_v35 = vsel %vm3194_vm10, %v3190_v31, -1e+30  ;;  %v4577_v33 = vpop.f32.mrb[31].mxu1 }
0x1e18   :  { %v3198_v34 = vrot.slane %v3197_v35, 4 }
0x1e1a   :  { %v3199_v40 = vmax.f32 %v3197_v35, %v3198_v34 }
0x1e1c   :  { %v3200_v45 = vrot.slane %v3199_v40, 2 }
0x1e1e   :  { %v3201_v46 = vmax.f32 %v3199_v40, %v3200_v45  ;;  %v662_v45 = vrot.slane %v5647_v60, %v5586_v39 }
0x1e20   :  { %v3202_v36 = vrot.slane %v3201_v46, 1 }
0x1e22   :  { %v3203_v48 = vmax.f32 %v3201_v46, %v3202_v36  ;;  %v1453_v46 = vrot.slane %v5761_v18, %v5586_v39  ;;  %v2243_v36 = vrot.slane %v5875_v61, %v5586_v39 }
0x1e24   :  { %v3204_v51 = vsub.f32 %v3197_v35, %v3203_v48  ;;  %v3033_v48 = vrot.slane %v5989_v19, %v5586_v39 }
0x1e26   :  { %v3205_v52 = vmul.f32 1.442695, %v3204_v51 }
0x1e28   :  { %5217 = vpow2.f32 %v3205_v52 }
0x1e32   :  { %v5218_v54 = vpop.eup %5217 }
0x1e33   :  { %v3208_v47 = vmul.f32 %v5218_v54, %v3876_v42 }
0x1e35   :  { %v3209_v58 = vrot.slane %v3208_v47, 4  ;;  %v3217_v59 = vmul.f32 %v3216_v56, %v3208_v47 }
0x1e37   :  { %v3210_v38 = vadd.f32 %v3209_v58, %v3208_v47  ;;  %v3218_v21 = vrot.slane %v3217_v59, 4 }
0x1e39   :  { %v3211_v62 = vrot.slane %v3210_v38, 2  ;;  %v3219_v27 = vadd.f32 %v3218_v21, %v3217_v59  ;;  %v1058_v59 = vrot.slane %v5704_v41, %v5586_v39  ;;  %v2638_v21 = vrot.slane %v5932_v53, %v5586_v39 }
0x1e3b   :  { %v3212_v0 = vadd.f32 %v3211_v62, %v3210_v38  ;;  %v3220_v43 = vrot.slane %v3219_v27, 2  ;;  %v1848_v38 = vrot.slane %v5818_v5, %v5586_v39 }
0x1e3d   :  { %v3213_v32 = vrot.slane %v3212_v0, 1  ;;  %v3221_v49 = vadd.f32 %v3220_v43, %v3219_v27 }
0x1e3f   :  { %v3214_v37 = vadd.f32 %v3213_v32, %v3212_v0  ;;  %v3222_v50 = vrot.slane %v3221_v49, 1 }
0x1e41   :  { %v3215_v44 = vmax.f32 %v3214_v37, 1e-30  ;;  %v3223_v55 = vadd.f32 %v3222_v50, %v3221_v49 }
0x1e43   :  { %5219 = vrcp.f32 %v3215_v44 }
0x1e4d   :  { %v5220_v57 = vpop.eup %5219 }
0x1e4e   :  { %v3225_v1 = vmul.f32 %v5220_v57, %v3223_v55 }
0x1e50   :  { %3877 = vmatmul.mubr.msk.f32.vlgmr.msra.gmra.mrb[32].mxu0 %vm54_vm0, %v3225_v1 }
0x1e51   :  { %4613 = vmatprep.mubr.msk.f32.mxu0 %vm5263_vm1, %v5261_v7  ;;  %5081 = vmatpush3.bf16.msra.mxu0 %v5080_v16 }
0x1e52   :  { %5082 = vmatprep.subr.bf16.mxu0 %v5262_v8 }
0x1f23   :  { %v3297_v63 = vpop.f32.mrb[32].mxu0 }
0x1f24   :  { %v3299_v2 = vpop.f32.mrb[33].mxu0 }
0x1f25   :  { %v3304_v9 = vcombine.low %v3297_v63, %v3299_v2  ;;  %v3571_v63 = vld [vmem:[%s6178_s11] sm:$0xff]  ;;  %v3572_v2 = vld [vmem:[%s6178_s11 + $0x8] sm:$0xff] }
0x1f27   :  { %v3311_v3 = vrot.slane %v3304_v9, %v5599_v6  ;;  %v3573_v9 = vld [vmem:[%s6178_s11 + $0x10] sm:$0xff] }
0x1f29   :  { %v3318_v4 = vrot.slane %v3311_v3, %v5599_v6  ;;  %v3439_v6 = vld [vmem:[%s6175_s8 + $0x18] sm:$0xff]  ;;  %s5267_s8 = smov 96   ;;  %v5092_v3 = vpack.c.bf16 %v3572_v2, %v3571_v63  ;;  %v3728_v63 = vld [vmem:[%s6181_s14] sm:$0x1] }
0x1f2a   :  { %v5083_v17 = vpack.c.bf16 %v3439_v6, %v3438_v15 }
0x1f2b   :  { %v3320_v11 = vadd.f32 %v3318_v4, %v3227_v10  ;;  %v3574_v4 = vld [vmem:[%s6178_s11 + $0x18] sm:$0xff] }
0x1f2c   :  { %5084 = vmatpush3.bf16.msra.mxu0 %v5083_v17  ;;  %v5095_v10 = vpack.c.bf16 %v3574_v4, %v3573_v9 }
0x1f2d   :  { %5221 = vtanh.f32 %v3320_v11  ;;  %5085 = vmatprep.subr.bf16.mxu0 %v5262_v8  ;;  %v3878_v28 = vmul.f32 -1.442695, %v3320_v11 }
0x1f2f   :  { %5223 = vpow2.f32 %v3878_v28 }
0x1f30   :  { %5087 = vmatpush3.bf16.msra.mxu0 %v5086_v25 }
0x1f31   :  { %5088 = vmatprep.subr.bf16.mxu0 %v5262_v8 }
0x1f34   :  { %5090 = vmatpush3.bf16.msra.mxu0 %v5089_v26 }
0x1f35   :  { %5103 = vmatprep.subr.bf16.mxu0 %v5262_v8 }
0x1f37   :  { %v5222_v12 = vpop.eup %5221  ;;  %4614 = vmatmul.mubr.msk.f32.vlgmr.msra.gmra.mrb[34].mxu0 %vm54_vm0, %v3435_v29 }
0x1f38   :  { %3330 = vrot.lane.b32.xlu1 %v5222_v12, %s5266_s2  ;;  %4646 = vmatprep.mubr.msk.f32.mxu0 %vm5263_vm1, %v5261_v7 }
0x1f39   :  { %v5224_v30 = vpop.eup %5223 }
0x1f3a   :  { %v3324_v31 = vadd.f32 1.0, %v5224_v30 }
0x1f3c   :  { %5225 = vrcp.f32 %v3324_v31 }
0x1f46   :  { %v5226_v34 = vpop.eup %5225 }
0x1f47   :  { %v3328_v51 = vmul.f32 %v5226_v34, %v3225_v1  ;;  %v3342_v62 = vrot.slane %v5226_v34, 1 }
0x1faa   :  { %v3331_v35 = vpop.permute.xlu1 %3330 }
0x1fab   :  { %v3332_v33 = vrot.slane %v3331_v35, 1 }
0x1fad   :  { %v3334_v40 = vmul.f32 %v5226_v34, %v3332_v33 }
0x1faf   :  { %3336 = vrot.lane.b32.xlu0 %v3334_v40, %s5266_s2 }
0x1fb3   :  { %663 = vrot.lane.b32.xlu0 %v662_v45, %s5267_s8 }
0x1fb7   :  { %1454 = vrot.lane.b32.xlu0 %v1453_v46, %s5267_s8 }
0x1fbb   :  { %2244 = vrot.lane.b32.xlu0 %v2243_v36, %s5267_s8 }
0x1fbf   :  { %3034 = vrot.lane.b32.xlu0 %v3033_v48, %s5267_s8 }
0x200a   :  { %v3513_v54 = vpop.f32.mrb[34].mxu0 }
0x200b   :  { %v3520_v61 = vrot.slane %v3513_v54, %v5586_v39  ;;  %v4615_v47 = vpop.f32.mrb[35].mxu0 }
0x200c   :  { %v3568_v47 = vld [vmem:[%s6177_s10 + $0x8] sm:$0xff] }
0x200d   :  { %3526 = vrot.lane.b32.xlu0 %v3520_v61, %s5267_s8 }
0x2021   :  { %v3337_v60 = vpop.permute.xlu0 %3336 }
0x2022   :  { %v3339_v52 = vadd.f32 %v3337_v60, %v3328_v51 }
0x2024   :  { %5227 = vtanh.f32 %v3339_v52 }
0x2025   :  { %v664_v42 = vpop.permute.xlu0 %663 }
0x2026   :  { %667 = vst.msk [vmem:[#allocation4 + $0x7] sm:$0x1] %vm666_vm11, %v664_v42 }
0x2029   :  { %v1455_v18 = vpop.permute.xlu0 %1454 }
0x202a   :  { %1457 = vst.msk [vmem:[#allocation4 + $0x5] sm:$0x1] %vm666_vm11, %v1455_v18 }
0x202d   :  { %v2245_v56 = vpop.permute.xlu0 %2244 }
0x202e   :  { %v5228_v19 = vpop.eup %5227  ;;  %2247 = vst.msk [vmem:[#allocation4 + $0x3] sm:$0x1] %vm666_vm11, %v2245_v56 }
0x202f   :  { %3345 = vrot.lane.b32.xlu1 %v5228_v19, %s5266_s2 }
0x2031   :  { %v3035_v58 = vpop.permute.xlu0 %3034 }
0x2032   :  { %3037 = vst.msk [vmem:[#allocation4 + $0x1] sm:$0x1] %vm666_vm11, %v3035_v58 }
0x2033   :  { %1059 = vrot.lane.b32.xlu1 %v1058_v59, %s5267_s8 }
0x2037   :  { %1849 = vrot.lane.b32.xlu1 %v1848_v38, %s5267_s8  ;;  %v3569_v38 = vld [vmem:[%s6177_s10 + $0x10] sm:$0xff] }
0x203b   :  { %2639 = vrot.lane.b32.xlu1 %v2638_v21, %s5267_s8  ;;  %v3570_v21 = vld [vmem:[%s6177_s10 + $0x18] sm:$0xff] }
0x207f   :  { %v3527_v50 = vpop.permute.xlu0 %3526 }
0x20a1   :  { %v3346_v0 = vpop.permute.xlu1 %3345 }
0x20a2   :  { %v3348_v27 = vmul.f32 %v3346_v0, %v3342_v62  ;;  %v5101_v0 = vpack.c.bf16 %v3570_v21, %v3569_v38 }
0x20a4   :  { %v3349_v32 = vsel %vm54_vm0, %v3348_v27, %v3339_v52  ;;  %4595 = vmatmul.mubr.msk.f32.vlgmr.msra.gmra.mrb[32].mxu1 %vm54_vm0, %v3348_v27  ;;  %v3428_v41 = vrot.slane %v3348_v27, %v5586_v39 }
0x20a5   :  { %3350 = vst [vmem:[#allocation2 + $0x7] sm:$0x1] %v3349_v32  ;;  %v1060_v37 = vpop.permute.xlu1 %1059  ;;  %4624 = vmatprep.mubr.msk.f32.mxu1 %vm5263_vm1, %v5261_v7  ;;  %5093 = vmatpush3.bf16.msra.mxu1 %v5092_v3 }
0x20a6   :  { %1062 = vst.msk [vmem:[#allocation4 + $0x6] sm:$0x1] %vm666_vm11, %v1060_v37  ;;  %3429 = vrot.lane.b32.xlu1 %v3428_v41, %s5267_s8  ;;  %5094 = vmatprep.subr.bf16.mxu1 %v5262_v8  ;;  %v3724_v41 = vld [vmem:[%s6180_s13] sm:$0xff]  ;;  %v3725_v37 = vld [vmem:[%s6180_s13 + $0x8] sm:$0xff] }
0x20a9   :  { %v1850_v5 = vpop.permute.xlu1 %1849  ;;  %5096 = vmatpush3.bf16.msra.mxu1 %v5095_v10 }
0x20aa   :  { %1852 = vst.msk [vmem:[#allocation4 + $0x4] sm:$0x1] %vm666_vm11, %v1850_v5  ;;  %5097 = vmatprep.subr.bf16.mxu1 %v5262_v8  ;;  %v5104_v5 = vpack.c.bf16 %v3725_v37, %v3724_v41 }
0x20ac   :  { %v3433_v43 = vld [vmem:[#allocation2] sm:$0xff]  ;;  %5105 = vmatpush3.bf16.msra.mxu0 %v5104_v5 }
0x20ad   :  { %v2640_v53 = vpop.permute.xlu1 %2639  ;;  %v3521_v44 = vmul.f32 %v3520_v61, %v3433_v43  ;;  %v3567_v61 = vld [vmem:[%s6177_s10] sm:$0xff]  ;;  %5106 = vmatprep.subr.bf16.mxu0 %v5262_v8 }
0x20ae   :  { %2642 = vst.msk [vmem:[#allocation4 + $0x2] sm:$0x1] %vm666_vm11, %v2640_v53  ;;  %v5098_v58 = vpack.c.bf16 %v3568_v47, %v3567_v61  ;;  %v3727_v53 = vld [vmem:[%s6180_s13 + $0x18] sm:$0xff] }
0x20af   :  { %v3522_v49 = vsel %vm77_vm2, %v3521_v44, 0.0 }
0x20ca   :  { %3523 = vadd.xlane.f32.xlu1 %v3522_v49 }
0x2118   :  { %v3430_v39 = vpop.permute.xlu1 %3429 }
0x2119   :  { %3432 = vst.msk [vmem:[#allocation4] sm:$0x1] %vm666_vm11, %v3430_v39 }
0x2120   :  { %v3434_v55 = vld [vmem:[#allocation4] sm:$0xff] }
0x2121   :  { %v3529_v57 = vmul.f32 %v3527_v50, %v3434_v55  ;;  %v3721_v50 = vld [vmem:[%s6179_s12] sm:$0x1] }
0x2123   :  { %v3530_v1 = vsel %vm77_vm2, %v3529_v57, 0.0 }
0x2124   :  { %3531 = vadd.xlane.f32.xlu0 %v3530_v1 }
0x2157   :  { %v3524_v13 = vpop.xlane.xlu1 %3523 }
0x2177   :  { %v3420_v11 = vpop.f32.mrb[32].mxu1 }
0x2178   :  { %3424 = vst.msk [vmem:[#allocation3 + $0x7] sm:$0x1] %vm657_vm3, %v3420_v11  ;;  %v4596_v12 = vpop.f32.mrb[33].mxu1 }
0x21b1   :  { %v3532_v14 = vpop.xlane.xlu0 %3531 }
0x21b2   :  { %v3533_v15 = vadd.f32 %v3532_v14, %v3524_v13 }
0x21b4   :  { %v3534_v16 = vrot.slane %v3533_v15, 4 }
0x21b6   :  { %v3535_v6 = vmax.f32 %v3533_v15, %v3534_v16 }
0x21b8   :  { %v3536_v17 = vrot.slane %v3535_v6, 2 }
0x21ba   :  { %v3537_v20 = vmax.f32 %v3535_v6, %v3536_v17 }
0x21bc   :  { %v3538_v22 = vrot.slane %v3537_v20, 1 }
0x21be   :  { %v3539_v25 = vmax.f32 %v3537_v20, %v3538_v22 }
0x21c0   :  { %v3540_v23 = vsub.f32 %v3533_v15, %v3539_v25 }
0x21c2   :  { %v3541_v24 = vmul.f32 1.442695, %v3540_v23 }
0x21c4   :  { %5229 = vpow2.f32 %v3541_v24 }
0x21ce   :  { %v5230_v26 = vpop.eup %5229 }
0x21cf   :  { %v3543_v29 = vrot.slane %v5230_v26, 4 }
0x21d1   :  { %v3544_v28 = vadd.f32 %v5230_v26, %v3543_v29 }
0x21d3   :  { %v3545_v30 = vrot.slane %v3544_v28, 2 }
0x21d5   :  { %v3546_v31 = vadd.f32 %v3545_v30, %v3544_v28 }
0x21d7   :  { %v3547_v35 = vrot.slane %v3546_v31, 1 }
0x21d9   :  { %v3548_v33 = vadd.f32 %v3547_v35, %v3546_v31 }
0x21db   :  { %5231 = vrcp.f32 %v3548_v33 }
0x21e5   :  { %v5232_v34 = vpop.eup %5231 }
0x21e6   :  { %v3550_v40 = vmul.f32 %v5232_v34, %v5230_v26 }
0x21e8   :  { %v3559_v45 = vmul.f32 %v3550_v40, %v3434_v55  ;;  %v3551_v46 = vmul.f32 %v3550_v40, %v3433_v43 }
0x21ea   :  { %v3560_v36 = vsel %vm77_vm2, %v3559_v45, 0.0  ;;  %v3552_v48 = vsel %vm77_vm2, %v3551_v46, 0.0 }
0x21eb   :  { %v3561_v51 = vrot.slane %v3560_v36, 4  ;;  %v3553_v60 = vrot.slane %v3552_v48, 4 }
0x21ed   :  { %v3562_v52 = vadd.f32 %v3561_v51, %v3560_v36  ;;  %v3554_v42 = vadd.f32 %v3553_v60, %v3552_v48 }
0x21ef   :  { %v3563_v18 = vrot.slane %v3562_v52, 2  ;;  %v3555_v56 = vrot.slane %v3554_v42, 2 }
0x21f1   :  { %v3564_v54 = vadd.f32 %v3563_v18, %v3562_v52  ;;  %v3556_v62 = vadd.f32 %v3555_v56, %v3554_v42 }
0x21f3   :  { %v3565_v19 = vrot.slane %v3564_v54, 1  ;;  %v3557_v27 = vrot.slane %v3556_v62, 1 }
0x21f5   :  { %v3566_v59 = vadd.f32 %v3565_v19, %v3564_v54  ;;  %v3558_v32 = vadd.f32 %v3557_v27, %v3556_v62 }
0x21f7   :  { %4625 = vmatmul.mubr.msk.f32.vlgmr.msra.gmra.mrb[34].mxu1 %vm77_vm2, %v3566_v59 }
0x21f8   :  { %5099 = vmatpush3.bf16.msra.mxu1 %v5098_v58  ;;  %4635 = vmatprep.mubr.msk.f32.mxu1 %vm5263_vm1, %v5261_v7  ;;  %v3726_v7 = vld [vmem:[%s6180_s13 + $0x10] sm:$0xff]  ;;  %s5268_s13 = smov [#allocation7]  }
0x21f9   :  { %5100 = vmatprep.subr.bf16.mxu1 %v5262_v8  ;;  %v5107_v43 = vpack.c.bf16 %v3727_v53, %v3726_v7  ;;  %s3816_s12 = sshll.u32 %s5268_s13, 4  ;;  %s3817_s12 = int_to_ptr.vmem [resolvable:$true] %s3816_s12 }
0x21fa   :  { %s5237_s2 = scalar_lea.vmem %s3817_s12, 16  ;;  %s5241_s28 = scalar_lea.vmem %s3817_s12, 32 }
0x21fb   :  { %5108 = vmatpush3.bf16.msra.mxu0 %v5107_v43  ;;  %p5238_p0 = scmp.ne.s32.totalorder %s3817_s12, %s5237_s2  ;;  %p5242_p1 = scmp.lt.s32.totalorder %s3817_s12, %s3817_s12 }
0x21fc   :  { %5102 = vmatpush3.bf16.msra.mxu1 %v5101_v0  ;;  %p5243_p2 = scmp.lt.s32.totalorder %s5241_s28, %s5237_s2 }
0x21fe   :  { %p5244_p3 = por %p5243_p2, %p5242_p1 }
0x21ff   :  { %4636 = vmatmul.mubr.msk.f32.vlgmr.msra.gmra.mrb[36].mxu1 %vm77_vm2, %v3558_v32 }
0x2200   :  { %p5245_p4 = pnand %p5244_p3, %p5238_p0 }
0x22ca   :  { %v3644_v44 = vpop.f32.mrb[34].mxu1 }
0x22cb   :  { %v4626_v49 = vpop.f32.mrb[35].mxu1 }
0x22d2   :  { %v3717_v39 = vpop.f32.mrb[36].mxu1 }
0x22d3   :  { %v3718_v55 = vadd.f32 %v3717_v39, %v3644_v44  ;;  %v4637_v57 = vpop.f32.mrb[37].mxu1 }
0x22d5   :  { %v3722_v8 = vadd.f32 %v3721_v50, %v3718_v55 }
0x22d7   :  { %v3723_v1 = vmax.f32 %v3722_v8, 0.0 }
0x22d9   :  { %4647 = vmatmul.mubr.msk.f32.vlgmr.msra.gmra.mrb[36].mxu0 %vm77_vm2, %v3723_v1 }
0x23ac   :  { %v3798_v2 = vpop.f32.mrb[36].mxu0 }
0x23ad   :  { %v3799_v9 = vadd.f32 %v3798_v2, %v3728_v63  ;;  %v4648_v3 = vpop.f32.mrb[37].mxu0 }
0x23af   :  { %v3884_v4 = vmul.f32 -1.442695, %v3799_v9 }
0x23b1   :  { %5233 = vpow2.f32 %v3884_v4 }
0x23bb   :  { %v5234_v10 = vpop.eup %5233 }
0x23bc   :  { %v3805_v11 = vadd.f32 1.0, %v5234_v10 }
0x23be   :  { %5235 = vrcp.f32 %v3805_v11 }
0x23c8   :  { %v5236_v12 = vpop.eup %5235 }
0x23c9   :  { %3809 = vst.msk [vmem:[#allocation7] sm:$0x1] %vm3808_vm12, %v5236_v12 }
0x23ca   :  { %5248 = shalt.err (!%p5245_p4)
}
0x23cb   :  { %s5249_s30 = scalar_lea.hbm %s6182_s15, 16 }
0x23cc   :  { %p5250_p5 = scmp.ne.s32.totalorder %s6182_s15, %s5249_s30  ;;  %p5253_p6 = scmp.lt.u32.totalorder %s5249_s30, %s6182_s15 }
0x23ce   :  { %p5255_p7 = pnand %p5253_p6, %p5250_p5 }
0x23d0   :  { %5258 = shalt.err (!%p5255_p7)
}
0x23d1   :  { %3819 = dma.vmem_to_hbm [thread:$0]  %s3817_s12, 16, %s6182_s15, [#allocation8]  }
0x23d2   :  { %5259 = dma.done.wait [#allocation8], 16  }
0x23d3   :  { %5260 = vsyncadd [#allocation8], 4294967280 }
0x23d4   :  { %3823 = vsyncpa [#allocation8], 1 }

</bundles_post_ra>
